<compile_context>
chip_gen: v7x
topology: tpu7x:2x2x1
jax: 0.10.0
libtpu: 0.0.40
codegen_flags: <defaults>
</compile_context>

<pallas_src>
import math

import jax
import jax.numpy as jnp
from jax import lax
from jax.experimental import pallas as pl
from jax.experimental.pallas import tpu as pltpu


def decoder_kernel(
    feats_ref, u_hs_ref, x_proj_ref, h0_ref, c0_ref,
    Wt_ref, A_w_ref, W_ih_c_t_ref, W_hh_t_ref, b_ref,
    hs_ref, alphas_ref,
):
    feats = feats_ref[...]            # (Bt, F, De)
    u_hs = u_hs_ref[...]              # (Bt, F, A)  -- hoisted U(features) + W_b
    a_w = A_w_ref[...]                # (1, A)
    Wt = Wt_ref[...]                  # (Dd, A)
    W_ih_c_t = W_ih_c_t_ref[...]      # (De, 4Dd)
    W_hh_t = W_hh_t_ref[...]          # (Dd, 4Dd)
    b = b_ref[...]                    # (1, 4Dd)   fused b_ih + b_hh

    Dd = h0_ref.shape[-1]
    seq_len = x_proj_ref.shape[0]

    def step(s, carry):
        h, c = carry

        # --- context-independent gate contribution (MXU work that can hide
        #     under the attention-branch tanh on the EUP) ---
        x_p = x_proj_ref[s]                                     # (Bt, 4Dd)
        gates_pre = (x_p
                     + jnp.dot(h, W_hh_t, preferred_element_type=jnp.float32)
                     + b)

        # --- Attention (A_b inert -> dropped; W_b folded into u_hs) ---
        w_ah = jnp.dot(h, Wt, preferred_element_type=jnp.float32)   # (Bt, A)
        combined = jnp.tanh(u_hs + w_ah[:, None, :])                # (Bt, F, A)
        # N=1 score projection as VPU multiply + lane reduction (no MXU push).
        scores = jnp.sum(combined * a_w, axis=-1)                   # (Bt, F)
        m = jnp.max(scores, axis=1, keepdims=True)
        e = jnp.exp(scores - m)
        denom = jnp.sum(e, axis=1, keepdims=True)
        inv = pl.reciprocal(denom, approx=True)                     # EUP
        inv = inv * (2.0 - denom * inv)                             # Newton step
        alpha = e * inv                                             # softmax over F
        context = jnp.sum(feats * alpha[:, :, None], axis=1)        # (Bt, De)

        # --- LSTM cell (PyTorch gate order i, f, g, o); concat eliminated by
        #     pre-splitting W_ih ---
        gates = gates_pre + jnp.dot(context, W_ih_c_t,
                                    preferred_element_type=jnp.float32)
        i_g = jax.nn.sigmoid(gates[:, 0 * Dd:1 * Dd])
        f_g = jax.nn.sigmoid(gates[:, 1 * Dd:2 * Dd])
        g_g = jnp.tanh(gates[:, 2 * Dd:3 * Dd])
        o_g = jax.nn.sigmoid(gates[:, 3 * Dd:4 * Dd])
        c_new = f_g * c + i_g * g_g
        h_new = o_g * jnp.tanh(c_new)

        # TODO(synk): nn.Dropout(drop_prob) treated as identity (eval semantics).
        hs_ref[s] = h_new                                           # (S, Bt, Dd)
        alphas_ref[s] = alpha                                       # (S, Bt, F)
        return (h_new, c_new)

    lax.fori_loop(0, seq_len, step, (h0_ref[...], c0_ref[...]), unroll=True)


def decoder_rnn_forward(features, captions, params, *, batch_block=None):
    features = features.astype(jnp.float32)
    B, Fn, De = features.shape
    T = captions.shape[1]
    seq_len = T - 1
    E = params["embedding"].shape[1]
    Dd = params["init_h_w"].shape[0]
    A = params["U_w"].shape[0]

    # Batch-block size (parallel grid axis; shards across TCs on v7x).
    bt = B if batch_block is None else min(batch_block, B)
    if bt != B:
        assert B % bt == 0 and bt % 8 == 0, "batch block must be a multiple of 8"
    nb = B // bt

    # ----- hoisted loop-invariant work (plain JAX, well-shaped matmuls) -----
    embeds = params["embedding"][captions[:, :seq_len]].astype(jnp.float32)  # (B,S,E)
    # Embedding-path gate projection hoisted out of the recurrence: M = S*B rows.
    x_proj = jnp.einsum("bse,fe->sbf", embeds,
                        params["W_ih"][:, :E]).astype(jnp.float32)           # (S,B,4Dd)

    # Hoisted attention projection U(features) with W_b folded in (A_b dropped:
    # a uniform shift before softmax cannot change alpha or context).
    u_hs = (jnp.einsum("bfd,ad->bfa", features, params["U_w"])
            + params["U_b"][0] + params["W_b"][0]).astype(jnp.float32)       # (B,F,A)

    # Initial hidden state (one-time work).
    mean_feat = features.mean(axis=1)
    h0 = (mean_feat @ params["init_h_w"].T + params["init_h_b"][0]).astype(jnp.float32)
    c0 = (mean_feat @ params["init_c_w"].T + params["init_c_b"][0]).astype(jnp.float32)

    # Pre-transposed / pre-split LSTM & attention weights.
    Wt = params["W_w"].T.astype(jnp.float32)                 # (Dd, A)
    W_ih_c_t = params["W_ih"][:, E:].T.astype(jnp.float32)   # (De, 4Dd)
    W_hh_t = params["W_hh"].T.astype(jnp.float32)            # (Dd, 4Dd)
    b_lstm = (params["b_ih"] + params["b_hh"]).astype(jnp.float32)  # (1, 4Dd)

    in_specs = [
        pl.BlockSpec((bt, Fn, De), lambda i: (i, 0, 0)),          # features
        pl.BlockSpec((bt, Fn, A), lambda i: (i, 0, 0)),           # u_hs (hoisted)
        pl.BlockSpec((seq_len, bt, 4 * Dd), lambda i: (0, i, 0)), # x_proj (hoisted)
        pl.BlockSpec((bt, Dd), lambda i: (i, 0)),                 # h0
        pl.BlockSpec((bt, Dd), lambda i: (i, 0)),                 # c0
        pl.BlockSpec((Dd, A), lambda i: (0, 0)),                  # W (pre-transposed)
        pl.BlockSpec((1, A), lambda i: (0, 0)),                   # A weight
        pl.BlockSpec((De, 4 * Dd), lambda i: (0, 0)),             # W_ih context part
        pl.BlockSpec((Dd, 4 * Dd), lambda i: (0, 0)),             # W_hh
        pl.BlockSpec((1, 4 * Dd), lambda i: (0, 0)),              # fused LSTM bias
    ]
    out_specs = [
        pl.BlockSpec((seq_len, bt, Dd), lambda i: (0, i, 0)),     # hidden states
        pl.BlockSpec((seq_len, bt, Fn), lambda i: (0, i, 0)),     # attention weights
    ]
    out_shapes = [
        jax.ShapeDtypeStruct((seq_len, B, Dd), jnp.float32),
        jax.ShapeDtypeStruct((seq_len, B, Fn), jnp.float32),
    ]

    # Explicit VMEM budget from the summed block footprint (x2 buffering + slack).
    block_shapes = [
        (bt, Fn, De), (bt, Fn, A), (seq_len, bt, 4 * Dd), (bt, Dd), (bt, Dd),
        (Dd, A), (1, A), (De, 4 * Dd), (Dd, 4 * Dd), (1, 4 * Dd),
        (seq_len, bt, Dd), (seq_len, bt, Fn),
    ]
    block_bytes = sum(math.prod(s) * 4 for s in block_shapes)
    vmem_limit = int(min(64 << 20, max(2 * block_bytes + (4 << 20), 16 << 20)))

    hs_t, alphas_t = pl.pallas_call(
        decoder_kernel,
        out_shape=out_shapes,
        grid_spec=pltpu.PrefetchScalarGridSpec(
            num_scalar_prefetch=0,
            grid=(nb,),
            in_specs=in_specs,
            out_specs=out_specs,
        ),
        compiler_params=pltpu.CompilerParams(
            dimension_semantics=("parallel",),
            vmem_limit_bytes=vmem_limit,
        ),
    )(features, u_hs, x_proj, h0, c0,
      Wt, params["A_w"], W_ih_c_t, W_hh_t, b_lstm)

    # Batched vocab projection outside the recurrence (M = B*seq_len rows on MXU).
    hs = jnp.transpose(hs_t, (1, 0, 2))                                      # (B,S,Dd)
    preds = jnp.einsum("bsd,vd->bsv", hs, params["fcn_w"]) + params["fcn_b"][0]
    alphas = jnp.transpose(alphas_t, (1, 0, 2))                              # (B,S,F)
    return preds, alphas


def reference_forward(features, captions, params):
    """Plain-JAX reproduction of the PyTorch forward (dropout = identity)."""
    features = features.astype(jnp.float32)
    T = captions.shape[1]
    seq_len = T - 1
    Dd = params["init_h_w"].shape[0]
    embeds = params["embedding"][captions]
    mean_feat = features.mean(axis=1)
    h = mean_feat @ params["init_h_w"].T + params["init_h_b"][0]
    c = mean_feat @ params["init_c_w"].T + params["init_c_b"][0]
    preds, alphas = [], []
    for s in range(seq_len):
        u_hs = features @ params["U_w"].T + params["U_b"][0]
        w_ah = h @ params["W_w"].T + params["W_b"][0]
        comb = jnp.tanh(u_hs + w_ah[:, None, :])
        scores = (comb @ params["A_w"].T + params["A_b"][0])[..., 0]
        alpha = jax.nn.softmax(scores, axis=1)
        context = (features * alpha[:, :, None]).sum(axis=1)
        x = jnp.concatenate([embeds[:, s], context], axis=1)
        gates = (x @ params["W_ih"].T + params["b_ih"][0]
                 + h @ params["W_hh"].T + params["b_hh"][0])
        i_g = jax.nn.sigmoid(gates[:, 0 * Dd:1 * Dd])
        f_g = jax.nn.sigmoid(gates[:, 1 * Dd:2 * Dd])
        g_g = jnp.tanh(gates[:, 2 * Dd:3 * Dd])
        o_g = jax.nn.sigmoid(gates[:, 3 * Dd:4 * Dd])
        c = f_g * c + i_g * g_g
        h = o_g * jnp.tanh(c)
        preds.append(h @ params["fcn_w"].T + params["fcn_b"][0])
        alphas.append(alpha)
    return jnp.stack(preds, axis=1), jnp.stack(alphas, axis=1)


def make_params(key, vocab_size, embed_size, attention_dim, encoder_dim, decoder_dim):
    ks = jax.random.split(key, 20)

    def lin(k, out_dim, in_dim):
        bound = 1.0 / jnp.sqrt(in_dim)
        kw, kb = jax.random.split(k)
        w = jax.random.uniform(kw, (out_dim, in_dim), jnp.float32, -bound, bound)
        b = jax.random.uniform(kb, (1, out_dim), jnp.float32, -bound, bound)
        return w, b

    p = {}
    p["embedding"] = jax.random.normal(ks[0], (vocab_size, embed_size), jnp.float32)
    p["W_w"], p["W_b"] = lin(ks[1], attention_dim, decoder_dim)
    p["U_w"], p["U_b"] = lin(ks[2], attention_dim, encoder_dim)
    p["A_w"], p["A_b"] = lin(ks[3], 1, attention_dim)
    p["init_h_w"], p["init_h_b"] = lin(ks[4], decoder_dim, encoder_dim)
    p["init_c_w"], p["init_c_b"] = lin(ks[5], decoder_dim, encoder_dim)
    # f_beta exists in the module but is never used in forward().
    p["f_beta_w"], p["f_beta_b"] = lin(ks[6], encoder_dim, decoder_dim)
    p["fcn_w"], p["fcn_b"] = lin(ks[7], vocab_size, decoder_dim)
    p["W_ih"], p["b_ih"] = lin(ks[8], 4 * decoder_dim, embed_size + encoder_dim)
    p["W_hh"], p["b_hh"] = lin(ks[9], 4 * decoder_dim, decoder_dim)
    return p


if __name__ == "__main__":
    # Small, module-consistent shapes; Dd = A = 128 keeps gate slices and the
    # hs writeback lane-aligned.
    B, Fn = 2, 8                 # batch, num feature locations
    encoder_dim = 64
    decoder_dim = 128
    attention_dim = 128
    embed_size = 64
    vocab_size = 256
    T = 8                        # caption length -> seq_length = 7

    key = jax.random.PRNGKey(0)
    kf, kc, kp = jax.random.split(key, 3)
    features = jax.random.normal(kf, (B, Fn, encoder_dim), jnp.float32)
    captions = jax.random.randint(kc, (B, T), 0, vocab_size, dtype=jnp.int32)
    params = make_params(kp, vocab_size, embed_size, attention_dim,
                         encoder_dim, decoder_dim)

    preds, alphas = decoder_rnn_forward(features, captions, params)
    preds, alphas = jax.block_until_ready((preds, alphas))

    preds_ref, alphas_ref = reference_forward(features, captions, params)
    assert preds.shape == (B, T - 1, vocab_size)
    assert alphas.shape == (B, T - 1, Fn)
    assert jnp.allclose(preds, preds_ref, atol=1e-4, rtol=1e-4)
    assert jnp.allclose(alphas, alphas_ref, atol=1e-4, rtol=1e-4)
    print("KERNEL_OK")
</pallas_src>

<mosaic_0001>
module attributes {stable_mosaic.version = 11 : i64} {
  func.func @decoder_kernel(%arg0: i32, %arg1: memref<2x8x64xf32, #tpu.memory_space<vmem>>, %arg2: memref<2x8x128xf32, #tpu.memory_space<vmem>>, %arg3: memref<7x2x512xf32, #tpu.memory_space<vmem>>, %arg4: memref<2x128xf32, #tpu.memory_space<vmem>>, %arg5: memref<2x128xf32, #tpu.memory_space<vmem>>, %arg6: memref<128x128xf32, #tpu.memory_space<vmem>>, %arg7: memref<1x128xf32, #tpu.memory_space<vmem>>, %arg8: memref<64x512xf32, #tpu.memory_space<vmem>>, %arg9: memref<128x512xf32, #tpu.memory_space<vmem>>, %arg10: memref<1x512xf32, #tpu.memory_space<vmem>>, %arg11: memref<7x2x128xf32, #tpu.memory_space<vmem>>, %arg12: memref<7x2x8xf32, #tpu.memory_space<vmem>>) attributes {dimension_semantics = [#tpu.dimension_semantics<parallel>], iteration_bounds = array<i64: 1>, scalar_prefetch = 0 : i64, scratch_operands = 0 : i64, tpu.core_type = #tpu.core_type<tc>, window_params = [{transform_indices = @transform_0, window_bounds = array<i64: 2, 8, 64>}, {transform_indices = @transform_1, window_bounds = array<i64: 2, 8, 128>}, {transform_indices = @transform_2, window_bounds = array<i64: 7, 2, 512>}, {transform_indices = @transform_3, window_bounds = array<i64: 2, 128>}, {transform_indices = @transform_4, window_bounds = array<i64: 2, 128>}, {pipeline_mode = #tpu.pipeline_mode<synchronous>, transform_indices = @transform_5, window_bounds = array<i64: 128, 128>}, {pipeline_mode = #tpu.pipeline_mode<synchronous>, transform_indices = @transform_6, window_bounds = array<i64: 1, 128>}, {pipeline_mode = #tpu.pipeline_mode<synchronous>, transform_indices = @transform_7, window_bounds = array<i64: 64, 512>}, {pipeline_mode = #tpu.pipeline_mode<synchronous>, transform_indices = @transform_8, window_bounds = array<i64: 128, 512>}, {pipeline_mode = #tpu.pipeline_mode<synchronous>, transform_indices = @transform_9, window_bounds = array<i64: 1, 512>}, {transform_indices = @transform_10, window_bounds = array<i64: 7, 2, 128>}, {transform_indices = @transform_11, window_bounds = array<i64: 7, 2, 8>}]} {
    %c0 = arith.constant 0 : index
    %c0_0 = arith.constant 0 : index
    %c0_1 = arith.constant 0 : index
    %0 = vector.load %arg1[%c0, %c0_0, %c0_1] : memref<2x8x64xf32, #tpu.memory_space<vmem>>, vector<2x8x64xf32>
    %c0_2 = arith.constant 0 : index
    %c0_3 = arith.constant 0 : index
    %c0_4 = arith.constant 0 : index
    %1 = vector.load %arg2[%c0_2, %c0_3, %c0_4] : memref<2x8x128xf32, #tpu.memory_space<vmem>>, vector<2x8x128xf32>
    %c0_5 = arith.constant 0 : index
    %c0_6 = arith.constant 0 : index
    %2 = vector.load %arg7[%c0_5, %c0_6] : memref<1x128xf32, #tpu.memory_space<vmem>>, vector<1x128xf32>
    %c0_7 = arith.constant 0 : index
    %c0_8 = arith.constant 0 : index
    %3 = vector.load %arg6[%c0_7, %c0_8] : memref<128x128xf32, #tpu.memory_space<vmem>>, vector<128x128xf32>
    %c0_9 = arith.constant 0 : index
    %c0_10 = arith.constant 0 : index
    %4 = vector.load %arg8[%c0_9, %c0_10] : memref<64x512xf32, #tpu.memory_space<vmem>>, vector<64x512xf32>
    %c0_11 = arith.constant 0 : index
    %c0_12 = arith.constant 0 : index
    %5 = vector.load %arg9[%c0_11, %c0_12] : memref<128x512xf32, #tpu.memory_space<vmem>>, vector<128x512xf32>
    %c0_13 = arith.constant 0 : index
    %c0_14 = arith.constant 0 : index
    %6 = vector.load %arg10[%c0_13, %c0_14] : memref<1x512xf32, #tpu.memory_space<vmem>>, vector<1x512xf32>
    %c0_15 = arith.constant 0 : index
    %c0_16 = arith.constant 0 : index
    %7 = vector.load %arg4[%c0_15, %c0_16] : memref<2x128xf32, #tpu.memory_space<vmem>>, vector<2x128xf32>
    %c0_17 = arith.constant 0 : index
    %c0_18 = arith.constant 0 : index
    %8 = vector.load %arg5[%c0_17, %c0_18] : memref<2x128xf32, #tpu.memory_space<vmem>>, vector<2x128xf32>
    %c0_i32 = arith.constant 0 : i32
    %9 = arith.index_cast %c0_i32 : i32 to index
    %c0_19 = arith.constant 0 : index
    %c0_20 = arith.constant 0 : index
    %10 = vector.load %arg3[%9, %c0_19, %c0_20] : memref<7x2x512xf32, #tpu.memory_space<vmem>>, vector<1x2x512xf32>
    %11 = vector.shape_cast %10 : vector<1x2x512xf32> to vector<2x512xf32>
    %cst = arith.constant dense<0.000000e+00> : vector<2x512xf32>
    %12 = tpu.matmul %7, %5, %cst {dimension_numbers = #tpu.dot_dimension_numbers<[1], [0], [0], [1], [0, 0, 1, 1], [], []>} : vector<2x128xf32>, vector<128x512xf32>, vector<2x512xf32> -> vector<2x512xf32>
    %13 = arith.addf %11, %12 : vector<2x512xf32>
    %14 = vector.broadcast %6 : vector<1x512xf32> to vector<2x512xf32>
    %15 = arith.addf %13, %14 : vector<2x512xf32>
    %cst_21 = arith.constant dense<0.000000e+00> : vector<2x128xf32>
    %16 = tpu.matmul %7, %3, %cst_21 {dimension_numbers = #tpu.dot_dimension_numbers<[1], [0], [0], [1], [0, 0, 1, 1], [], []>} : vector<2x128xf32>, vector<128x128xf32>, vector<2x128xf32> -> vector<2x128xf32>
    %17 = vector.shape_cast %16 : vector<2x128xf32> to vector<2x1x128xf32>
    %18 = vector.broadcast %17 : vector<2x1x128xf32> to vector<2x8x128xf32>
    %19 = arith.addf %1, %18 : vector<2x8x128xf32>
    %20 = math.tanh %19 : vector<2x8x128xf32>
    %21 = vector.shape_cast %2 : vector<1x128xf32> to vector<1x1x128xf32>
    %22 = vector.broadcast %21 : vector<1x1x128xf32> to vector<2x8x128xf32>
    %23 = arith.mulf %20, %22 : vector<2x8x128xf32>
    %cst_22 = arith.constant dense<0.000000e+00> : vector<2x8xf32>
    %24 = vector.multi_reduction <add>, %23, %cst_22 [2] : vector<2x8x128xf32> to vector<2x8xf32>
    %cst_23 = arith.constant dense<0xFF800000> : vector<2xf32>
    %25 = vector.multi_reduction <maximumf>, %24, %cst_23 [1] : vector<2x8xf32> to vector<2xf32>
    %26 = vector.shape_cast %25 : vector<2xf32> to vector<2x1xf32>
    %27 = vector.broadcast %26 : vector<2x1xf32> to vector<2x8xf32>
    %28 = arith.subf %24, %27 : vector<2x8xf32>
    %29 = math.exp %28 : vector<2x8xf32>
    %cst_24 = arith.constant dense<0.000000e+00> : vector<2xf32>
    %30 = vector.multi_reduction <add>, %29, %cst_24 [1] : vector<2x8xf32> to vector<2xf32>
    %31 = vector.shape_cast %30 : vector<2xf32> to vector<2x1xf32>
    %32 = tpu.reciprocal %31 {approx = true} : vector<2x1xf32> -> vector<2x1xf32>
    %33 = arith.mulf %31, %32 : vector<2x1xf32>
    %cst_25 = arith.constant 2.000000e+00 : f32
    %34 = vector.broadcast %cst_25 : f32 to vector<2x1xf32>
    %35 = arith.subf %34, %33 : vector<2x1xf32>
    %36 = arith.mulf %32, %35 : vector<2x1xf32>
    %37 = vector.broadcast %36 : vector<2x1xf32> to vector<2x8xf32>
    %38 = arith.mulf %29, %37 : vector<2x8xf32>
    %39 = vector.shape_cast %38 : vector<2x8xf32> to vector<2x8x1xf32>
    %40 = vector.broadcast %39 : vector<2x8x1xf32> to vector<2x8x64xf32>
    %41 = arith.mulf %0, %40 : vector<2x8x64xf32>
    %cst_26 = arith.constant dense<0.000000e+00> : vector<2x64xf32>
    %42 = vector.multi_reduction <add>, %41, %cst_26 [1] : vector<2x8x64xf32> to vector<2x64xf32>
    %cst_27 = arith.constant dense<0.000000e+00> : vector<2x512xf32>
    %43 = tpu.matmul %42, %4, %cst_27 {dimension_numbers = #tpu.dot_dimension_numbers<[1], [0], [0], [1], [0, 0, 1, 1], [], []>} : vector<2x64xf32>, vector<64x512xf32>, vector<2x512xf32> -> vector<2x512xf32>
    %44 = arith.addf %15, %43 : vector<2x512xf32>
    %45 = vector.extract_strided_slice %44 {offsets = [0, 0], sizes = [2, 128], strides = [1, 1]} : vector<2x512xf32> to vector<2x128xf32>
    %46 = arith.negf %45 : vector<2x128xf32>
    %47 = math.exp %46 : vector<2x128xf32>
    %cst_28 = arith.constant 1.000000e+00 : f32
    %48 = vector.broadcast %cst_28 : f32 to vector<2x128xf32>
    %49 = arith.addf %48, %47 : vector<2x128xf32>
    %50 = arith.divf %48, %49 : vector<2x128xf32>
    %51 = vector.extract_strided_slice %44 {offsets = [0, 128], sizes = [2, 128], strides = [1, 1]} : vector<2x512xf32> to vector<2x128xf32>
    %52 = arith.negf %51 : vector<2x128xf32>
    %53 = math.exp %52 : vector<2x128xf32>
    %cst_29 = arith.constant 1.000000e+00 : f32
    %54 = vector.broadcast %cst_29 : f32 to vector<2x128xf32>
    %55 = arith.addf %54, %53 : vector<2x128xf32>
    %56 = arith.divf %54, %55 : vector<2x128xf32>
    %57 = vector.extract_strided_slice %44 {offsets = [0, 256], sizes = [2, 128], strides = [1, 1]} : vector<2x512xf32> to vector<2x128xf32>
    %58 = math.tanh %57 : vector<2x128xf32>
    %59 = vector.extract_strided_slice %44 {offsets = [0, 384], sizes = [2, 128], strides = [1, 1]} : vector<2x512xf32> to vector<2x128xf32>
    %60 = arith.negf %59 : vector<2x128xf32>
    %61 = math.exp %60 : vector<2x128xf32>
    %cst_30 = arith.constant 1.000000e+00 : f32
    %62 = vector.broadcast %cst_30 : f32 to vector<2x128xf32>
    %63 = arith.addf %62, %61 : vector<2x128xf32>
    %64 = arith.divf %62, %63 : vector<2x128xf32>
    %65 = arith.mulf %56, %8 : vector<2x128xf32>
    %66 = arith.mulf %50, %58 : vector<2x128xf32>
    %67 = arith.addf %65, %66 : vector<2x128xf32>
    %68 = math.tanh %67 : vector<2x128xf32>
    %69 = arith.mulf %64, %68 : vector<2x128xf32>
    %70 = arith.index_cast %c0_i32 : i32 to index
    %c0_31 = arith.constant 0 : index
    %c0_32 = arith.constant 0 : index
    %71 = vector.load %arg11[%70, %c0_31, %c0_32] : memref<7x2x128xf32, #tpu.memory_space<vmem>>, vector<1x2x128xf32>
    %72 = vector.shape_cast %71 : vector<1x2x128xf32> to vector<2x128xf32>
    %73 = vector.shape_cast %69 : vector<2x128xf32> to vector<1x2x128xf32>
    tpu.vector_store %arg11[%70, %c0_31, %c0_32], %73 {strides = array<i32>} : memref<7x2x128xf32, #tpu.memory_space<vmem>>, vector<1x2x128xf32>,
    %74 = arith.index_cast %c0_i32 : i32 to index
    %c0_33 = arith.constant 0 : index
    %c0_34 = arith.constant 0 : index
    %75 = vector.load %arg12[%74, %c0_33, %c0_34] : memref<7x2x8xf32, #tpu.memory_space<vmem>>, vector<1x2x8xf32>
    %76 = vector.shape_cast %75 : vector<1x2x8xf32> to vector<2x8xf32>
    %77 = vector.shape_cast %38 : vector<2x8xf32> to vector<1x2x8xf32>
    tpu.vector_store %arg12[%74, %c0_33, %c0_34], %77 {strides = array<i32>} : memref<7x2x8xf32, #tpu.memory_space<vmem>>, vector<1x2x8xf32>,
    %c1_i32 = arith.constant 1 : i32
    %78 = arith.index_cast %c1_i32 : i32 to index
    %c0_35 = arith.constant 0 : index
    %c0_36 = arith.constant 0 : index
    %79 = vector.load %arg3[%78, %c0_35, %c0_36] : memref<7x2x512xf32, #tpu.memory_space<vmem>>, vector<1x2x512xf32>
    %80 = vector.shape_cast %79 : vector<1x2x512xf32> to vector<2x512xf32>
    %cst_37 = arith.constant dense<0.000000e+00> : vector<2x512xf32>
    %81 = tpu.matmul %69, %5, %cst_37 {dimension_numbers = #tpu.dot_dimension_numbers<[1], [0], [0], [1], [0, 0, 1, 1], [], []>} : vector<2x128xf32>, vector<128x512xf32>, vector<2x512xf32> -> vector<2x512xf32>
    %82 = arith.addf %80, %81 : vector<2x512xf32>
    %83 = vector.broadcast %6 : vector<1x512xf32> to vector<2x512xf32>
    %84 = arith.addf %82, %83 : vector<2x512xf32>
    %cst_38 = arith.constant dense<0.000000e+00> : vector<2x128xf32>
    %85 = tpu.matmul %69, %3, %cst_38 {dimension_numbers = #tpu.dot_dimension_numbers<[1], [0], [0], [1], [0, 0, 1, 1], [], []>} : vector<2x128xf32>, vector<128x128xf32>, vector<2x128xf32> -> vector<2x128xf32>
    %86 = vector.shape_cast %85 : vector<2x128xf32> to vector<2x1x128xf32>
    %87 = vector.broadcast %86 : vector<2x1x128xf32> to vector<2x8x128xf32>
    %88 = arith.addf %1, %87 : vector<2x8x128xf32>
    %89 = math.tanh %88 : vector<2x8x128xf32>
    %90 = vector.shape_cast %2 : vector<1x128xf32> to vector<1x1x128xf32>
    %91 = vector.broadcast %90 : vector<1x1x128xf32> to vector<2x8x128xf32>
    %92 = arith.mulf %89, %91 : vector<2x8x128xf32>
    %cst_39 = arith.constant dense<0.000000e+00> : vector<2x8xf32>
    %93 = vector.multi_reduction <add>, %92, %cst_39 [2] : vector<2x8x128xf32> to vector<2x8xf32>
    %cst_40 = arith.constant dense<0xFF800000> : vector<2xf32>
    %94 = vector.multi_reduction <maximumf>, %93, %cst_40 [1] : vector<2x8xf32> to vector<2xf32>
    %95 = vector.shape_cast %94 : vector<2xf32> to vector<2x1xf32>
    %96 = vector.broadcast %95 : vector<2x1xf32> to vector<2x8xf32>
    %97 = arith.subf %93, %96 : vector<2x8xf32>
    %98 = math.exp %97 : vector<2x8xf32>
    %cst_41 = arith.constant dense<0.000000e+00> : vector<2xf32>
    %99 = vector.multi_reduction <add>, %98, %cst_41 [1] : vector<2x8xf32> to vector<2xf32>
    %100 = vector.shape_cast %99 : vector<2xf32> to vector<2x1xf32>
    %101 = tpu.reciprocal %100 {approx = true} : vector<2x1xf32> -> vector<2x1xf32>
    %102 = arith.mulf %100, %101 : vector<2x1xf32>
    %cst_42 = arith.constant 2.000000e+00 : f32
    %103 = vector.broadcast %cst_42 : f32 to vector<2x1xf32>
    %104 = arith.subf %103, %102 : vector<2x1xf32>
    %105 = arith.mulf %101, %104 : vector<2x1xf32>
    %106 = vector.broadcast %105 : vector<2x1xf32> to vector<2x8xf32>
    %107 = arith.mulf %98, %106 : vector<2x8xf32>
    %108 = vector.shape_cast %107 : vector<2x8xf32> to vector<2x8x1xf32>
    %109 = vector.broadcast %108 : vector<2x8x1xf32> to vector<2x8x64xf32>
    %110 = arith.mulf %0, %109 : vector<2x8x64xf32>
    %cst_43 = arith.constant dense<0.000000e+00> : vector<2x64xf32>
    %111 = vector.multi_reduction <add>, %110, %cst_43 [1] : vector<2x8x64xf32> to vector<2x64xf32>
    %cst_44 = arith.constant dense<0.000000e+00> : vector<2x512xf32>
    %112 = tpu.matmul %111, %4, %cst_44 {dimension_numbers = #tpu.dot_dimension_numbers<[1], [0], [0], [1], [0, 0, 1, 1], [], []>} : vector<2x64xf32>, vector<64x512xf32>, vector<2x512xf32> -> vector<2x512xf32>
    %113 = arith.addf %84, %112 : vector<2x512xf32>
    %114 = vector.extract_strided_slice %113 {offsets = [0, 0], sizes = [2, 128], strides = [1, 1]} : vector<2x512xf32> to vector<2x128xf32>
    %115 = arith.negf %114 : vector<2x128xf32>
    %116 = math.exp %115 : vector<2x128xf32>
    %cst_45 = arith.constant 1.000000e+00 : f32
    %117 = vector.broadcast %cst_45 : f32 to vector<2x128xf32>
    %118 = arith.addf %117, %116 : vector<2x128xf32>
    %119 = arith.divf %117, %118 : vector<2x128xf32>
    %120 = vector.extract_strided_slice %113 {offsets = [0, 128], sizes = [2, 128], strides = [1, 1]} : vector<2x512xf32> to vector<2x128xf32>
    %121 = arith.negf %120 : vector<2x128xf32>
    %122 = math.exp %121 : vector<2x128xf32>
    %cst_46 = arith.constant 1.000000e+00 : f32
    %123 = vector.broadcast %cst_46 : f32 to vector<2x128xf32>
    %124 = arith.addf %123, %122 : vector<2x128xf32>
    %125 = arith.divf %123, %124 : vector<2x128xf32>
    %126 = vector.extract_strided_slice %113 {offsets = [0, 256], sizes = [2, 128], strides = [1, 1]} : vector<2x512xf32> to vector<2x128xf32>
    %127 = math.tanh %126 : vector<2x128xf32>
    %128 = vector.extract_strided_slice %113 {offsets = [0, 384], sizes = [2, 128], strides = [1, 1]} : vector<2x512xf32> to vector<2x128xf32>
    %129 = arith.negf %128 : vector<2x128xf32>
    %130 = math.exp %129 : vector<2x128xf32>
    %cst_47 = arith.constant 1.000000e+00 : f32
    %131 = vector.broadcast %cst_47 : f32 to vector<2x128xf32>
    %132 = arith.addf %131, %130 : vector<2x128xf32>
    %133 = arith.divf %131, %132 : vector<2x128xf32>
    %134 = arith.mulf %125, %67 : vector<2x128xf32>
    %135 = arith.mulf %119, %127 : vector<2x128xf32>
    %136 = arith.addf %134, %135 : vector<2x128xf32>
    %137 = math.tanh %136 : vector<2x128xf32>
    %138 = arith.mulf %133, %137 : vector<2x128xf32>
    %139 = arith.index_cast %c1_i32 : i32 to index
    %c0_48 = arith.constant 0 : index
    %c0_49 = arith.constant 0 : index
    %140 = vector.load %arg11[%139, %c0_48, %c0_49] : memref<7x2x128xf32, #tpu.memory_space<vmem>>, vector<1x2x128xf32>
    %141 = vector.shape_cast %140 : vector<1x2x128xf32> to vector<2x128xf32>
    %142 = vector.shape_cast %138 : vector<2x128xf32> to vector<1x2x128xf32>
    tpu.vector_store %arg11[%139, %c0_48, %c0_49], %142 {strides = array<i32>} : memref<7x2x128xf32, #tpu.memory_space<vmem>>, vector<1x2x128xf32>,
    %143 = arith.index_cast %c1_i32 : i32 to index
    %c0_50 = arith.constant 0 : index
    %c0_51 = arith.constant 0 : index
    %144 = vector.load %arg12[%143, %c0_50, %c0_51] : memref<7x2x8xf32, #tpu.memory_space<vmem>>, vector<1x2x8xf32>
    %145 = vector.shape_cast %144 : vector<1x2x8xf32> to vector<2x8xf32>
    %146 = vector.shape_cast %107 : vector<2x8xf32> to vector<1x2x8xf32>
    tpu.vector_store %arg12[%143, %c0_50, %c0_51], %146 {strides = array<i32>} : memref<7x2x8xf32, #tpu.memory_space<vmem>>, vector<1x2x8xf32>,
    %c2_i32 = arith.constant 2 : i32
    %147 = arith.index_cast %c2_i32 : i32 to index
    %c0_52 = arith.constant 0 : index
    %c0_53 = arith.constant 0 : index
    %148 = vector.load %arg3[%147, %c0_52, %c0_53] : memref<7x2x512xf32, #tpu.memory_space<vmem>>, vector<1x2x512xf32>
    %149 = vector.shape_cast %148 : vector<1x2x512xf32> to vector<2x512xf32>
    %cst_54 = arith.constant dense<0.000000e+00> : vector<2x512xf32>
    %150 = tpu.matmul %138, %5, %cst_54 {dimension_numbers = #tpu.dot_dimension_numbers<[1], [0], [0], [1], [0, 0, 1, 1], [], []>} : vector<2x128xf32>, vector<128x512xf32>, vector<2x512xf32> -> vector<2x512xf32>
    %151 = arith.addf %149, %150 : vector<2x512xf32>
    %152 = vector.broadcast %6 : vector<1x512xf32> to vector<2x512xf32>
    %153 = arith.addf %151, %152 : vector<2x512xf32>
    %cst_55 = arith.constant dense<0.000000e+00> : vector<2x128xf32>
    %154 = tpu.matmul %138, %3, %cst_55 {dimension_numbers = #tpu.dot_dimension_numbers<[1], [0], [0], [1], [0, 0, 1, 1], [], []>} : vector<2x128xf32>, vector<128x128xf32>, vector<2x128xf32> -> vector<2x128xf32>
    %155 = vector.shape_cast %154 : vector<2x128xf32> to vector<2x1x128xf32>
    %156 = vector.broadcast %155 : vector<2x1x128xf32> to vector<2x8x128xf32>
    %157 = arith.addf %1, %156 : vector<2x8x128xf32>
    %158 = math.tanh %157 : vector<2x8x128xf32>
    %159 = vector.shape_cast %2 : vector<1x128xf32> to vector<1x1x128xf32>
    %160 = vector.broadcast %159 : vector<1x1x128xf32> to vector<2x8x128xf32>
    %161 = arith.mulf %158, %160 : vector<2x8x128xf32>
    %cst_56 = arith.constant dense<0.000000e+00> : vector<2x8xf32>
    %162 = vector.multi_reduction <add>, %161, %cst_56 [2] : vector<2x8x128xf32> to vector<2x8xf32>
    %cst_57 = arith.constant dense<0xFF800000> : vector<2xf32>
    %163 = vector.multi_reduction <maximumf>, %162, %cst_57 [1] : vector<2x8xf32> to vector<2xf32>
    %164 = vector.shape_cast %163 : vector<2xf32> to vector<2x1xf32>
    %165 = vector.broadcast %164 : vector<2x1xf32> to vector<2x8xf32>
    %166 = arith.subf %162, %165 : vector<2x8xf32>
    %167 = math.exp %166 : vector<2x8xf32>
    %cst_58 = arith.constant dense<0.000000e+00> : vector<2xf32>
    %168 = vector.multi_reduction <add>, %167, %cst_58 [1] : vector<2x8xf32> to vector<2xf32>
    %169 = vector.shape_cast %168 : vector<2xf32> to vector<2x1xf32>
    %170 = tpu.reciprocal %169 {approx = true} : vector<2x1xf32> -> vector<2x1xf32>
    %171 = arith.mulf %169, %170 : vector<2x1xf32>
    %cst_59 = arith.constant 2.000000e+00 : f32
    %172 = vector.broadcast %cst_59 : f32 to vector<2x1xf32>
    %173 = arith.subf %172, %171 : vector<2x1xf32>
    %174 = arith.mulf %170, %173 : vector<2x1xf32>
    %175 = vector.broadcast %174 : vector<2x1xf32> to vector<2x8xf32>
    %176 = arith.mulf %167, %175 : vector<2x8xf32>
    %177 = vector.shape_cast %176 : vector<2x8xf32> to vector<2x8x1xf32>
    %178 = vector.broadcast %177 : vector<2x8x1xf32> to vector<2x8x64xf32>
    %179 = arith.mulf %0, %178 : vector<2x8x64xf32>
    %cst_60 = arith.constant dense<0.000000e+00> : vector<2x64xf32>
    %180 = vector.multi_reduction <add>, %179, %cst_60 [1] : vector<2x8x64xf32> to vector<2x64xf32>
    %cst_61 = arith.constant dense<0.000000e+00> : vector<2x512xf32>
    %181 = tpu.matmul %180, %4, %cst_61 {dimension_numbers = #tpu.dot_dimension_numbers<[1], [0], [0], [1], [0, 0, 1, 1], [], []>} : vector<2x64xf32>, vector<64x512xf32>, vector<2x512xf32> -> vector<2x512xf32>
    %182 = arith.addf %153, %181 : vector<2x512xf32>
    %183 = vector.extract_strided_slice %182 {offsets = [0, 0], sizes = [2, 128], strides = [1, 1]} : vector<2x512xf32> to vector<2x128xf32>
    %184 = arith.negf %183 : vector<2x128xf32>
    %185 = math.exp %184 : vector<2x128xf32>
    %cst_62 = arith.constant 1.000000e+00 : f32
    %186 = vector.broadcast %cst_62 : f32 to vector<2x128xf32>
    %187 = arith.addf %186, %185 : vector<2x128xf32>
    %188 = arith.divf %186, %187 : vector<2x128xf32>
    %189 = vector.extract_strided_slice %182 {offsets = [0, 128], sizes = [2, 128], strides = [1, 1]} : vector<2x512xf32> to vector<2x128xf32>
    %190 = arith.negf %189 : vector<2x128xf32>
    %191 = math.exp %190 : vector<2x128xf32>
    %cst_63 = arith.constant 1.000000e+00 : f32
    %192 = vector.broadcast %cst_63 : f32 to vector<2x128xf32>
    %193 = arith.addf %192, %191 : vector<2x128xf32>
    %194 = arith.divf %192, %193 : vector<2x128xf32>
    %195 = vector.extract_strided_slice %182 {offsets = [0, 256], sizes = [2, 128], strides = [1, 1]} : vector<2x512xf32> to vector<2x128xf32>
    %196 = math.tanh %195 : vector<2x128xf32>
    %197 = vector.extract_strided_slice %182 {offsets = [0, 384], sizes = [2, 128], strides = [1, 1]} : vector<2x512xf32> to vector<2x128xf32>
    %198 = arith.negf %197 : vector<2x128xf32>
    %199 = math.exp %198 : vector<2x128xf32>
    %cst_64 = arith.constant 1.000000e+00 : f32
    %200 = vector.broadcast %cst_64 : f32 to vector<2x128xf32>
    %201 = arith.addf %200, %199 : vector<2x128xf32>
    %202 = arith.divf %200, %201 : vector<2x128xf32>
    %203 = arith.mulf %194, %136 : vector<2x128xf32>
    %204 = arith.mulf %188, %196 : vector<2x128xf32>
    %205 = arith.addf %203, %204 : vector<2x128xf32>
    %206 = math.tanh %205 : vector<2x128xf32>
    %207 = arith.mulf %202, %206 : vector<2x128xf32>
    %208 = arith.index_cast %c2_i32 : i32 to index
    %c0_65 = arith.constant 0 : index
    %c0_66 = arith.constant 0 : index
    %209 = vector.load %arg11[%208, %c0_65, %c0_66] : memref<7x2x128xf32, #tpu.memory_space<vmem>>, vector<1x2x128xf32>
    %210 = vector.shape_cast %209 : vector<1x2x128xf32> to vector<2x128xf32>
    %211 = vector.shape_cast %207 : vector<2x128xf32> to vector<1x2x128xf32>
    tpu.vector_store %arg11[%208, %c0_65, %c0_66], %211 {strides = array<i32>} : memref<7x2x128xf32, #tpu.memory_space<vmem>>, vector<1x2x128xf32>,
    %212 = arith.index_cast %c2_i32 : i32 to index
    %c0_67 = arith.constant 0 : index
    %c0_68 = arith.constant 0 : index
    %213 = vector.load %arg12[%212, %c0_67, %c0_68] : memref<7x2x8xf32, #tpu.memory_space<vmem>>, vector<1x2x8xf32>
    %214 = vector.shape_cast %213 : vector<1x2x8xf32> to vector<2x8xf32>
    %215 = vector.shape_cast %176 : vector<2x8xf32> to vector<1x2x8xf32>
    tpu.vector_store %arg12[%212, %c0_67, %c0_68], %215 {strides = array<i32>} : memref<7x2x8xf32, #tpu.memory_space<vmem>>, vector<1x2x8xf32>,
    %c3_i32 = arith.constant 3 : i32
    %216 = arith.index_cast %c3_i32 : i32 to index
    %c0_69 = arith.constant 0 : index
    %c0_70 = arith.constant 0 : index
    %217 = vector.load %arg3[%216, %c0_69, %c0_70] : memref<7x2x512xf32, #tpu.memory_space<vmem>>, vector<1x2x512xf32>
    %218 = vector.shape_cast %217 : vector<1x2x512xf32> to vector<2x512xf32>
    %cst_71 = arith.constant dense<0.000000e+00> : vector<2x512xf32>
    %219 = tpu.matmul %207, %5, %cst_71 {dimension_numbers = #tpu.dot_dimension_numbers<[1], [0], [0], [1], [0, 0, 1, 1], [], []>} : vector<2x128xf32>, vector<128x512xf32>, vector<2x512xf32> -> vector<2x512xf32>
    %220 = arith.addf %218, %219 : vector<2x512xf32>
    %221 = vector.broadcast %6 : vector<1x512xf32> to vector<2x512xf32>
    %222 = arith.addf %220, %221 : vector<2x512xf32>
    %cst_72 = arith.constant dense<0.000000e+00> : vector<2x128xf32>
    %223 = tpu.matmul %207, %3, %cst_72 {dimension_numbers = #tpu.dot_dimension_numbers<[1], [0], [0], [1], [0, 0, 1, 1], [], []>} : vector<2x128xf32>, vector<128x128xf32>, vector<2x128xf32> -> vector<2x128xf32>
    %224 = vector.shape_cast %223 : vector<2x128xf32> to vector<2x1x128xf32>
    %225 = vector.broadcast %224 : vector<2x1x128xf32> to vector<2x8x128xf32>
    %226 = arith.addf %1, %225 : vector<2x8x128xf32>
    %227 = math.tanh %226 : vector<2x8x128xf32>
    %228 = vector.shape_cast %2 : vector<1x128xf32> to vector<1x1x128xf32>
    %229 = vector.broadcast %228 : vector<1x1x128xf32> to vector<2x8x128xf32>
    %230 = arith.mulf %227, %229 : vector<2x8x128xf32>
    %cst_73 = arith.constant dense<0.000000e+00> : vector<2x8xf32>
    %231 = vector.multi_reduction <add>, %230, %cst_73 [2] : vector<2x8x128xf32> to vector<2x8xf32>
    %cst_74 = arith.constant dense<0xFF800000> : vector<2xf32>
    %232 = vector.multi_reduction <maximumf>, %231, %cst_74 [1] : vector<2x8xf32> to vector<2xf32>
    %233 = vector.shape_cast %232 : vector<2xf32> to vector<2x1xf32>
    %234 = vector.broadcast %233 : vector<2x1xf32> to vector<2x8xf32>
    %235 = arith.subf %231, %234 : vector<2x8xf32>
    %236 = math.exp %235 : vector<2x8xf32>
    %cst_75 = arith.constant dense<0.000000e+00> : vector<2xf32>
    %237 = vector.multi_reduction <add>, %236, %cst_75 [1] : vector<2x8xf32> to vector<2xf32>
    %238 = vector.shape_cast %237 : vector<2xf32> to vector<2x1xf32>
    %239 = tpu.reciprocal %238 {approx = true} : vector<2x1xf32> -> vector<2x1xf32>
    %240 = arith.mulf %238, %239 : vector<2x1xf32>
    %cst_76 = arith.constant 2.000000e+00 : f32
    %241 = vector.broadcast %cst_76 : f32 to vector<2x1xf32>
    %242 = arith.subf %241, %240 : vector<2x1xf32>
    %243 = arith.mulf %239, %242 : vector<2x1xf32>
    %244 = vector.broadcast %243 : vector<2x1xf32> to vector<2x8xf32>
    %245 = arith.mulf %236, %244 : vector<2x8xf32>
    %246 = vector.shape_cast %245 : vector<2x8xf32> to vector<2x8x1xf32>
    %247 = vector.broadcast %246 : vector<2x8x1xf32> to vector<2x8x64xf32>
    %248 = arith.mulf %0, %247 : vector<2x8x64xf32>
    %cst_77 = arith.constant dense<0.000000e+00> : vector<2x64xf32>
    %249 = vector.multi_reduction <add>, %248, %cst_77 [1] : vector<2x8x64xf32> to vector<2x64xf32>
    %cst_78 = arith.constant dense<0.000000e+00> : vector<2x512xf32>
    %250 = tpu.matmul %249, %4, %cst_78 {dimension_numbers = #tpu.dot_dimension_numbers<[1], [0], [0], [1], [0, 0, 1, 1], [], []>} : vector<2x64xf32>, vector<64x512xf32>, vector<2x512xf32> -> vector<2x512xf32>
    %251 = arith.addf %222, %250 : vector<2x512xf32>
    %252 = vector.extract_strided_slice %251 {offsets = [0, 0], sizes = [2, 128], strides = [1, 1]} : vector<2x512xf32> to vector<2x128xf32>
    %253 = arith.negf %252 : vector<2x128xf32>
    %254 = math.exp %253 : vector<2x128xf32>
    %cst_79 = arith.constant 1.000000e+00 : f32
    %255 = vector.broadcast %cst_79 : f32 to vector<2x128xf32>
    %256 = arith.addf %255, %254 : vector<2x128xf32>
    %257 = arith.divf %255, %256 : vector<2x128xf32>
    %258 = vector.extract_strided_slice %251 {offsets = [0, 128], sizes = [2, 128], strides = [1, 1]} : vector<2x512xf32> to vector<2x128xf32>
    %259 = arith.negf %258 : vector<2x128xf32>
    %260 = math.exp %259 : vector<2x128xf32>
    %cst_80 = arith.constant 1.000000e+00 : f32
    %261 = vector.broadcast %cst_80 : f32 to vector<2x128xf32>
    %262 = arith.addf %261, %260 : vector<2x128xf32>
    %263 = arith.divf %261, %262 : vector<2x128xf32>
    %264 = vector.extract_strided_slice %251 {offsets = [0, 256], sizes = [2, 128], strides = [1, 1]} : vector<2x512xf32> to vector<2x128xf32>
    %265 = math.tanh %264 : vector<2x128xf32>
    %266 = vector.extract_strided_slice %251 {offsets = [0, 384], sizes = [2, 128], strides = [1, 1]} : vector<2x512xf32> to vector<2x128xf32>
    %267 = arith.negf %266 : vector<2x128xf32>
    %268 = math.exp %267 : vector<2x128xf32>
    %cst_81 = arith.constant 1.000000e+00 : f32
    %269 = vector.broadcast %cst_81 : f32 to vector<2x128xf32>
    %270 = arith.addf %269, %268 : vector<2x128xf32>
    %271 = arith.divf %269, %270 : vector<2x128xf32>
    %272 = arith.mulf %263, %205 : vector<2x128xf32>
    %273 = arith.mulf %257, %265 : vector<2x128xf32>
    %274 = arith.addf %272, %273 : vector<2x128xf32>
    %275 = math.tanh %274 : vector<2x128xf32>
    %276 = arith.mulf %271, %275 : vector<2x128xf32>
    %277 = arith.index_cast %c3_i32 : i32 to index
    %c0_82 = arith.constant 0 : index
    %c0_83 = arith.constant 0 : index
    %278 = vector.load %arg11[%277, %c0_82, %c0_83] : memref<7x2x128xf32, #tpu.memory_space<vmem>>, vector<1x2x128xf32>
    %279 = vector.shape_cast %278 : vector<1x2x128xf32> to vector<2x128xf32>
    %280 = vector.shape_cast %276 : vector<2x128xf32> to vector<1x2x128xf32>
    tpu.vector_store %arg11[%277, %c0_82, %c0_83], %280 {strides = array<i32>} : memref<7x2x128xf32, #tpu.memory_space<vmem>>, vector<1x2x128xf32>,
    %281 = arith.index_cast %c3_i32 : i32 to index
    %c0_84 = arith.constant 0 : index
    %c0_85 = arith.constant 0 : index
    %282 = vector.load %arg12[%281, %c0_84, %c0_85] : memref<7x2x8xf32, #tpu.memory_space<vmem>>, vector<1x2x8xf32>
    %283 = vector.shape_cast %282 : vector<1x2x8xf32> to vector<2x8xf32>
    %284 = vector.shape_cast %245 : vector<2x8xf32> to vector<1x2x8xf32>
    tpu.vector_store %arg12[%281, %c0_84, %c0_85], %284 {strides = array<i32>} : memref<7x2x8xf32, #tpu.memory_space<vmem>>, vector<1x2x8xf32>,
    %c4_i32 = arith.constant 4 : i32
    %285 = arith.index_cast %c4_i32 : i32 to index
    %c0_86 = arith.constant 0 : index
    %c0_87 = arith.constant 0 : index
    %286 = vector.load %arg3[%285, %c0_86, %c0_87] : memref<7x2x512xf32, #tpu.memory_space<vmem>>, vector<1x2x512xf32>
    %287 = vector.shape_cast %286 : vector<1x2x512xf32> to vector<2x512xf32>
    %cst_88 = arith.constant dense<0.000000e+00> : vector<2x512xf32>
    %288 = tpu.matmul %276, %5, %cst_88 {dimension_numbers = #tpu.dot_dimension_numbers<[1], [0], [0], [1], [0, 0, 1, 1], [], []>} : vector<2x128xf32>, vector<128x512xf32>, vector<2x512xf32> -> vector<2x512xf32>
    %289 = arith.addf %287, %288 : vector<2x512xf32>
    %290 = vector.broadcast %6 : vector<1x512xf32> to vector<2x512xf32>
    %291 = arith.addf %289, %290 : vector<2x512xf32>
    %cst_89 = arith.constant dense<0.000000e+00> : vector<2x128xf32>
    %292 = tpu.matmul %276, %3, %cst_89 {dimension_numbers = #tpu.dot_dimension_numbers<[1], [0], [0], [1], [0, 0, 1, 1], [], []>} : vector<2x128xf32>, vector<128x128xf32>, vector<2x128xf32> -> vector<2x128xf32>
    %293 = vector.shape_cast %292 : vector<2x128xf32> to vector<2x1x128xf32>
    %294 = vector.broadcast %293 : vector<2x1x128xf32> to vector<2x8x128xf32>
    %295 = arith.addf %1, %294 : vector<2x8x128xf32>
    %296 = math.tanh %295 : vector<2x8x128xf32>
    %297 = vector.shape_cast %2 : vector<1x128xf32> to vector<1x1x128xf32>
    %298 = vector.broadcast %297 : vector<1x1x128xf32> to vector<2x8x128xf32>
    %299 = arith.mulf %296, %298 : vector<2x8x128xf32>
    %cst_90 = arith.constant dense<0.000000e+00> : vector<2x8xf32>
    %300 = vector.multi_reduction <add>, %299, %cst_90 [2] : vector<2x8x128xf32> to vector<2x8xf32>
    %cst_91 = arith.constant dense<0xFF800000> : vector<2xf32>
    %301 = vector.multi_reduction <maximumf>, %300, %cst_91 [1] : vector<2x8xf32> to vector<2xf32>
    %302 = vector.shape_cast %301 : vector<2xf32> to vector<2x1xf32>
    %303 = vector.broadcast %302 : vector<2x1xf32> to vector<2x8xf32>
    %304 = arith.subf %300, %303 : vector<2x8xf32>
    %305 = math.exp %304 : vector<2x8xf32>
    %cst_92 = arith.constant dense<0.000000e+00> : vector<2xf32>
    %306 = vector.multi_reduction <add>, %305, %cst_92 [1] : vector<2x8xf32> to vector<2xf32>
    %307 = vector.shape_cast %306 : vector<2xf32> to vector<2x1xf32>
    %308 = tpu.reciprocal %307 {approx = true} : vector<2x1xf32> -> vector<2x1xf32>
    %309 = arith.mulf %307, %308 : vector<2x1xf32>
    %cst_93 = arith.constant 2.000000e+00 : f32
    %310 = vector.broadcast %cst_93 : f32 to vector<2x1xf32>
    %311 = arith.subf %310, %309 : vector<2x1xf32>
    %312 = arith.mulf %308, %311 : vector<2x1xf32>
    %313 = vector.broadcast %312 : vector<2x1xf32> to vector<2x8xf32>
    %314 = arith.mulf %305, %313 : vector<2x8xf32>
    %315 = vector.shape_cast %314 : vector<2x8xf32> to vector<2x8x1xf32>
    %316 = vector.broadcast %315 : vector<2x8x1xf32> to vector<2x8x64xf32>
    %317 = arith.mulf %0, %316 : vector<2x8x64xf32>
    %cst_94 = arith.constant dense<0.000000e+00> : vector<2x64xf32>
    %318 = vector.multi_reduction <add>, %317, %cst_94 [1] : vector<2x8x64xf32> to vector<2x64xf32>
    %cst_95 = arith.constant dense<0.000000e+00> : vector<2x512xf32>
    %319 = tpu.matmul %318, %4, %cst_95 {dimension_numbers = #tpu.dot_dimension_numbers<[1], [0], [0], [1], [0, 0, 1, 1], [], []>} : vector<2x64xf32>, vector<64x512xf32>, vector<2x512xf32> -> vector<2x512xf32>
    %320 = arith.addf %291, %319 : vector<2x512xf32>
    %321 = vector.extract_strided_slice %320 {offsets = [0, 0], sizes = [2, 128], strides = [1, 1]} : vector<2x512xf32> to vector<2x128xf32>
    %322 = arith.negf %321 : vector<2x128xf32>
    %323 = math.exp %322 : vector<2x128xf32>
    %cst_96 = arith.constant 1.000000e+00 : f32
    %324 = vector.broadcast %cst_96 : f32 to vector<2x128xf32>
    %325 = arith.addf %324, %323 : vector<2x128xf32>
    %326 = arith.divf %324, %325 : vector<2x128xf32>
    %327 = vector.extract_strided_slice %320 {offsets = [0, 128], sizes = [2, 128], strides = [1, 1]} : vector<2x512xf32> to vector<2x128xf32>
    %328 = arith.negf %327 : vector<2x128xf32>
    %329 = math.exp %328 : vector<2x128xf32>
    %cst_97 = arith.constant 1.000000e+00 : f32
    %330 = vector.broadcast %cst_97 : f32 to vector<2x128xf32>
    %331 = arith.addf %330, %329 : vector<2x128xf32>
    %332 = arith.divf %330, %331 : vector<2x128xf32>
    %333 = vector.extract_strided_slice %320 {offsets = [0, 256], sizes = [2, 128], strides = [1, 1]} : vector<2x512xf32> to vector<2x128xf32>
    %334 = math.tanh %333 : vector<2x128xf32>
    %335 = vector.extract_strided_slice %320 {offsets = [0, 384], sizes = [2, 128], strides = [1, 1]} : vector<2x512xf32> to vector<2x128xf32>
    %336 = arith.negf %335 : vector<2x128xf32>
    %337 = math.exp %336 : vector<2x128xf32>
    %cst_98 = arith.constant 1.000000e+00 : f32
    %338 = vector.broadcast %cst_98 : f32 to vector<2x128xf32>
    %339 = arith.addf %338, %337 : vector<2x128xf32>
    %340 = arith.divf %338, %339 : vector<2x128xf32>
    %341 = arith.mulf %332, %274 : vector<2x128xf32>
    %342 = arith.mulf %326, %334 : vector<2x128xf32>
    %343 = arith.addf %341, %342 : vector<2x128xf32>
    %344 = math.tanh %343 : vector<2x128xf32>
    %345 = arith.mulf %340, %344 : vector<2x128xf32>
    %346 = arith.index_cast %c4_i32 : i32 to index
    %c0_99 = arith.constant 0 : index
    %c0_100 = arith.constant 0 : index
    %347 = vector.load %arg11[%346, %c0_99, %c0_100] : memref<7x2x128xf32, #tpu.memory_space<vmem>>, vector<1x2x128xf32>
    %348 = vector.shape_cast %347 : vector<1x2x128xf32> to vector<2x128xf32>
    %349 = vector.shape_cast %345 : vector<2x128xf32> to vector<1x2x128xf32>
    tpu.vector_store %arg11[%346, %c0_99, %c0_100], %349 {strides = array<i32>} : memref<7x2x128xf32, #tpu.memory_space<vmem>>, vector<1x2x128xf32>,
    %350 = arith.index_cast %c4_i32 : i32 to index
    %c0_101 = arith.constant 0 : index
    %c0_102 = arith.constant 0 : index
    %351 = vector.load %arg12[%350, %c0_101, %c0_102] : memref<7x2x8xf32, #tpu.memory_space<vmem>>, vector<1x2x8xf32>
    %352 = vector.shape_cast %351 : vector<1x2x8xf32> to vector<2x8xf32>
    %353 = vector.shape_cast %314 : vector<2x8xf32> to vector<1x2x8xf32>
    tpu.vector_store %arg12[%350, %c0_101, %c0_102], %353 {strides = array<i32>} : memref<7x2x8xf32, #tpu.memory_space<vmem>>, vector<1x2x8xf32>,
    %c5_i32 = arith.constant 5 : i32
    %354 = arith.index_cast %c5_i32 : i32 to index
    %c0_103 = arith.constant 0 : index
    %c0_104 = arith.constant 0 : index
    %355 = vector.load %arg3[%354, %c0_103, %c0_104] : memref<7x2x512xf32, #tpu.memory_space<vmem>>, vector<1x2x512xf32>
    %356 = vector.shape_cast %355 : vector<1x2x512xf32> to vector<2x512xf32>
    %cst_105 = arith.constant dense<0.000000e+00> : vector<2x512xf32>
    %357 = tpu.matmul %345, %5, %cst_105 {dimension_numbers = #tpu.dot_dimension_numbers<[1], [0], [0], [1], [0, 0, 1, 1], [], []>} : vector<2x128xf32>, vector<128x512xf32>, vector<2x512xf32> -> vector<2x512xf32>
    %358 = arith.addf %356, %357 : vector<2x512xf32>
    %359 = vector.broadcast %6 : vector<1x512xf32> to vector<2x512xf32>
    %360 = arith.addf %358, %359 : vector<2x512xf32>
    %cst_106 = arith.constant dense<0.000000e+00> : vector<2x128xf32>
    %361 = tpu.matmul %345, %3, %cst_106 {dimension_numbers = #tpu.dot_dimension_numbers<[1], [0], [0], [1], [0, 0, 1, 1], [], []>} : vector<2x128xf32>, vector<128x128xf32>, vector<2x128xf32> -> vector<2x128xf32>
    %362 = vector.shape_cast %361 : vector<2x128xf32> to vector<2x1x128xf32>
    %363 = vector.broadcast %362 : vector<2x1x128xf32> to vector<2x8x128xf32>
    %364 = arith.addf %1, %363 : vector<2x8x128xf32>
    %365 = math.tanh %364 : vector<2x8x128xf32>
    %366 = vector.shape_cast %2 : vector<1x128xf32> to vector<1x1x128xf32>
    %367 = vector.broadcast %366 : vector<1x1x128xf32> to vector<2x8x128xf32>
    %368 = arith.mulf %365, %367 : vector<2x8x128xf32>
    %cst_107 = arith.constant dense<0.000000e+00> : vector<2x8xf32>
    %369 = vector.multi_reduction <add>, %368, %cst_107 [2] : vector<2x8x128xf32> to vector<2x8xf32>
    %cst_108 = arith.constant dense<0xFF800000> : vector<2xf32>
    %370 = vector.multi_reduction <maximumf>, %369, %cst_108 [1] : vector<2x8xf32> to vector<2xf32>
    %371 = vector.shape_cast %370 : vector<2xf32> to vector<2x1xf32>
    %372 = vector.broadcast %371 : vector<2x1xf32> to vector<2x8xf32>
    %373 = arith.subf %369, %372 : vector<2x8xf32>
    %374 = math.exp %373 : vector<2x8xf32>
    %cst_109 = arith.constant dense<0.000000e+00> : vector<2xf32>
    %375 = vector.multi_reduction <add>, %374, %cst_109 [1] : vector<2x8xf32> to vector<2xf32>
    %376 = vector.shape_cast %375 : vector<2xf32> to vector<2x1xf32>
    %377 = tpu.reciprocal %376 {approx = true} : vector<2x1xf32> -> vector<2x1xf32>
    %378 = arith.mulf %376, %377 : vector<2x1xf32>
    %cst_110 = arith.constant 2.000000e+00 : f32
    %379 = vector.broadcast %cst_110 : f32 to vector<2x1xf32>
    %380 = arith.subf %379, %378 : vector<2x1xf32>
    %381 = arith.mulf %377, %380 : vector<2x1xf32>
    %382 = vector.broadcast %381 : vector<2x1xf32> to vector<2x8xf32>
    %383 = arith.mulf %374, %382 : vector<2x8xf32>
    %384 = vector.shape_cast %383 : vector<2x8xf32> to vector<2x8x1xf32>
    %385 = vector.broadcast %384 : vector<2x8x1xf32> to vector<2x8x64xf32>
    %386 = arith.mulf %0, %385 : vector<2x8x64xf32>
    %cst_111 = arith.constant dense<0.000000e+00> : vector<2x64xf32>
    %387 = vector.multi_reduction <add>, %386, %cst_111 [1] : vector<2x8x64xf32> to vector<2x64xf32>
    %cst_112 = arith.constant dense<0.000000e+00> : vector<2x512xf32>
    %388 = tpu.matmul %387, %4, %cst_112 {dimension_numbers = #tpu.dot_dimension_numbers<[1], [0], [0], [1], [0, 0, 1, 1], [], []>} : vector<2x64xf32>, vector<64x512xf32>, vector<2x512xf32> -> vector<2x512xf32>
    %389 = arith.addf %360, %388 : vector<2x512xf32>
    %390 = vector.extract_strided_slice %389 {offsets = [0, 0], sizes = [2, 128], strides = [1, 1]} : vector<2x512xf32> to vector<2x128xf32>
    %391 = arith.negf %390 : vector<2x128xf32>
    %392 = math.exp %391 : vector<2x128xf32>
    %cst_113 = arith.constant 1.000000e+00 : f32
    %393 = vector.broadcast %cst_113 : f32 to vector<2x128xf32>
    %394 = arith.addf %393, %392 : vector<2x128xf32>
    %395 = arith.divf %393, %394 : vector<2x128xf32>
    %396 = vector.extract_strided_slice %389 {offsets = [0, 128], sizes = [2, 128], strides = [1, 1]} : vector<2x512xf32> to vector<2x128xf32>
    %397 = arith.negf %396 : vector<2x128xf32>
    %398 = math.exp %397 : vector<2x128xf32>
    %cst_114 = arith.constant 1.000000e+00 : f32
    %399 = vector.broadcast %cst_114 : f32 to vector<2x128xf32>
    %400 = arith.addf %399, %398 : vector<2x128xf32>
    %401 = arith.divf %399, %400 : vector<2x128xf32>
    %402 = vector.extract_strided_slice %389 {offsets = [0, 256], sizes = [2, 128], strides = [1, 1]} : vector<2x512xf32> to vector<2x128xf32>
    %403 = math.tanh %402 : vector<2x128xf32>
    %404 = vector.extract_strided_slice %389 {offsets = [0, 384], sizes = [2, 128], strides = [1, 1]} : vector<2x512xf32> to vector<2x128xf32>
    %405 = arith.negf %404 : vector<2x128xf32>
    %406 = math.exp %405 : vector<2x128xf32>
    %cst_115 = arith.constant 1.000000e+00 : f32
    %407 = vector.broadcast %cst_115 : f32 to vector<2x128xf32>
    %408 = arith.addf %407, %406 : vector<2x128xf32>
    %409 = arith.divf %407, %408 : vector<2x128xf32>
    %410 = arith.mulf %401, %343 : vector<2x128xf32>
    %411 = arith.mulf %395, %403 : vector<2x128xf32>
    %412 = arith.addf %410, %411 : vector<2x128xf32>
    %413 = math.tanh %412 : vector<2x128xf32>
    %414 = arith.mulf %409, %413 : vector<2x128xf32>
    %415 = arith.index_cast %c5_i32 : i32 to index
    %c0_116 = arith.constant 0 : index
    %c0_117 = arith.constant 0 : index
    %416 = vector.load %arg11[%415, %c0_116, %c0_117] : memref<7x2x128xf32, #tpu.memory_space<vmem>>, vector<1x2x128xf32>
    %417 = vector.shape_cast %416 : vector<1x2x128xf32> to vector<2x128xf32>
    %418 = vector.shape_cast %414 : vector<2x128xf32> to vector<1x2x128xf32>
    tpu.vector_store %arg11[%415, %c0_116, %c0_117], %418 {strides = array<i32>} : memref<7x2x128xf32, #tpu.memory_space<vmem>>, vector<1x2x128xf32>,
    %419 = arith.index_cast %c5_i32 : i32 to index
    %c0_118 = arith.constant 0 : index
    %c0_119 = arith.constant 0 : index
    %420 = vector.load %arg12[%419, %c0_118, %c0_119] : memref<7x2x8xf32, #tpu.memory_space<vmem>>, vector<1x2x8xf32>
    %421 = vector.shape_cast %420 : vector<1x2x8xf32> to vector<2x8xf32>
    %422 = vector.shape_cast %383 : vector<2x8xf32> to vector<1x2x8xf32>
    tpu.vector_store %arg12[%419, %c0_118, %c0_119], %422 {strides = array<i32>} : memref<7x2x8xf32, #tpu.memory_space<vmem>>, vector<1x2x8xf32>,
    %c6_i32 = arith.constant 6 : i32
    %423 = arith.index_cast %c6_i32 : i32 to index
    %c0_120 = arith.constant 0 : index
    %c0_121 = arith.constant 0 : index
    %424 = vector.load %arg3[%423, %c0_120, %c0_121] : memref<7x2x512xf32, #tpu.memory_space<vmem>>, vector<1x2x512xf32>
    %425 = vector.shape_cast %424 : vector<1x2x512xf32> to vector<2x512xf32>
    %cst_122 = arith.constant dense<0.000000e+00> : vector<2x512xf32>
    %426 = tpu.matmul %414, %5, %cst_122 {dimension_numbers = #tpu.dot_dimension_numbers<[1], [0], [0], [1], [0, 0, 1, 1], [], []>} : vector<2x128xf32>, vector<128x512xf32>, vector<2x512xf32> -> vector<2x512xf32>
    %427 = arith.addf %425, %426 : vector<2x512xf32>
    %428 = vector.broadcast %6 : vector<1x512xf32> to vector<2x512xf32>
    %429 = arith.addf %427, %428 : vector<2x512xf32>
    %cst_123 = arith.constant dense<0.000000e+00> : vector<2x128xf32>
    %430 = tpu.matmul %414, %3, %cst_123 {dimension_numbers = #tpu.dot_dimension_numbers<[1], [0], [0], [1], [0, 0, 1, 1], [], []>} : vector<2x128xf32>, vector<128x128xf32>, vector<2x128xf32> -> vector<2x128xf32>
    %431 = vector.shape_cast %430 : vector<2x128xf32> to vector<2x1x128xf32>
    %432 = vector.broadcast %431 : vector<2x1x128xf32> to vector<2x8x128xf32>
    %433 = arith.addf %1, %432 : vector<2x8x128xf32>
    %434 = math.tanh %433 : vector<2x8x128xf32>
    %435 = vector.shape_cast %2 : vector<1x128xf32> to vector<1x1x128xf32>
    %436 = vector.broadcast %435 : vector<1x1x128xf32> to vector<2x8x128xf32>
    %437 = arith.mulf %434, %436 : vector<2x8x128xf32>
    %cst_124 = arith.constant dense<0.000000e+00> : vector<2x8xf32>
    %438 = vector.multi_reduction <add>, %437, %cst_124 [2] : vector<2x8x128xf32> to vector<2x8xf32>
    %cst_125 = arith.constant dense<0xFF800000> : vector<2xf32>
    %439 = vector.multi_reduction <maximumf>, %438, %cst_125 [1] : vector<2x8xf32> to vector<2xf32>
    %440 = vector.shape_cast %439 : vector<2xf32> to vector<2x1xf32>
    %441 = vector.broadcast %440 : vector<2x1xf32> to vector<2x8xf32>
    %442 = arith.subf %438, %441 : vector<2x8xf32>
    %443 = math.exp %442 : vector<2x8xf32>
    %cst_126 = arith.constant dense<0.000000e+00> : vector<2xf32>
    %444 = vector.multi_reduction <add>, %443, %cst_126 [1] : vector<2x8xf32> to vector<2xf32>
    %445 = vector.shape_cast %444 : vector<2xf32> to vector<2x1xf32>
    %446 = tpu.reciprocal %445 {approx = true} : vector<2x1xf32> -> vector<2x1xf32>
    %447 = arith.mulf %445, %446 : vector<2x1xf32>
    %cst_127 = arith.constant 2.000000e+00 : f32
    %448 = vector.broadcast %cst_127 : f32 to vector<2x1xf32>
    %449 = arith.subf %448, %447 : vector<2x1xf32>
    %450 = arith.mulf %446, %449 : vector<2x1xf32>
    %451 = vector.broadcast %450 : vector<2x1xf32> to vector<2x8xf32>
    %452 = arith.mulf %443, %451 : vector<2x8xf32>
    %453 = vector.shape_cast %452 : vector<2x8xf32> to vector<2x8x1xf32>
    %454 = vector.broadcast %453 : vector<2x8x1xf32> to vector<2x8x64xf32>
    %455 = arith.mulf %0, %454 : vector<2x8x64xf32>
    %cst_128 = arith.constant dense<0.000000e+00> : vector<2x64xf32>
    %456 = vector.multi_reduction <add>, %455, %cst_128 [1] : vector<2x8x64xf32> to vector<2x64xf32>
    %cst_129 = arith.constant dense<0.000000e+00> : vector<2x512xf32>
    %457 = tpu.matmul %456, %4, %cst_129 {dimension_numbers = #tpu.dot_dimension_numbers<[1], [0], [0], [1], [0, 0, 1, 1], [], []>} : vector<2x64xf32>, vector<64x512xf32>, vector<2x512xf32> -> vector<2x512xf32>
    %458 = arith.addf %429, %457 : vector<2x512xf32>
    %459 = vector.extract_strided_slice %458 {offsets = [0, 0], sizes = [2, 128], strides = [1, 1]} : vector<2x512xf32> to vector<2x128xf32>
    %460 = arith.negf %459 : vector<2x128xf32>
    %461 = math.exp %460 : vector<2x128xf32>
    %cst_130 = arith.constant 1.000000e+00 : f32
    %462 = vector.broadcast %cst_130 : f32 to vector<2x128xf32>
    %463 = arith.addf %462, %461 : vector<2x128xf32>
    %464 = arith.divf %462, %463 : vector<2x128xf32>
    %465 = vector.extract_strided_slice %458 {offsets = [0, 128], sizes = [2, 128], strides = [1, 1]} : vector<2x512xf32> to vector<2x128xf32>
    %466 = arith.negf %465 : vector<2x128xf32>
    %467 = math.exp %466 : vector<2x128xf32>
    %cst_131 = arith.constant 1.000000e+00 : f32
    %468 = vector.broadcast %cst_131 : f32 to vector<2x128xf32>
    %469 = arith.addf %468, %467 : vector<2x128xf32>
    %470 = arith.divf %468, %469 : vector<2x128xf32>
    %471 = vector.extract_strided_slice %458 {offsets = [0, 256], sizes = [2, 128], strides = [1, 1]} : vector<2x512xf32> to vector<2x128xf32>
    %472 = math.tanh %471 : vector<2x128xf32>
    %473 = vector.extract_strided_slice %458 {offsets = [0, 384], sizes = [2, 128], strides = [1, 1]} : vector<2x512xf32> to vector<2x128xf32>
    %474 = arith.negf %473 : vector<2x128xf32>
    %475 = math.exp %474 : vector<2x128xf32>
    %cst_132 = arith.constant 1.000000e+00 : f32
    %476 = vector.broadcast %cst_132 : f32 to vector<2x128xf32>
    %477 = arith.addf %476, %475 : vector<2x128xf32>
    %478 = arith.divf %476, %477 : vector<2x128xf32>
    %479 = arith.mulf %470, %412 : vector<2x128xf32>
    %480 = arith.mulf %464, %472 : vector<2x128xf32>
    %481 = arith.addf %479, %480 : vector<2x128xf32>
    %482 = math.tanh %481 : vector<2x128xf32>
    %483 = arith.mulf %478, %482 : vector<2x128xf32>
    %484 = arith.index_cast %c6_i32 : i32 to index
    %c0_133 = arith.constant 0 : index
    %c0_134 = arith.constant 0 : index
    %485 = vector.load %arg11[%484, %c0_133, %c0_134] : memref<7x2x128xf32, #tpu.memory_space<vmem>>, vector<1x2x128xf32>
    %486 = vector.shape_cast %485 : vector<1x2x128xf32> to vector<2x128xf32>
    %487 = vector.shape_cast %483 : vector<2x128xf32> to vector<1x2x128xf32>
    tpu.vector_store %arg11[%484, %c0_133, %c0_134], %487 {strides = array<i32>} : memref<7x2x128xf32, #tpu.memory_space<vmem>>, vector<1x2x128xf32>,
    %488 = arith.index_cast %c6_i32 : i32 to index
    %c0_135 = arith.constant 0 : index
    %c0_136 = arith.constant 0 : index
    %489 = vector.load %arg12[%488, %c0_135, %c0_136] : memref<7x2x8xf32, #tpu.memory_space<vmem>>, vector<1x2x8xf32>
    %490 = vector.shape_cast %489 : vector<1x2x8xf32> to vector<2x8xf32>
    %491 = vector.shape_cast %452 : vector<2x8xf32> to vector<1x2x8xf32>
    tpu.vector_store %arg12[%488, %c0_135, %c0_136], %491 {strides = array<i32>} : memref<7x2x8xf32, #tpu.memory_space<vmem>>, vector<1x2x8xf32>,
    %c7_i32 = arith.constant 7 : i32
    return
  }
  func.func @transform_0(%arg0: i32) -> (i32, i32, i32) {
    %c0_i32 = arith.constant 0 : i32
    %c0_i32_0 = arith.constant 0 : i32
    %c0_i32_1 = arith.constant 0 : i32
    return %arg0, %c0_i32, %c0_i32_0 : i32, i32, i32
  }
  func.func @transform_1(%arg0: i32) -> (i32, i32, i32) {
    %c0_i32 = arith.constant 0 : i32
    %c0_i32_0 = arith.constant 0 : i32
    %c0_i32_1 = arith.constant 0 : i32
    return %arg0, %c0_i32, %c0_i32_0 : i32, i32, i32
  }
  func.func @transform_2(%arg0: i32) -> (i32, i32, i32) {
    %c0_i32 = arith.constant 0 : i32
    %c0_i32_0 = arith.constant 0 : i32
    %c0_i32_1 = arith.constant 0 : i32
    return %c0_i32, %arg0, %c0_i32_0 : i32, i32, i32
  }
  func.func @transform_3(%arg0: i32) -> (i32, i32) {
    %c0_i32 = arith.constant 0 : i32
    %c0_i32_0 = arith.constant 0 : i32
    return %arg0, %c0_i32 : i32, i32
  }
  func.func @transform_4(%arg0: i32) -> (i32, i32) {
    %c0_i32 = arith.constant 0 : i32
    %c0_i32_0 = arith.constant 0 : i32
    return %arg0, %c0_i32 : i32, i32
  }
  func.func @transform_5(%arg0: i32) -> (i32, i32) {
    %c0_i32 = arith.constant 0 : i32
    %c0_i32_0 = arith.constant 0 : i32
    %c0_i32_1 = arith.constant 0 : i32
    return %c0_i32, %c0_i32_0 : i32, i32
  }
  func.func @transform_6(%arg0: i32) -> (i32, i32) {
    %c0_i32 = arith.constant 0 : i32
    %c0_i32_0 = arith.constant 0 : i32
    %c0_i32_1 = arith.constant 0 : i32
    return %c0_i32, %c0_i32_0 : i32, i32
  }
  func.func @transform_7(%arg0: i32) -> (i32, i32) {
    %c0_i32 = arith.constant 0 : i32
    %c0_i32_0 = arith.constant 0 : i32
    %c0_i32_1 = arith.constant 0 : i32
    return %c0_i32, %c0_i32_0 : i32, i32
  }
  func.func @transform_8(%arg0: i32) -> (i32, i32) {
    %c0_i32 = arith.constant 0 : i32
    %c0_i32_0 = arith.constant 0 : i32
    %c0_i32_1 = arith.constant 0 : i32
    return %c0_i32, %c0_i32_0 : i32, i32
  }
  func.func @transform_9(%arg0: i32) -> (i32, i32) {
    %c0_i32 = arith.constant 0 : i32
    %c0_i32_0 = arith.constant 0 : i32
    %c0_i32_1 = arith.constant 0 : i32
    return %c0_i32, %c0_i32_0 : i32, i32
  }
  func.func @transform_10(%arg0: i32) -> (i32, i32, i32) {
    %c0_i32 = arith.constant 0 : i32
    %c0_i32_0 = arith.constant 0 : i32
    %c0_i32_1 = arith.constant 0 : i32
    return %c0_i32, %arg0, %c0_i32_0 : i32, i32, i32
  }
  func.func @transform_11(%arg0: i32) -> (i32, i32, i32) {
    %c0_i32 = arith.constant 0 : i32
    %c0_i32_0 = arith.constant 0 : i32
    %c0_i32_1 = arith.constant 0 : i32
    return %c0_i32, %arg0, %c0_i32_0 : i32, i32, i32
  }
}

</mosaic_0001>

<bundles_post_ra>
// kernel: tpu_custom_call.1
= control target key start
LH: loop header
LB: loop body
LE: loop exit
PB: predicated region body
PF: predicated region fallthrough
CT: control target
= control target key end

     0   :  { %17 = vsyncpa [#allocation3], 0  ;;  %s7319_s0 = inlined_call_operand.hbm [shape: f32[2,8,64], index: 0, kind: input, shape index: {}]   ;;  %s7320_s1 = inlined_call_operand.hbm [shape: f32[2,8,128], index: 1, kind: input, shape index: {}]   ;;  %s7321_s2 = inlined_call_operand.hbm [shape: f32[7,2,512], index: 2, kind: input, shape index: {}]   ;;  %s7322_s3 = inlined_call_operand.vmem [shape: f32[2,128], index: 3, kind: input, shape index: {}]   ;;  %s7323_s4 = inlined_call_operand.vmem [shape: f32[2,128], index: 4, kind: input, shape index: {}]   ;;  %s7324_s5 = inlined_call_operand.hbm [shape: f32[128,128], index: 5, kind: input, shape index: {}]   ;;  %s7325_s6 = inlined_call_operand.vmem [shape: f32[1,128], index: 6, kind: input, shape index: {}]   ;;  %s7326_s7 = inlined_call_operand.hbm [shape: f32[64,512], index: 7, kind: input, shape index: {}]   ;;  %s7327_s8 = inlined_call_operand.hbm [shape: f32[128,512], index: 8, kind: input, shape index: {}]   ;;  %s7328_s9 = inlined_call_operand.vmem [shape: f32[1,512], index: 9, kind: input, shape index: {}]   ;;  %s7329_s10 = inlined_call_operand.hbm [shape: f32[7,2,128], index: 10, kind: output, shape index: {0}]   ;;  %s7330_s11 = inlined_call_operand.hbm [shape: f32[7,2,8], index: 11, kind: output, shape index: {1}]  }
   0x1   :  { %18 = vsyncpa [#allocation6], 0 }
   0x2   :  { %19 = vsyncpa [#allocation9], 0 }
   0x3   :  { %20 = vsyncpa [#allocation12], 0 }
   0x4   :  { %21 = vsyncpa [#allocation4], 0 }
   0x5   :  { %22 = vsyncpa [#allocation15], 0  ;;  %s6105_s17 = smov [#allocation5]   ;;  %s6106_s19 = smov [#allocation8]  }
   0x6   :  { %s40_s18 = sshll.u32 %s6105_s17, 4  ;;  %s68_s20 = sshll.u32 %s6106_s19, 4  ;;  %s41_s18 = int_to_ptr.vmem [resolvable:$true] %s40_s18  ;;  %s6184_s20 = int_to_ptr.vmem [resolvable:$true] %s68_s20 }
   0x7   :  { %s5917_s23 = scalar_lea.hbm %s7320_s1, 256 }
   0x8   :  { %p5918_p0 = scmp.ne.s32.totalorder %s7320_s1, %s5917_s23  ;;  %p5921_p1 = scmp.lt.u32.totalorder %s5917_s23, %s7320_s1 }
   0xa   :  { %p5923_p2 = pnand %p5921_p1, %p5918_p0 }
   0xc   :  { %5926 = shalt.err (!%p5923_p2)
}
   0xd   :  { %s5927_s28 = scalar_lea.vmem %s41_s18, 256  ;;  %p5932_p4 = scmp.lt.s32.totalorder %s41_s18, %s41_s18 }
   0xe   :  { %p5928_p3 = scmp.ne.s32.totalorder %s41_s18, %s5927_s28  ;;  %p5933_p5 = scmp.lt.s32.totalorder %s5927_s28, %s5927_s28 }
  0x10   :  { %p5934_p6 = por %p5933_p5, %p5932_p4 }
  0x12   :  { %p5935_p7 = pnand %p5934_p6, %p5928_p3 }
  0x14   :  { %5938 = shalt.err (!%p5935_p7)
}
  0x15   :  { %s6107_s29 = smov 128   ;;  %s6108_s30 = smov 8  }
  0x16   :  { %46 = dma.hbm_to_vmem [thread:$0]  %s7320_s1, 256, %s41_s18, [#allocation6], %s6107_s29, %s6107_s29, %s6108_s30  }
  0x17   :  { %s5939_s16 = scalar_lea.hbm %s7324_s5, 2048 }
  0x18   :  { %p5940_p8 = scmp.ne.s32.totalorder %s7324_s5, %s5939_s16  ;;  %p5943_p9 = scmp.lt.u32.totalorder %s5939_s16, %s7324_s5 }
  0x1a   :  { %p5945_p10 = pnand %p5943_p9, %p5940_p8 }
  0x1c   :  { %5948 = shalt.err (!%p5945_p10)
}
  0x1d   :  { %s5949_s23 = scalar_lea.vmem %s6184_s20, 2048  ;;  %p5954_p12 = scmp.lt.s32.totalorder %s6184_s20, %s6184_s20 }
  0x1e   :  { %p5950_p11 = scmp.ne.s32.totalorder %s6184_s20, %s5949_s23  ;;  %p5955_p13 = scmp.lt.s32.totalorder %s5949_s23, %s5949_s23 }
  0x20   :  { %p5956_p0 = por %p5955_p13, %p5954_p12 }
  0x22   :  { %p5957_p1 = pnand %p5956_p0, %p5950_p11 }
  0x24   :  { %5960 = shalt.err (!%p5957_p1)
}
  0x25   :  { %74 = dma.hbm_to_vmem [thread:$0]  %s7324_s5, 2048, %s6184_s20, [#allocation9], %s6107_s29, %s6107_s29, %s6108_s30  }
  0x26   :  { %s6109_s24 = smov [#allocation2]   ;;  %s6110_s26 = smov [#allocation7]  }
  0x27   :  { %s28_s25 = sshll.u32 %s6109_s24, 4  ;;  %s52_s27 = sshll.u32 %s6110_s26, 4  ;;  %s29_s25 = int_to_ptr.vmem [resolvable:$true] %s28_s25  ;;  %s6221_s27 = int_to_ptr.vmem [resolvable:$true] %s52_s27 }
  0x28   :  { %s5961_s13 = scalar_lea.hbm %s7319_s0, 256 }
  0x29   :  { %p5962_p2 = scmp.ne.s32.totalorder %s7319_s0, %s5961_s13  ;;  %p5965_p3 = scmp.lt.u32.totalorder %s5961_s13, %s7319_s0 }
  0x2b   :  { %p5967_p4 = pnand %p5965_p3, %p5962_p2 }
  0x2d   :  { %5970 = shalt.err (!%p5967_p4)
}
  0x2e   :  { %s5971_s5 = scalar_lea.vmem %s29_s25, 256  ;;  %p5976_p6 = scmp.lt.s32.totalorder %s29_s25, %s29_s25 }
  0x2f   :  { %p5972_p5 = scmp.ne.s32.totalorder %s29_s25, %s5971_s5  ;;  %p5977_p7 = scmp.lt.s32.totalorder %s5971_s5, %s5971_s5 }
  0x31   :  { %p5978_p8 = por %p5977_p7, %p5976_p6 }
  0x33   :  { %p5979_p9 = pnand %p5978_p8, %p5972_p5 }
  0x35   :  { %5982 = shalt.err (!%p5979_p9)
}
  0x36   :  { %34 = dma.hbm_to_vmem [thread:$0]  %s7319_s0, 256, %s29_s25, [#allocation3], %s6107_s29, %s6107_s29, %s6108_s30  }
  0x37   :  { %s5983_s23 = scalar_lea.hbm %s7321_s2, 896 }
  0x38   :  { %p5984_p10 = scmp.ne.s32.totalorder %s7321_s2, %s5983_s23  ;;  %p5987_p11 = scmp.lt.u32.totalorder %s5983_s23, %s7321_s2 }
  0x3a   :  { %p5989_p12 = pnand %p5987_p11, %p5984_p10 }
  0x3c   :  { %5992 = shalt.err (!%p5989_p12)
}
  0x3d   :  { %s5993_s28 = scalar_lea.vmem %s6221_s27, 896  ;;  %p5998_p0 = scmp.lt.s32.totalorder %s6221_s27, %s6221_s27 }
  0x3e   :  { %p5994_p13 = scmp.ne.s32.totalorder %s6221_s27, %s5993_s28  ;;  %p5999_p1 = scmp.lt.s32.totalorder %s5993_s28, %s5993_s28 }
  0x40   :  { %p6000_p2 = por %p5999_p1, %p5998_p0 }
  0x42   :  { %p6001_p3 = pnand %p6000_p2, %p5994_p13 }
  0x44   :  { %6004 = shalt.err (!%p6001_p3)
}
  0x45   :  { %58 = dma.hbm_to_vmem [thread:$0]  %s7321_s2, 896, %s6221_s27, [#allocation6], %s6107_s29, %s6107_s29, %s6108_s30  }
  0x46   :  { %s6111_s12 = smov [#allocation10]   ;;  %s6005_s16 = scalar_lea.hbm %s7326_s7, 4096 }
  0x47   :  { %s82_s13 = sshll.u32 %s6111_s12, 4  ;;  %p6006_p4 = scmp.ne.s32.totalorder %s7326_s7, %s6005_s16  ;;  %s83_s13 = int_to_ptr.vmem [resolvable:$true] %s82_s13 }
  0x48   :  { %p6009_p5 = scmp.lt.u32.totalorder %s6005_s16, %s7326_s7 }
  0x4a   :  { %p6011_p6 = pnand %p6009_p5, %p6006_p4 }
  0x4c   :  { %6014 = shalt.err (!%p6011_p6)
}
  0x4d   :  { %s6015_s21 = scalar_lea.vmem %s83_s13, 4096  ;;  %p6020_p8 = scmp.lt.s32.totalorder %s83_s13, %s83_s13 }
  0x4e   :  { %p6016_p7 = scmp.ne.s32.totalorder %s83_s13, %s6015_s21  ;;  %p6021_p9 = scmp.lt.s32.totalorder %s6015_s21, %s6015_s21 }
  0x50   :  { %p6022_p10 = por %p6021_p9, %p6020_p8 }
  0x52   :  { %p6023_p11 = pnand %p6022_p10, %p6016_p7 }
  0x54   :  { %6026 = shalt.err (!%p6023_p11)
}
  0x55   :  { %s6112_s2 = smov 512   ;;  %s6113_s29 = smov 32  }
  0x56   :  { %88 = dma.hbm_to_vmem [thread:$0]  %s7326_s7, 4096, %s83_s13, [#allocation9], %s6112_s2, %s6112_s2, %s6113_s29  }
  0x57   :  { %s6114_s22 = smov [#allocation11]   ;;  %s6027_s24 = scalar_lea.hbm %s7327_s8, 8192 }
  0x58   :  { %s94_s23 = sshll.u32 %s6114_s22, 4  ;;  %p6028_p12 = scmp.ne.s32.totalorder %s7327_s8, %s6027_s24  ;;  %s95_s23 = int_to_ptr.vmem [resolvable:$true] %s94_s23 }
  0x59   :  { %p6031_p13 = scmp.lt.u32.totalorder %s6027_s24, %s7327_s8 }
  0x5b   :  { %p6033_p0 = pnand %p6031_p13, %p6028_p12 }
  0x5d   :  { %6036 = shalt.err (!%p6033_p0)
}
  0x5e   :  { %s6037_s12 = scalar_lea.vmem %s95_s23, 8192  ;;  %p6042_p2 = scmp.lt.s32.totalorder %s95_s23, %s95_s23 }
  0x5f   :  { %p6038_p1 = scmp.ne.s32.totalorder %s95_s23, %s6037_s12  ;;  %p6043_p3 = scmp.lt.s32.totalorder %s6037_s12, %s6037_s12 }
  0x61   :  { %p6044_p4 = por %p6043_p3, %p6042_p2 }
  0x63   :  { %p6045_p5 = pnand %p6044_p4, %p6038_p1 }
  0x65   :  { %6048 = shalt.err (!%p6045_p5)
}
  0x66   :  { %100 = dma.hbm_to_vmem [thread:$0]  %s7327_s8, 8192, %s95_s23, [#allocation12], %s6112_s2, %s6112_s2, %s6113_s29  }
  0x67   :  { %6093 = dma.done.wait [#allocation3], 256  }
  0x68   :  { %6094 = vsyncadd [#allocation3], 4294967040 }
  0x69   :  { %6095 = dma.done.wait [#allocation6], 1152  }
  0x6a   :  { %6096 = vsyncadd [#allocation6], 4294966144 }
  0x6b   :  { %6097 = dma.done.wait [#allocation9], 6144  }
  0x6c   :  { %6098 = vsyncadd [#allocation9], 4294961152 }
  0x6d   :  { %6099 = dma.done.wait [#allocation12], 8192  }
  0x6e   :  { %6100 = vsyncadd [#allocation12], 4294959104  ;;  %v7333_v0 = vmov 0.0   ;;  %v175_v1 = vld [vmem:[#allocation11 + $0x8] sm:$0xff]  ;;  %v177_v3 = vld [vmem:[#allocation11 + $0x18] sm:$0xff]  ;;  %vm6117_vm0 = vmmov 0  }
  0x6f   :  { %306 = vmatprep.mubr.f32.mxu0 %v7333_v0  ;;  %377 = vmatprep.mubr.f32.mxu1 %v7333_v0  ;;  %v179_v2 = vld [vmem:[#allocation11 + $0x28] sm:$0xff]  ;;  %v181_v5 = vld [vmem:[#allocation11 + $0x38] sm:$0xff]  ;;  %v174_v6 = vld [vmem:[#allocation11] sm:$0xff]  ;;  %vm574_vm1 = vcmask 1041409   ;;  %vm577_vm2 = vcmask 58368   ;;  %vm648_vm3 = vcmask 523264  }
  0x70   :  { %v6286_v4 = vpack.c.bf16 %v179_v2, %v175_v1  ;;  %v178_v7 = vld [vmem:[#allocation11 + $0x20] sm:$0xff]  ;;  %v6288_v8 = vpack.c.bf16 %v181_v5, %v177_v3  ;;  %v176_v10 = vld [vmem:[#allocation11 + $0x10] sm:$0xff]  ;;  %v183_v12 = vld [vmem:[#allocation11 + $0x48] sm:$0xff] }
  0x71   :  { %v6290_v9 = vpack.c.bf16 %v178_v7, %v174_v6  ;;  %v180_v11 = vld [vmem:[#allocation11 + $0x30] sm:$0xff]  ;;  %v187_v14 = vld [vmem:[#allocation11 + $0x68] sm:$0xff]  ;;  %v185_v15 = vld [vmem:[#allocation11 + $0x58] sm:$0xff] }
  0x72   :  { %7419 = vst [vmem:[#allocation22_spill] sm:$0xff] %v6286_v4  ;;  %4865 = vmatprep.subr.bf16.mxu0 %v6286_v4  ;;  %v6293_v13 = vpack.c.bf16 %v180_v11, %v176_v10  ;;  %v189_v16 = vld [vmem:[#allocation11 + $0x78] sm:$0xff]  ;;  %4897 = vmatprep.subr.bf16.mxu1 %v6288_v8  ;;  %v6297_v17 = vpack.c.bf16 %v187_v14, %v183_v12  ;;  %v182_v19 = vld [vmem:[#allocation11 + $0x40] sm:$0xff]  ;;  %v184_v21 = vld [vmem:[#allocation11 + $0x50] sm:$0xff] }
  0x73   :  { %7420 = vst [vmem:[#allocation23_spill] sm:$0xff] %v6290_v9  ;;  %4867 = vmatpush1.bf16.msra.mxu0 %v6290_v9  ;;  %v6299_v18 = vpack.c.bf16 %v189_v16, %v185_v15  ;;  %v186_v20 = vld [vmem:[#allocation11 + $0x60] sm:$0xff]  ;;  %v188_v23 = vld [vmem:[#allocation11 + $0x70] sm:$0xff]  ;;  %v191_v24 = vld [vmem:[#allocation11 + $0x88] sm:$0xff] }
  0x74   :  { %7421 = vst [vmem:[#allocation24_spill] sm:$0xff] %v6297_v17  ;;  %4899 = vmatpush1.bf16.msra.mxu1 %v6293_v13  ;;  %v6302_v22 = vpack.c.bf16 %v186_v20, %v182_v19  ;;  %v195_v25 = vld [vmem:[#allocation11 + $0xa8] sm:$0xff]  ;;  %4869 = vmatprep.subr.bf16.mxu0 %v6297_v17  ;;  %v6306_v26 = vpack.c.bf16 %v188_v23, %v184_v21  ;;  %v193_v28 = vld [vmem:[#allocation11 + $0x98] sm:$0xff]  ;;  %v190_v30 = vld [vmem:[#allocation11 + $0x80] sm:$0xff] }
  0x75   :  { %4901 = vmatprep.subr.bf16.mxu1 %v6299_v18  ;;  %v6308_v27 = vpack.c.bf16 %v195_v25, %v191_v24  ;;  %v197_v29 = vld [vmem:[#allocation11 + $0xb8] sm:$0xff]  ;;  %v194_v32 = vld [vmem:[#allocation11 + $0xa0] sm:$0xff]  ;;  %v192_v33 = vld [vmem:[#allocation11 + $0x90] sm:$0xff] }
  0x76   :  { %7422 = vst [vmem:[#allocation25_spill] sm:$0xff] %v6302_v22  ;;  %v6310_v31 = vpack.c.bf16 %v197_v29, %v193_v28  ;;  %v196_v34 = vld [vmem:[#allocation11 + $0xb0] sm:$0xff]  ;;  %v6313_v35 = vpack.c.bf16 %v194_v32, %v190_v30  ;;  %v199_v36 = vld [vmem:[#allocation11 + $0xc8] sm:$0xff]  ;;  %v201_v38 = vld [vmem:[#allocation11 + $0xd8] sm:$0xff] }
  0x77   :  { %7423 = vst [vmem:[#allocation26_spill] sm:$0xff] %v6308_v27  ;;  %4871 = vmatpush1.bf16.msra.mxu0 %v6302_v22  ;;  %v203_v37 = vld [vmem:[#allocation11 + $0xe8] sm:$0xff]  ;;  %v6317_v39 = vpack.c.bf16 %v196_v34, %v192_v33  ;;  %v205_v41 = vld [vmem:[#allocation11 + $0xf8] sm:$0xff]  ;;  %v198_v42 = vld [vmem:[#allocation11 + $0xc0] sm:$0xff] }
  0x78   :  { %7424 = vst [vmem:[#allocation27_spill] sm:$0xff] %v6313_v35  ;;  %4903 = vmatpush1.bf16.msra.mxu1 %v6306_v26  ;;  %4873 = vmatprep.subr.bf16.mxu0 %v6308_v27  ;;  %v6319_v40 = vpack.c.bf16 %v203_v37, %v199_v36  ;;  %v202_v43 = vld [vmem:[#allocation11 + $0xe0] sm:$0xff]  ;;  %v6322_v44 = vpack.c.bf16 %v205_v41, %v201_v38  ;;  %v200_v45 = vld [vmem:[#allocation11 + $0xd0] sm:$0xff]  ;;  %v207_v47 = vld [vmem:[#allocation11 + $0x108] sm:$0xff] }
  0x79   :  { %4905 = vmatprep.subr.bf16.mxu1 %v6310_v31  ;;  %v204_v46 = vld [vmem:[#allocation11 + $0xf0] sm:$0xff]  ;;  %v211_v48 = vld [vmem:[#allocation11 + $0x128] sm:$0xff]  ;;  %v209_v49 = vld [vmem:[#allocation11 + $0x118] sm:$0xff]  ;;  %v6325_v51 = vpack.c.bf16 %v202_v43, %v198_v42 }
  0x7a   :  { %7425 = vst [vmem:[#allocation28_spill] sm:$0xff] %v6319_v40  ;;  %v213_v50 = vld [vmem:[#allocation11 + $0x138] sm:$0xff]  ;;  %v6329_v52 = vpack.c.bf16 %v204_v46, %v200_v45  ;;  %v6331_v53 = vpack.c.bf16 %v211_v48, %v207_v47  ;;  %v206_v54 = vld [vmem:[#allocation11 + $0x100] sm:$0xff]  ;;  %v208_v56 = vld [vmem:[#allocation11 + $0x110] sm:$0xff] }
  0x7b   :  { %4875 = vmatpush1.bf16.msra.mxu0 %v6313_v35  ;;  %7426 = vst [vmem:[#allocation29_spill] sm:$0xff] %v6325_v51  ;;  %v210_v55 = vld [vmem:[#allocation11 + $0x120] sm:$0xff]  ;;  %v6334_v57 = vpack.c.bf16 %v213_v50, %v209_v49  ;;  %v212_v58 = vld [vmem:[#allocation11 + $0x130] sm:$0xff]  ;;  %v215_v59 = vld [vmem:[#allocation11 + $0x148] sm:$0xff] }
  0x7c   :  { %4907 = vmatpush1.bf16.msra.mxu1 %v6317_v39  ;;  %4877 = vmatprep.subr.bf16.mxu0 %v6319_v40  ;;  %7427 = vst [vmem:[#allocation30_spill] sm:$0xff] %v6331_v53  ;;  %v219_v60 = vld [vmem:[#allocation11 + $0x168] sm:$0xff]  ;;  %v217_v61 = vld [vmem:[#allocation11 + $0x158] sm:$0xff]  ;;  %v6337_v63 = vpack.c.bf16 %v210_v55, %v206_v54  ;;  %v6341_v1 = vpack.c.bf16 %v212_v58, %v208_v56  ;;  %v214_v3 = vld [vmem:[#allocation11 + $0x140] sm:$0xff]  ;;  %v7331_v55 = vmov 0.0|0.0  }
  0x7d   :  { %4909 = vmatprep.subr.bf16.mxu1 %v6322_v44  ;;  %v221_v62 = vld [vmem:[#allocation11 + $0x178] sm:$0xff]  ;;  %v6343_v2 = vpack.c.bf16 %v219_v60, %v215_v59  ;;  %v218_v5 = vld [vmem:[#allocation11 + $0x160] sm:$0xff]  ;;  %v216_v6 = vld [vmem:[#allocation11 + $0x150] sm:$0xff] }
  0x7e   :  { %7428 = vst [vmem:[#allocation31_spill] sm:$0xff] %v6337_v63  ;;  %v6346_v7 = vpack.c.bf16 %v221_v62, %v217_v61  ;;  %v220_v10 = vld [vmem:[#allocation11 + $0x170] sm:$0xff]  ;;  %v223_v11 = vld [vmem:[#allocation11 + $0x188] sm:$0xff]  ;;  %v225_v14 = vld [vmem:[#allocation11 + $0x198] sm:$0xff]  ;;  %v6349_v16 = vpack.c.bf16 %v218_v5, %v214_v3 }
  0x7f   :  { %4879 = vmatpush1.bf16.msra.mxu0 %v6325_v51  ;;  %7429 = vst [vmem:[#allocation32_spill] sm:$0xff] %v6343_v2  ;;  %v227_v12 = vld [vmem:[#allocation11 + $0x1a8] sm:$0xff]  ;;  %v229_v15 = vld [vmem:[#allocation11 + $0x1b8] sm:$0xff]  ;;  %v6353_v19 = vpack.c.bf16 %v220_v10, %v216_v6  ;;  %v222_v21 = vld [vmem:[#allocation11 + $0x180] sm:$0xff] }
  0x80   :  { %4911 = vmatpush1.bf16.msra.mxu1 %v6329_v52  ;;  %4881 = vmatprep.subr.bf16.mxu0 %v6331_v53  ;;  %7430 = vst [vmem:[#allocation33_spill] sm:$0xff] %v6349_v16  ;;  %v6355_v20 = vpack.c.bf16 %v227_v12, %v223_v11  ;;  %v226_v23 = vld [vmem:[#allocation11 + $0x1a0] sm:$0xff]  ;;  %v224_v24 = vld [vmem:[#allocation11 + $0x190] sm:$0xff]  ;;  %v6358_v25 = vpack.c.bf16 %v229_v15, %v225_v14  ;;  %v231_v29 = vld [vmem:[#allocation11 + $0x1c8] sm:$0xff] }
  0x81   :  { %4913 = vmatprep.subr.bf16.mxu1 %v6334_v57  ;;  %7431 = vst [vmem:[#allocation34_spill] sm:$0xff] %v6353_v19  ;;  %v228_v28 = vld [vmem:[#allocation11 + $0x1b0] sm:$0xff]  ;;  %v235_v30 = vld [vmem:[#allocation11 + $0x1e8] sm:$0xff]  ;;  %v233_v32 = vld [vmem:[#allocation11 + $0x1d8] sm:$0xff]  ;;  %v6361_v34 = vpack.c.bf16 %v226_v23, %v222_v21 }
  0x82   :  { %7432 = vst [vmem:[#allocation35_spill] sm:$0xff] %v6355_v20  ;;  %7433 = vst [vmem:[#allocation36_spill] sm:$0xff] %v6358_v25  ;;  %v237_v33 = vld [vmem:[#allocation11 + $0x1f8] sm:$0xff]  ;;  %v6365_v36 = vpack.c.bf16 %v228_v28, %v224_v24  ;;  %v6367_v37 = vpack.c.bf16 %v235_v30, %v231_v29  ;;  %v230_v38 = vld [vmem:[#allocation11 + $0x1c0] sm:$0xff] }
  0x83   :  { %4883 = vmatpush1.bf16.msra.mxu0 %v6337_v63  ;;  %7434 = vst [vmem:[#allocation37_spill] sm:$0xff] %v6361_v34  ;;  %v234_v41 = vld [vmem:[#allocation11 + $0x1e0] sm:$0xff]  ;;  %v6370_v42 = vpack.c.bf16 %v237_v33, %v233_v32  ;;  %v232_v43 = vld [vmem:[#allocation11 + $0x1d0] sm:$0xff]  ;;  %v127_v49 = vld [vmem:[#allocation8 + $0x8] sm:$0xff]  ;;  %v393_v33 = vlaneseq }
  0x84   :  { %4915 = vmatpush1.bf16.msra.mxu1 %v6341_v1  ;;  %4885 = vmatprep.subr.bf16.mxu0 %v6343_v2  ;;  %7435 = vst [vmem:[#allocation38_spill] sm:$0xff] %v6365_v36  ;;  %7436 = vst [vmem:[#allocation39_spill] sm:$0xff] %v6367_v37  ;;  %v236_v45 = vld [vmem:[#allocation11 + $0x1f0] sm:$0xff]  ;;  %v6373_v46 = vpack.c.bf16 %v234_v41, %v230_v38  ;;  %v126_v48 = vld [vmem:[#allocation8] sm:$0xff] }
  0x85   :  { %4917 = vmatprep.subr.bf16.mxu1 %v6346_v7  ;;  %7437 = vst [vmem:[#allocation40_spill] sm:$0xff] %v6370_v42  ;;  %v6377_v47 = vpack.c.bf16 %v236_v45, %v232_v43  ;;  %v239_v50 = vld [vmem:[%s7322_s3] sm:$0x3]  ;;  %v6384_v54 = vpack.c.bf16 %v127_v49, %v126_v48  ;;  %v128_v56 = vld [vmem:[#allocation8 + $0x10] sm:$0xff]  ;;  %v129_v58 = vld [vmem:[#allocation8 + $0x18] sm:$0xff]  ;;  %v6438_v38 = vshrl.u32 %v393_v33, 7 }
  0x86   :  { %7438 = vst [vmem:[#allocation41_spill] sm:$0xff] %v6373_v46  ;;  %v6389_v59 = vpack.c.bf16 %v129_v58, %v128_v56  ;;  %v130_v60 = vld [vmem:[#allocation8 + $0x20] sm:$0xff]  ;;  %v131_v61 = vld [vmem:[#allocation8 + $0x28] sm:$0xff]  ;;  %v132_v3 = vld [vmem:[#allocation8 + $0x30] sm:$0xff]  ;;  %v565_v41 = vand.u32 127, %v393_v33 }
  0x87   :  { %4887 = vmatpush1.bf16.msra.mxu0 %v6349_v16  ;;  %7439 = vst [vmem:[#allocation42_spill] sm:$0xff] %v6377_v47  ;;  %v6396_v62 = vpack.c.bf16 %v131_v61, %v130_v60  ;;  %v133_v5 = vld [vmem:[#allocation8 + $0x38] sm:$0xff]  ;;  %v134_v10 = vld [vmem:[#allocation8 + $0x40] sm:$0xff]  ;;  %v135_v11 = vld [vmem:[#allocation8 + $0x48] sm:$0xff]  ;;  %v6118_v45 = vmov 1983009808  }
  0x88   :  { %4919 = vmatpush1.bf16.msra.mxu1 %v6353_v19  ;;  %4889 = vmatprep.subr.bf16.mxu0 %v6355_v20  ;;  %v6400_v6 = vpack.c.bf16 %v133_v5, %v132_v3  ;;  %v6404_v12 = vpack.c.bf16 %v135_v11, %v134_v10  ;;  %v136_v14 = vld [vmem:[#allocation8 + $0x50] sm:$0xff]  ;;  %v137_v15 = vld [vmem:[#allocation8 + $0x58] sm:$0xff]  ;;  %v138_v23 = vld [vmem:[#allocation8 + $0x60] sm:$0xff]  ;;  %v6441_v43 = vsub.s32 %v565_v41, %v6438_v38  ;;  %v391_v48 = vunpack.c.l.s4 %v6118_v45 }
  0x89   :  { %4921 = vmatprep.subr.bf16.mxu1 %v6358_v25  ;;  %v6408_v21 = vpack.c.bf16 %v137_v15, %v136_v14  ;;  %v139_v24 = vld [vmem:[#allocation8 + $0x68] sm:$0xff]  ;;  %v140_v29 = vld [vmem:[#allocation8 + $0x70] sm:$0xff]  ;;  %v141_v30 = vld [vmem:[#allocation8 + $0x78] sm:$0xff]  ;;  %v6119_v15 = vmov 1966171168   ;;  %v6459_v45 = vsub.s32 0, %v6438_v38 }
  0x8a   :  { %v6412_v28 = vpack.c.bf16 %v139_v24, %v138_v23  ;;  %v6416_v32 = vpack.c.bf16 %v141_v30, %v140_v29  ;;  %v392_v49 = vunpack.c.0.s8 %v391_v48  ;;  %v515_v23 = vunpack.c.l.s4 %v6119_v15 }
  0x8b   :  { %4891 = vmatpush1.bf16.msra.mxu0 %v6361_v34  ;;  %7442 = vst [vmem:[#allocation45_spill] sm:$0xff] %v6459_v45 }
  0x8c   :  { %4923 = vmatpush1.bf16.msra.mxu1 %v6365_v36  ;;  %4893 = vmatprep.subr.bf16.mxu0 %v6367_v37  ;;  %7440 = vst [vmem:[#allocation43_spill] sm:$0xff] %v6416_v32  ;;  %v6444_v56 = vsub.s32 %v392_v49, %v6438_v38  ;;  %v516_v24 = vunpack.c.0.s8 %v515_v23  ;;  %v6474_v23 = vld [vmem:[%s7325_s6] ss:$0 sm:$0xff] }
  0x8d   :  { %4925 = vmatprep.subr.bf16.mxu1 %v6370_v42  ;;  %7445 = vst [vmem:[#allocation48_spill] sm:$0xff] %v6474_v23 }
  0x8e   :  { %v6455_v29 = vsub.s32 %v516_v24, %v6438_v38 }
  0x8f   :  { %4895 = vmatpush1.bf16.msra.mxu0 %v6373_v46 }
  0x90   :  { %4927 = vmatpush1.bf16.msra.mxu1 %v6377_v47  ;;  %4928 = vmatprep.subr.bf16.mxu0 %v7331_v55  ;;  %7441 = vst [vmem:[#allocation44_spill] sm:$0xff] %v6455_v29 }
  0x92   :  { %307 = vmatmul.mubr.f32.vlgmr.msra.gmra.mrb[0].mxu0 %v239_v50 }
  0x93   :  { %378 = vmatmul.mubr.f32.vlgmr.msra.gmra.mrb[0].mxu1 %v239_v50  ;;  %4930 = vmatpush3.bf16.msra.mxu0 %v6384_v54 }
  0x94   :  { %4931 = vmatprep.subr.bf16.mxu0 %v7331_v55  ;;  %4651 = vmatprep.mubr.msk.f32.mxu0 %vm6117_vm0, %v7333_v0 }
  0x95   :  { %732 = vmatprep.mubr.f32.mxu1 %v7333_v0 }
  0x97   :  { %4933 = vmatpush3.bf16.msra.mxu0 %v6389_v59 }
  0x98   :  { %4934 = vmatprep.subr.bf16.mxu0 %v7331_v55 }
  0x9b   :  { %4936 = vmatpush3.bf16.msra.mxu0 %v6396_v62 }
  0x9c   :  { %4937 = vmatprep.subr.bf16.mxu0 %v7331_v55 }
  0x9f   :  { %4939 = vmatpush3.bf16.msra.mxu0 %v6400_v6 }
  0xa0   :  { %4940 = vmatprep.subr.bf16.mxu0 %v7331_v55 }
  0xa3   :  { %4942 = vmatpush3.bf16.msra.mxu0 %v6404_v12 }
  0xa4   :  { %4943 = vmatprep.subr.bf16.mxu0 %v7331_v55 }
  0xa7   :  { %4945 = vmatpush3.bf16.msra.mxu0 %v6408_v21 }
  0xa8   :  { %4946 = vmatprep.subr.bf16.mxu0 %v7331_v55 }
  0xab   :  { %4948 = vmatpush3.bf16.msra.mxu0 %v6412_v28 }
  0xac   :  { %4949 = vmatprep.subr.bf16.mxu0 %v7331_v55 }
  0xaf   :  { %4951 = vmatpush3.bf16.msra.mxu0 %v6416_v32 }
  0xb0   :  { %4985 = vmatprep.subr.bf16.mxu0 %v6286_v4 }
  0xb2   :  { %4652 = vmatmul.mubr.f32.vlgmr.msra.gmra.mrb[2].mxu0 %v239_v50 }
  0xb3   :  { %4987 = vmatpush1.bf16.msra.mxu0 %v6290_v9  ;;  %942 = vmatprep.mubr.f32.mxu0 %v7333_v0 }
  0xb4   :  { %4989 = vmatprep.subr.bf16.mxu0 %v6297_v17 }
  0xb7   :  { %4991 = vmatpush1.bf16.msra.mxu0 %v6302_v22  ;;  %v157_v22 = vld [vmem:[#allocation10 + $0x78] sm:$0xff] }
  0xb8   :  { %4993 = vmatprep.subr.bf16.mxu0 %v6308_v27 }
  0xbb   :  { %4995 = vmatpush1.bf16.msra.mxu0 %v6313_v35  ;;  %v144_v35 = vld [vmem:[#allocation10 + $0x10] sm:$0xff] }
  0xbc   :  { %4997 = vmatprep.subr.bf16.mxu0 %v6319_v40 }
  0xbf   :  { %4999 = vmatpush1.bf16.msra.mxu0 %v6325_v51 }
  0xc0   :  { %5001 = vmatprep.subr.bf16.mxu0 %v6331_v53 }
  0xc3   :  { %5003 = vmatpush1.bf16.msra.mxu0 %v6337_v63 }
  0xc4   :  { %5005 = vmatprep.subr.bf16.mxu0 %v6343_v2 }
  0xc7   :  { %5007 = vmatpush1.bf16.msra.mxu0 %v6349_v16 }
  0xc8   :  { %5009 = vmatprep.subr.bf16.mxu0 %v6355_v20 }
  0xcb   :  { %5011 = vmatpush1.bf16.msra.mxu0 %v6361_v34 }
  0xcc   :  { %5013 = vmatprep.subr.bf16.mxu0 %v6367_v37 }
  0xcf   :  { %5015 = vmatpush1.bf16.msra.mxu0 %v6373_v46 }
  0xd0   :  { %5048 = vmatprep.subr.bf16.mxu0 %v7331_v55 }
 0x165   :  { %v308_v50 = vpop.f32.mrb[0].mxu0 }
 0x166   :  { %v379_v58 = vpop.f32.mrb[0].mxu1  ;;  %v310_v60 = vpop.f32.mrb[1].mxu0 }
 0x167   :  { %v388_v61 = vcombine.low %v308_v50, %v310_v60  ;;  %v381_v3 = vpop.f32.mrb[1].mxu1  ;;  %v6462_v50 = vld [vmem:[#allocation5] sm:$0xff] }
 0x168   :  { %v389_v5 = vcombine.low %v379_v58, %v381_v3  ;;  %7443 = vst [vmem:[#allocation46_spill] sm:$0xff] %v6462_v50 }
 0x169   :  { %v6447_v10 = vrot.slane %v388_v61, %v6444_v56  ;;  %v6466_v61 = vld [vmem:[#allocation5 + $0x8] sm:$0xff] }
 0x16a   :  { %v6450_v11 = vrot.slane %v389_v5, %v6444_v56  ;;  %7444 = vst [vmem:[#allocation47_spill] sm:$0xff] %v6466_v61 }
 0x185   :  { %v509_v30 = vpop.f32.mrb[2].mxu0 }
 0x186   :  { %v520_v33 = vrot.slane %v509_v30, %v6455_v29  ;;  %v4653_v41 = vpop.f32.mrb[3].mxu0 }
 0x188   :  { %v521_v48 = vcombine.high %v520_v33, %v520_v33  ;;  %v528_v49 = vrot.slane %v520_v33, %v6455_v29 }
 0x18a   :  { %v535_v58 = vrot.slane %v521_v48, %v6455_v29  ;;  %v539_v60 = vrot.slane %v528_v49, %v6459_v45  ;;  %v147_v29 = vld [vmem:[#allocation10 + $0x28] sm:$0xff] }
 0x18c   :  { %v543_v3 = vrot.slane %v535_v58, %v6459_v45  ;;  %v546_v5 = vadd.f32 %v539_v60, %v6462_v50 }
 0x18e   :  { %v547_v15 = vadd.f32 %v543_v3, %v6466_v61  ;;  %5725 = vtanh.f32 %v546_v5 }
 0x190   :  { %5727 = vtanh.f32 %v547_v15  ;;  %v6120_v15 = vmov 0  }
 0x191   :  { %5724 = vset.pattern.permute.xlu0 %v6120_v15  ;;  %5723 = vset.pattern.permute.xlu1 %v6120_v15 }
 0x198   :  { %v5726_v24 = vpop.eup %5725 }
 0x199   :  { %v556_v30 = vmul.f32 %v5726_v24, %v6474_v23  ;;  %v6483_v24 = vsub.s32 1, %v6438_v38 }
 0x19a   :  { %v5728_v33 = vpop.eup %5727 }
 0x19b   :  { %558 = vadd.xlane.f32.xlu0 %v556_v30  ;;  %v557_v41 = vmul.f32 %v5728_v33, %v6474_v23  ;;  %7446 = vst [vmem:[#allocation49_spill] sm:$0xff] %v6483_v24 }
 0x19f   :  { %560 = vadd.xlane.f32.xlu0 %v557_v41 }
 0x228   :  { %v559_v48 = vpop.xlane.xlu0 %558 }
 0x229   :  { %v569_v58 = vrot.slane %v559_v48, %v6441_v43 }
 0x22c   :  { %v561_v49 = vpop.xlane.xlu0 %560 }
 0x22d   :  { %v573_v60 = vrot.slane %v561_v49, %v6441_v43 }
 0x22f   :  { %v575_v3 = vsel %vm574_vm1, %v573_v60, %v569_v58 }
 0x230   :  { %v578_v5 = vsel %vm577_vm2, %v575_v3, -inf }
 0x231   :  { %579 = vmax.xlane.f32.xlu1 %v578_v5 }
 0x2be   :  { %v580_v30 = vpop.xlane.xlu1 %579 }
 0x2bf   :  { %v585_v33 = vrot.slane %v580_v30, %v6459_v45  ;;  %v589_v41 = vrot.slane %v580_v30, %v6483_v24 }
 0x2c1   :  { %v592_v55 = vsub.f32 %v559_v48, %v585_v33  ;;  %v593_v14 = vsub.f32 %v561_v49, %v589_v41 }
 0x2c3   :  { %v594_v0 = vmul.f32 1.442695, %v592_v55  ;;  %v596_v23 = vmul.f32 1.442695, %v593_v14 }
 0x2c5   :  { %5729 = vpow2.f32 %v594_v0 }
 0x2c6   :  { %5731 = vpow2.f32 %v596_v23 }
 0x2cf   :  { %v5730_v58 = vpop.eup %5729 }
 0x2d0   :  { %v5732_v60 = vpop.eup %5731  ;;  %601 = vperm.xlu1 %5723, %v5730_v58  }
 0x2d1   :  { %604 = vperm.xlu0 %5724, %v5732_v60  }
 0x34f   :  { %v602_v3 = vpop.permute.xlu1 %601 }
 0x350   :  { %v605_v5 = vpop.permute.xlu0 %604  ;;  %v609_v15 = vrot.slane %v602_v3, %v6441_v43  ;;  %v143_v3 = vld [vmem:[#allocation10 + $0x8] sm:$0xff] }
 0x351   :  { %v613_v61 = vrot.slane %v605_v5, %v6441_v43  ;;  %v6493_v5 = vpack.c.bf16 %v147_v29, %v143_v3  ;;  %v159_v29 = vld [vmem:[#allocation10 + $0x88] sm:$0xff] }
 0x353   :  { %v614_v50 = vsel %vm574_vm1, %v613_v61, %v609_v15  ;;  %7447 = vst [vmem:[#allocation50_spill] sm:$0xff] %v6493_v5  ;;  %v142_v61 = vld [vmem:[#allocation10] sm:$0xff]  ;;  %4953 = vmatprep.subr.bf16.mxu1 %v6493_v5 }
 0x354   :  { %v616_v30 = vsel %vm577_vm2, %v614_v50, 0.0  ;;  %v146_v15 = vld [vmem:[#allocation10 + $0x20] sm:$0xff] }
 0x355   :  { %617 = vadd.xlane.f32.xlu1 %v616_v30  ;;  %v6495_v30 = vpack.c.bf16 %v146_v15, %v142_v61  ;;  %v167_v61 = vld [vmem:[#allocation10 + $0xc8] sm:$0xff] }
 0x356   :  { %v171_v15 = vld [vmem:[#allocation10 + $0xe8] sm:$0xff] }
 0x357   :  { %4955 = vmatpush1.bf16.msra.mxu1 %v6495_v30 }
 0x3e2   :  { %v618_v48 = vpop.xlane.xlu1 %617 }
 0x3e3   :  { %5733 = vrcp.f32 %v618_v48 }
 0x3ed   :  { %v5734_v55 = vpop.eup %5733 }
 0x3ee   :  { %v620_v0 = vmul.f32 %v5734_v55, %v618_v48  ;;  %v151_v48 = vld [vmem:[#allocation10 + $0x48] sm:$0xff] }
 0x3f0   :  { %v621_v14 = vsub.f32 2.0, %v620_v0  ;;  %v150_v0 = vld [vmem:[#allocation10 + $0x40] sm:$0xff] }
 0x3f2   :  { %v622_v23 = vmul.f32 %v5734_v55, %v621_v14  ;;  %v155_v55 = vld [vmem:[#allocation10 + $0x68] sm:$0xff]  ;;  %v154_v14 = vld [vmem:[#allocation10 + $0x60] sm:$0xff] }
 0x3f4   :  { %v627_v49 = vrot.slane %v622_v23, %v6459_v45  ;;  %v631_v41 = vrot.slane %v622_v23, %v6483_v24  ;;  %v6501_v23 = vpack.c.bf16 %v154_v14, %v150_v0  ;;  %v145_v14 = vld [vmem:[#allocation10 + $0x18] sm:$0xff] }
 0x3f6   :  { %v634_v33 = vmul.f32 %v5730_v58, %v627_v49  ;;  %v635_v50 = vmul.f32 %v5732_v60, %v631_v41  ;;  %v6499_v58 = vpack.c.bf16 %v155_v55, %v151_v48  ;;  %v163_v60 = vld [vmem:[#allocation10 + $0xa8] sm:$0xff]  ;;  %v162_v41 = vld [vmem:[#allocation10 + $0xa0] sm:$0xff] }
 0x3f7   :  { %v6505_v49 = vpack.c.bf16 %v163_v60, %v159_v29  ;;  %v166_v48 = vld [vmem:[#allocation10 + $0xc0] sm:$0xff]  ;;  %v149_v29 = vld [vmem:[#allocation10 + $0x38] sm:$0xff] }
 0x3f8   :  { %638 = vperm.xlu0 %5724, %v634_v33   ;;  %4957 = vmatprep.subr.bf16.mxu1 %v6499_v58  ;;  %v158_v33 = vld [vmem:[#allocation10 + $0x80] sm:$0xff]  ;;  %v6517_v60 = vpack.c.bf16 %v149_v29, %v145_v14 }
 0x3f9   :  { %4959 = vmatpush1.bf16.msra.mxu1 %v6501_v23  ;;  %v6507_v3 = vpack.c.bf16 %v162_v41, %v158_v33  ;;  %v170_v55 = vld [vmem:[#allocation10 + $0xe0] sm:$0xff]  ;;  %v6520_v33 = vld [vmem:[#allocation2] sm:$0xff] }
 0x3fa   :  { %4961 = vmatprep.subr.bf16.mxu1 %v6505_v49  ;;  %v6513_v0 = vpack.c.bf16 %v170_v55, %v166_v48  ;;  %7448 = vst [vmem:[#allocation51_spill] sm:$0xff] %v6520_v33 }
 0x3fc   :  { %643 = vperm.xlu0 %5724, %v635_v50   ;;  %v6511_v50 = vpack.c.bf16 %v171_v15, %v167_v61  ;;  %v6523_v15 = vld [vmem:[#allocation2 + $0x8] sm:$0xff] }
 0x3fd   :  { %4963 = vmatpush1.bf16.msra.mxu1 %v6507_v3  ;;  %7449 = vst [vmem:[#allocation52_spill] sm:$0xff] %v6523_v15 }
 0x3fe   :  { %4965 = vmatprep.subr.bf16.mxu1 %v6511_v50 }
 0x401   :  { %4967 = vmatpush1.bf16.msra.mxu1 %v6513_v0 }
 0x402   :  { %4969 = vmatprep.subr.bf16.mxu1 %v6517_v60 }
 0x477   :  { %v639_v41 = vpop.permute.xlu0 %638 }
 0x478   :  { %v646_v61 = vmul.f32 %v639_v41, %v6520_v33  ;;  %v868_v37 = vrot.slane %v639_v41, %v6441_v43  ;;  %v148_v41 = vld [vmem:[#allocation10 + $0x30] sm:$0xff] }
 0x47a   :  { %v649_v48 = vsel %vm648_vm3, %v646_v61, 0.0 }
 0x47b   :  { %v650_v55 = vrot.slane %v649_v48, 4  ;;  %v644_v46 = vpop.permute.xlu0 %643 }
 0x47c   :  { %v647_v34 = vmul.f32 %v644_v46, %v6523_v15  ;;  %v872_v14 = vrot.slane %v644_v46, %v6441_v43  ;;  %v153_v15 = vld [vmem:[#allocation10 + $0x58] sm:$0xff] }
 0x47d   :  { %v651_v29 = vadd.f32 %v650_v55, %v649_v48  ;;  %v6532_v55 = vpack.c.bf16 %v148_v41, %v144_v35  ;;  %v164_v35 = vld [vmem:[#allocation10 + $0xb0] sm:$0xff] }
 0x47e   :  { %v656_v20 = vsel %vm648_vm3, %v647_v34, 0.0  ;;  %v873_v16 = vsel %vm574_vm1, %v872_v14, %v868_v37  ;;  %v6534_v34 = vpack.c.bf16 %v157_v22, %v153_v15  ;;  %v152_v37 = vld [vmem:[#allocation10 + $0x50] sm:$0xff] }
 0x47f   :  { %v652_v2 = vrot.slane %v651_v29, 2  ;;  %v657_v63 = vrot.slane %v656_v20, 4  ;;  %875 = vst.msk [vmem:[#allocation14] sm:$0x3] %vm577_vm2, %v873_v16  ;;  %v156_v14 = vld [vmem:[#allocation10 + $0x70] sm:$0xff] }
 0x480   :  { %v160_v22 = vld [vmem:[#allocation10 + $0x90] sm:$0xff] }
 0x481   :  { %v653_v33 = vadd.f32 %v652_v2, %v651_v29  ;;  %v658_v53 = vadd.f32 %v657_v63, %v656_v20  ;;  %v161_v2 = vld [vmem:[#allocation10 + $0x98] sm:$0xff]  ;;  %v7450_v20 = vmov 0.0   ;;  %v168_v29 = vld [vmem:[#allocation10 + $0xd0] sm:$0xff] }
 0x482   :  { %v165_v63 = vld [vmem:[#allocation10 + $0xb8] sm:$0xff] }
 0x483   :  { %v659_v61 = vrot.slane %v658_v53, 2  ;;  %v654_v51 = vrot.slane %v653_v33, 1 }
 0x485   :  { %v660_v40 = vadd.f32 %v659_v61, %v658_v53  ;;  %v655_v46 = vadd.f32 %v654_v51, %v653_v33  ;;  %v6539_v53 = vpack.c.bf16 %v156_v14, %v152_v37  ;;  %v173_v51 = vld [vmem:[#allocation10 + $0xf8] sm:$0xff]  ;;  %v6546_v33 = vpack.c.bf16 %v164_v35, %v160_v22  ;;  %v172_v61 = vld [vmem:[#allocation10 + $0xf0] sm:$0xff] }
 0x486   :  { %v6552_v41 = vpack.c.bf16 %v172_v61, %v168_v29  ;;  %v418_v14 = vsub.s32 2, %v6438_v38 }
 0x487   :  { %v661_v27 = vrot.slane %v660_v40, 1 }
 0x489   :  { %v662_v48 = vadd.f32 %v661_v27, %v660_v40  ;;  %v6543_v27 = vpack.c.bf16 %v165_v63, %v161_v2  ;;  %v169_v40 = vld [vmem:[#allocation10 + $0xd8] sm:$0xff]  ;;  %v238_v2 = vld [vmem:[%s7328_s9] sm:$0xf] }
 0x48a   :  { %v6549_v15 = vpack.c.bf16 %v173_v51, %v169_v40  ;;  %v411_v63 = vrot.slane %v238_v2, %v6459_v45  ;;  %v415_v22 = vrot.slane %v238_v2, %v6483_v24  ;;  %v419_v35 = vrot.slane %v238_v2, %v418_v14 }
 0x48b   :  { %v665_v16 = vsel %vm574_vm1, %v662_v48, %v655_v46 }
 0x48c   :  { %4465 = vmatmul.mubr.msk.f32.vlgmr.msra.gmra.mrb[2].mxu1 %vm648_vm3, %v665_v16  ;;  %v424_v51 = vcombine.low %v411_v63, %v415_v22 }
 0x48d   :  { %4971 = vmatpush1.bf16.msra.mxu1 %v6532_v55  ;;  %803 = vmatprep.mubr.f32.mxu1 %v7450_v20 }
 0x48e   :  { %4973 = vmatprep.subr.bf16.mxu1 %v6534_v34  ;;  %v432_v61 = vrot.slane %v424_v51, %v6444_v56 }
 0x491   :  { %4975 = vmatpush1.bf16.msra.mxu1 %v6539_v53 }
 0x492   :  { %4977 = vmatprep.subr.bf16.mxu1 %v6543_v27 }
 0x495   :  { %4979 = vmatpush1.bf16.msra.mxu1 %v6546_v33 }
 0x496   :  { %4981 = vmatprep.subr.bf16.mxu1 %v6549_v15 }
 0x499   :  { %4983 = vmatpush1.bf16.msra.mxu1 %v6552_v41 }
 0x49a   :  { %5017 = vmatprep.subr.bf16.mxu1 %v6288_v8 }
 0x49c   :  { %4466 = vmatmul.mubr.msk.f32.vlgmr.msra.gmra.mrb[4].mxu1 %vm648_vm3, %v665_v16  ;;  %v422_v16 = vsub.s32 3, %v6438_v38  ;;  %v7451_v38 = vcombine.low %v6447_v10, %v6450_v11 }
 0x49d   :  { %5019 = vmatpush1.bf16.msra.mxu1 %v6293_v13  ;;  %1013 = vmatprep.mubr.f32.mxu1 %v7450_v20 }
 0x49e   :  { %5021 = vmatprep.subr.bf16.mxu1 %v6299_v18  ;;  %v423_v40 = vrot.slane %v238_v2, %v422_v16 }
 0x4a0   :  { %v425_v29 = vcombine.low %v419_v35, %v423_v40 }
 0x4a1   :  { %5023 = vmatpush1.bf16.msra.mxu1 %v6306_v26 }
 0x4a2   :  { %5025 = vmatprep.subr.bf16.mxu1 %v6310_v31 }
 0x4a5   :  { %5027 = vmatpush1.bf16.msra.mxu1 %v6317_v39 }
 0x4a6   :  { %5029 = vmatprep.subr.bf16.mxu1 %v6322_v44 }
 0x4a9   :  { %5031 = vmatpush1.bf16.msra.mxu1 %v6329_v52 }
 0x4aa   :  { %5033 = vmatprep.subr.bf16.mxu1 %v6334_v57 }
 0x4ad   :  { %5035 = vmatpush1.bf16.msra.mxu1 %v6341_v1 }
 0x4ae   :  { %5037 = vmatprep.subr.bf16.mxu1 %v6346_v7 }
 0x4b1   :  { %5039 = vmatpush1.bf16.msra.mxu1 %v6353_v19 }
 0x4b2   :  { %5041 = vmatprep.subr.bf16.mxu1 %v6358_v25 }
 0x4b5   :  { %5043 = vmatpush1.bf16.msra.mxu1 %v6365_v36 }
 0x4b6   :  { %5045 = vmatprep.subr.bf16.mxu1 %v6370_v42 }
 0x4b9   :  { %5047 = vmatpush1.bf16.msra.mxu1 %v6377_v47 }
 0x4ba   :  { %5073 = vmatprep.subr.bf16.mxu1 %v6493_v5 }
 0x55f   :  { %v734_v46 = vpop.f32.mrb[2].mxu1 }
 0x560   :  { %v736_v48 = vpop.f32.mrb[3].mxu1 }
 0x561   :  { %v814_v37 = vcombine.low %v734_v46, %v736_v48  ;;  %v439_v46 = vrot.slane %v425_v29, %v6444_v56  ;;  %v241_v48 = vld [vmem:[#allocation7] sm:$0xff] }
 0x562   :  { %v406_v42 = vadd.f32 %v7451_v38, %v241_v48 }
 0x563   :  { %v6587_v36 = vcombine.low %v432_v61, %v439_v46  ;;  %v822_v19 = vrot.slane %v814_v37, %v6444_v56 }
 0x565   :  { %v442_v16 = vadd.f32 %v6587_v36, %v406_v42 }
 0x56f   :  { %v805_v5 = vpop.f32.mrb[4].mxu1 }
 0x570   :  { %v807_v47 = vpop.f32.mrb[5].mxu1 }
 0x571   :  { %v815_v25 = vcombine.low %v805_v5, %v807_v47 }
 0x573   :  { %v829_v14 = vrot.slane %v815_v25, %v6444_v56 }
 0x575   :  { %v830_v2 = vcombine.low %v822_v19, %v829_v14  ;;  %v240_v19 = vld [vmem:[%s7323_s4] sm:$0x3] }
 0x577   :  { %v832_v63 = vadd.f32 %v830_v2, %v442_v16 }
 0x579   :  { %v4467_v22 = vmul.f32 -1.442695, %v832_v63  ;;  %v840_v35 = vrot.slane %v832_v63, 2  ;;  %v851_v51 = vrot.slane %v832_v63, 6  ;;  %v848_v11 = vrot.slane %v832_v63, 4 }
 0x57b   :  { %5735 = vpow2.f32 %v4467_v22  ;;  %v4468_v40 = vmul.f32 -1.442695, %v840_v35  ;;  %v4469_v29 = vmul.f32 -1.442695, %v851_v51  ;;  %v7452_v35 = vmov 0.0|0.0   ;;  %v7454_v51 = vld [vmem:[#allocation26_spill] sm:$0xff] }
 0x57d   :  { %5737 = vpow2.f32 %v4468_v40  ;;  %v7453_v40 = vld [vmem:[#allocation25_spill] sm:$0xff] }
 0x57e   :  { %5739 = vpow2.f32 %v4469_v29  ;;  %v7455_v29 = vld [vmem:[#allocation27_spill] sm:$0xff] }
 0x585   :  { %v5736_v10 = vpop.eup %5735 }
 0x586   :  { %v836_v61 = vadd.f32 1.0, %v5736_v10  ;;  %v7456_v10 = vld [vmem:[#allocation28_spill] sm:$0xff] }
 0x587   :  { %v5738_v46 = vpop.eup %5737 }
 0x588   :  { %5741 = vrcp.f32 %v836_v61  ;;  %v845_v47 = vadd.f32 1.0, %v5738_v46  ;;  %v5740_v25 = vpop.eup %5739  ;;  %v7458_v61 = vld [vmem:[#allocation30_spill] sm:$0xff]  ;;  %v7459_v46 = vld [vmem:[#allocation31_spill] sm:$0xff] }
 0x589   :  { %5743 = vtanh.f32 %v848_v11  ;;  %v856_v48 = vadd.f32 1.0, %v5740_v25  ;;  %v7457_v11 = vld [vmem:[#allocation29_spill] sm:$0xff] }
 0x58a   :  { %5745 = vrcp.f32 %v845_v47  ;;  %v7460_v47 = vld [vmem:[#allocation32_spill] sm:$0xff]  ;;  %v7461_v25 = vld [vmem:[#allocation33_spill] sm:$0xff] }
 0x58b   :  { %5747 = vrcp.f32 %v856_v48 }
 0x592   :  { %v5742_v42 = vpop.eup %5741 }
 0x593   :  { %v5744_v5 = vpop.eup %5743 }
 0x594   :  { %v5746_v37 = vpop.eup %5745  ;;  %v860_v14 = vmul.f32 %v5744_v5, %v5742_v42  ;;  %v7462_v42 = vld [vmem:[#allocation35_spill] sm:$0xff] }
 0x595   :  { %v859_v38 = vmul.f32 %v5746_v37, %v240_v19  ;;  %v5748_v2 = vpop.eup %5747  ;;  %v7463_v19 = vld [vmem:[#allocation37_spill] sm:$0xff]  ;;  %v7464_v5 = vld [vmem:[#allocation39_spill] sm:$0xff] }
 0x596   :  { %v7465_v37 = vld [vmem:[#allocation41_spill] sm:$0xff] }
 0x597   :  { %v6595_v16 = vadd.f32 %v860_v14, %v859_v38 }
 0x599   :  { %5749 = vtanh.f32 %v6595_v16 }
 0x5a3   :  { %v5750_v63 = vpop.eup %5749 }
 0x5a4   :  { %v863_v22 = vmul.f32 %v5750_v63, %v5748_v2 }
 0x5a6   :  { %864 = vst [vmem:[#allocation13] sm:$0x3] %v863_v22  ;;  %943 = vmatmul.mubr.f32.vlgmr.msra.gmra.mrb[4].mxu0 %v863_v22  ;;  %1014 = vmatmul.mubr.f32.vlgmr.msra.gmra.mrb[6].mxu1 %v863_v22 }
 0x5a7   :  { %5050 = vmatpush3.bf16.msra.mxu0 %v6384_v54  ;;  %4686 = vmatprep.mubr.msk.f32.mxu0 %vm6117_vm0, %v7450_v20 }
 0x5a8   :  { %5051 = vmatprep.subr.bf16.mxu0 %v7452_v35  ;;  %5075 = vmatpush1.bf16.msra.mxu1 %v6495_v30 }
 0x5a9   :  { %5077 = vmatprep.subr.bf16.mxu1 %v6499_v58  ;;  %1322 = vmatprep.mubr.f32.mxu1 %v7450_v20 }
 0x5ab   :  { %5053 = vmatpush3.bf16.msra.mxu0 %v6389_v59 }
 0x5ac   :  { %5054 = vmatprep.subr.bf16.mxu0 %v7452_v35  ;;  %5079 = vmatpush1.bf16.msra.mxu1 %v6501_v23 }
 0x5ad   :  { %5081 = vmatprep.subr.bf16.mxu1 %v6505_v49 }
 0x5af   :  { %5056 = vmatpush3.bf16.msra.mxu0 %v6396_v62 }
 0x5b0   :  { %5057 = vmatprep.subr.bf16.mxu0 %v7452_v35  ;;  %5083 = vmatpush1.bf16.msra.mxu1 %v6507_v3 }
 0x5b1   :  { %5085 = vmatprep.subr.bf16.mxu1 %v6511_v50 }
 0x5b3   :  { %5059 = vmatpush3.bf16.msra.mxu0 %v6400_v6 }
 0x5b4   :  { %5060 = vmatprep.subr.bf16.mxu0 %v7452_v35  ;;  %5087 = vmatpush1.bf16.msra.mxu1 %v6513_v0 }
 0x5b5   :  { %5089 = vmatprep.subr.bf16.mxu1 %v6517_v60 }
 0x5b7   :  { %5062 = vmatpush3.bf16.msra.mxu0 %v6404_v12 }
 0x5b8   :  { %5063 = vmatprep.subr.bf16.mxu0 %v7452_v35 }
 0x5bb   :  { %5065 = vmatpush3.bf16.msra.mxu0 %v6408_v21 }
 0x5bc   :  { %5066 = vmatprep.subr.bf16.mxu0 %v7452_v35 }
 0x5bf   :  { %5068 = vmatpush3.bf16.msra.mxu0 %v6412_v28 }
 0x5c0   :  { %5069 = vmatprep.subr.bf16.mxu0 %v7452_v35 }
 0x5c3   :  { %5071 = vmatpush3.bf16.msra.mxu0 %v6416_v32 }
 0x5c4   :  { %5105 = vmatprep.subr.bf16.mxu0 %v6286_v4 }
 0x5c6   :  { %4687 = vmatmul.mubr.f32.vlgmr.msra.gmra.mrb[6].mxu0 %v863_v22 }
 0x5c7   :  { %5107 = vmatpush1.bf16.msra.mxu0 %v6290_v9  ;;  %1534 = vmatprep.mubr.f32.mxu0 %v7450_v20 }
 0x5c8   :  { %5109 = vmatprep.subr.bf16.mxu0 %v6297_v17 }
 0x5cb   :  { %5111 = vmatpush1.bf16.msra.mxu0 %v7453_v40  ;;  %v7470_v40 = vld [vmem:[#allocation51_spill] sm:$0xff] }
 0x5cc   :  { %5113 = vmatprep.subr.bf16.mxu0 %v7454_v51 }
 0x5cf   :  { %5115 = vmatpush1.bf16.msra.mxu0 %v7455_v29  ;;  %v7469_v29 = vld [vmem:[#allocation48_spill] sm:$0xff] }
 0x5d0   :  { %5117 = vmatprep.subr.bf16.mxu0 %v7456_v10 }
 0x5d3   :  { %5119 = vmatpush1.bf16.msra.mxu0 %v7457_v11 }
 0x5d4   :  { %5121 = vmatprep.subr.bf16.mxu0 %v7458_v61 }
 0x5d7   :  { %5123 = vmatpush1.bf16.msra.mxu0 %v7459_v46 }
 0x5d8   :  { %5125 = vmatprep.subr.bf16.mxu0 %v7460_v47 }
 0x5db   :  { %5127 = vmatpush1.bf16.msra.mxu0 %v7461_v25 }
 0x5dc   :  { %5129 = vmatprep.subr.bf16.mxu0 %v7462_v42  ;;  %v7466_v42 = vld [vmem:[#allocation44_spill] sm:$0xff] }
 0x5df   :  { %5131 = vmatpush1.bf16.msra.mxu0 %v7463_v19 }
 0x5e0   :  { %5133 = vmatprep.subr.bf16.mxu0 %v7464_v5 }
 0x5e3   :  { %5135 = vmatpush1.bf16.msra.mxu0 %v7465_v37 }
 0x5e4   :  { %5168 = vmatprep.subr.bf16.mxu0 %v7452_v35 }
 0x679   :  { %v944_v48 = vpop.f32.mrb[4].mxu0  ;;  %v1015_v38 = vpop.f32.mrb[6].mxu1 }
 0x67a   :  { %v946_v14 = vpop.f32.mrb[5].mxu0  ;;  %v1017_v2 = vpop.f32.mrb[7].mxu1 }
 0x67b   :  { %v1024_v63 = vcombine.low %v944_v48, %v946_v14  ;;  %v1025_v22 = vcombine.low %v1015_v38, %v1017_v2  ;;  %v7467_v14 = vld [vmem:[#allocation46_spill] sm:$0xff] }
 0x67d   :  { %v6643_v47 = vrot.slane %v1024_v63, %v6444_v56  ;;  %v6646_v25 = vrot.slane %v1025_v22, %v6444_v56  ;;  %v7468_v63 = vld [vmem:[#allocation47_spill] sm:$0xff] }
 0x699   :  { %v1110_v5 = vpop.f32.mrb[6].mxu0 }
 0x69a   :  { %v1121_v37 = vrot.slane %v1110_v5, %v7466_v42  ;;  %v4688_v46 = vpop.f32.mrb[7].mxu0 }
 0x69c   :  { %v1122_v61 = vcombine.high %v1121_v37, %v1121_v37  ;;  %v1129_v11 = vrot.slane %v1121_v37, %v7466_v42 }
 0x69e   :  { %v1136_v10 = vrot.slane %v1122_v61, %v7466_v42  ;;  %v1140_v48 = vrot.slane %v1129_v11, %v6459_v45 }
 0x6a0   :  { %v1144_v38 = vrot.slane %v1136_v10, %v6459_v45  ;;  %v1147_v2 = vadd.f32 %v1140_v48, %v7467_v14 }
 0x6a2   :  { %v1148_v22 = vadd.f32 %v1144_v38, %v7468_v63  ;;  %5751 = vtanh.f32 %v1147_v2 }
 0x6a4   :  { %5753 = vtanh.f32 %v1148_v22 }
 0x6ac   :  { %v5752_v19 = vpop.eup %5751 }
 0x6ad   :  { %v1151_v51 = vmul.f32 %v5752_v19, %v7469_v29 }
 0x6ae   :  { %v5754_v5 = vpop.eup %5753 }
 0x6af   :  { %1153 = vadd.xlane.f32.xlu1 %v1151_v51  ;;  %v1152_v46 = vmul.f32 %v5754_v5, %v7469_v29 }
 0x6b1   :  { %1155 = vadd.xlane.f32.xlu0 %v1152_v46 }
 0x73c   :  { %v1154_v37 = vpop.xlane.xlu1 %1153 }
 0x73d   :  { %v1162_v11 = vrot.slane %v1154_v37, %v6441_v43 }
 0x73e   :  { %v1156_v61 = vpop.xlane.xlu0 %1155 }
 0x73f   :  { %v1166_v10 = vrot.slane %v1156_v61, %v6441_v43 }
 0x741   :  { %v1167_v48 = vsel %vm574_vm1, %v1166_v10, %v1162_v11 }
 0x742   :  { %v1169_v38 = vsel %vm577_vm2, %v1167_v48, -inf }
 0x743   :  { %1170 = vmax.xlane.f32.xlu1 %v1169_v38 }
 0x7d0   :  { %v1171_v2 = vpop.xlane.xlu1 %1170 }
 0x7d1   :  { %v1176_v22 = vrot.slane %v1171_v2, %v6459_v45  ;;  %v1180_v19 = vrot.slane %v1171_v2, %v6483_v24 }
 0x7d3   :  { %v1183_v51 = vsub.f32 %v1154_v37, %v1176_v22  ;;  %v1184_v63 = vsub.f32 %v1156_v61, %v1180_v19 }
 0x7d5   :  { %v1185_v5 = vmul.f32 1.442695, %v1183_v51  ;;  %v1187_v46 = vmul.f32 1.442695, %v1184_v63 }
 0x7d7   :  { %5755 = vpow2.f32 %v1185_v5 }
 0x7d8   :  { %5757 = vpow2.f32 %v1187_v46 }
 0x7e1   :  { %v5756_v29 = vpop.eup %5755 }
 0x7e2   :  { %1192 = vperm.xlu1 %5723, %v5756_v29   ;;  %v5758_v14 = vpop.eup %5757 }
 0x7e6   :  { %1195 = vperm.xlu1 %5723, %v5758_v14  }
 0x861   :  { %v1193_v42 = vpop.permute.xlu1 %1192 }
 0x862   :  { %v1200_v10 = vrot.slane %v1193_v42, %v6441_v43 }
 0x865   :  { %v1196_v11 = vpop.permute.xlu1 %1195 }
 0x866   :  { %v1204_v48 = vrot.slane %v1196_v11, %v6441_v43 }
 0x868   :  { %v1205_v38 = vsel %vm574_vm1, %v1204_v48, %v1200_v10 }
 0x869   :  { %v1207_v2 = vsel %vm577_vm2, %v1205_v38, 0.0 }
 0x86a   :  { %1208 = vadd.xlane.f32.xlu1 %v1207_v2 }
 0x8f7   :  { %v1209_v37 = vpop.xlane.xlu1 %1208 }
 0x8f8   :  { %5759 = vrcp.f32 %v1209_v37 }
 0x902   :  { %v5760_v61 = vpop.eup %5759 }
 0x903   :  { %v1211_v63 = vmul.f32 %v5760_v61, %v1209_v37  ;;  %v7471_v37 = vld [vmem:[#allocation52_spill] sm:$0xff] }
 0x905   :  { %v1212_v22 = vsub.f32 2.0, %v1211_v63 }
 0x907   :  { %v1213_v19 = vmul.f32 %v5760_v61, %v1212_v22 }
 0x909   :  { %v1218_v51 = vrot.slane %v1213_v19, %v6459_v45  ;;  %v1222_v46 = vrot.slane %v1213_v19, %v6483_v24 }
 0x90b   :  { %v1225_v5 = vmul.f32 %v5756_v29, %v1218_v51  ;;  %v1226_v42 = vmul.f32 %v5758_v14, %v1222_v46 }
 0x90d   :  { %1229 = vperm.xlu0 %5724, %v1225_v5  }
 0x911   :  { %1234 = vperm.xlu0 %5724, %v1226_v42  }
 0x98c   :  { %v1230_v11 = vpop.permute.xlu0 %1229 }
 0x98d   :  { %v1237_v10 = vmul.f32 %v1230_v11, %v7470_v40  ;;  %v1459_v17 = vrot.slane %v1230_v11, %v6441_v43 }
 0x98f   :  { %v1239_v48 = vsel %vm648_vm3, %v1237_v10, 0.0 }
 0x990   :  { %v1240_v38 = vrot.slane %v1239_v48, 4  ;;  %v1235_v2 = vpop.permute.xlu0 %1234 }
 0x991   :  { %v1238_v63 = vmul.f32 %v1235_v2, %v7471_v37  ;;  %v1463_v61 = vrot.slane %v1235_v2, %v6441_v43 }
 0x992   :  { %v1241_v22 = vadd.f32 %v1240_v38, %v1239_v48  ;;  %v7476_v48 = vld [vmem:[#allocation42_spill] sm:$0xff] }
 0x993   :  { %v1246_v29 = vsel %vm648_vm3, %v1238_v63, 0.0  ;;  %v1464_v19 = vsel %vm574_vm1, %v1463_v61, %v1459_v17  ;;  %v7472_v17 = vld [vmem:[#allocation34_spill] sm:$0xff]  ;;  %v877_v61 = vld [vmem:[#allocation7 + $0x8] sm:$0xff] }
 0x994   :  { %v1242_v14 = vrot.slane %v1241_v22, 2  ;;  %v1247_v51 = vrot.slane %v1246_v29, 4  ;;  %1467 = vst.msk [vmem:[#allocation14 + $0x2] sm:$0x3] %vm577_vm2, %v1464_v19  ;;  %v7477_v38 = vld [vmem:[#allocation50_spill] sm:$0xff]  ;;  %v7478_v19 = vcombine.low %v6643_v47, %v6646_v25 }
 0x996   :  { %v1243_v5 = vadd.f32 %v1242_v14, %v1241_v22  ;;  %v1248_v46 = vadd.f32 %v1247_v51, %v1246_v29  ;;  %v1042_v14 = vadd.f32 %v7478_v19, %v877_v61 }
 0x998   :  { %v1249_v42 = vrot.slane %v1248_v46, 2  ;;  %v1244_v10 = vrot.slane %v1243_v5, 1 }
 0x99a   :  { %v1250_v40 = vadd.f32 %v1249_v42, %v1248_v46  ;;  %v1245_v11 = vadd.f32 %v1244_v10, %v1243_v5  ;;  %v1043_v42 = vadd.f32 %v1042_v14, %v6587_v36 }
 0x99c   :  { %v1251_v24 = vrot.slane %v1250_v40, 1 }
 0x99e   :  { %v1252_v45 = vadd.f32 %v1251_v24, %v1250_v40  ;;  %v7474_v24 = vld [vmem:[#allocation38_spill] sm:$0xff]  ;;  %v7475_v40 = vld [vmem:[#allocation40_spill] sm:$0xff] }
 0x9a0   :  { %v1255_v37 = vsel %vm574_vm1, %v1252_v45, %v1245_v11  ;;  %v7473_v45 = vld [vmem:[#allocation36_spill] sm:$0xff] }
 0x9a1   :  { %4470 = vmatmul.mubr.msk.f32.vlgmr.msra.gmra.mrb[8].mxu1 %vm648_vm3, %v1255_v37 }
 0x9a2   :  { %5091 = vmatpush1.bf16.msra.mxu1 %v6532_v55  ;;  %1393 = vmatprep.mubr.f32.mxu1 %v7450_v20 }
 0x9a3   :  { %5093 = vmatprep.subr.bf16.mxu1 %v6534_v34 }
 0x9a6   :  { %5095 = vmatpush1.bf16.msra.mxu1 %v6539_v53 }
 0x9a7   :  { %5097 = vmatprep.subr.bf16.mxu1 %v6543_v27 }
 0x9aa   :  { %5099 = vmatpush1.bf16.msra.mxu1 %v6546_v33 }
 0x9ab   :  { %5101 = vmatprep.subr.bf16.mxu1 %v6549_v15 }
 0x9ae   :  { %5103 = vmatpush1.bf16.msra.mxu1 %v6552_v41 }
 0x9af   :  { %5137 = vmatprep.subr.bf16.mxu1 %v6288_v8 }
 0x9b1   :  { %4471 = vmatmul.mubr.msk.f32.vlgmr.msra.gmra.mrb[10].mxu1 %vm648_vm3, %v1255_v37 }
 0x9b2   :  { %5139 = vmatpush1.bf16.msra.mxu1 %v6293_v13  ;;  %1605 = vmatprep.mubr.f32.mxu1 %v7450_v20 }
 0x9b3   :  { %5141 = vmatprep.subr.bf16.mxu1 %v6299_v18 }
 0x9b6   :  { %5143 = vmatpush1.bf16.msra.mxu1 %v6306_v26 }
 0x9b7   :  { %5145 = vmatprep.subr.bf16.mxu1 %v6310_v31 }
 0x9ba   :  { %5147 = vmatpush1.bf16.msra.mxu1 %v6317_v39 }
 0x9bb   :  { %5149 = vmatprep.subr.bf16.mxu1 %v6322_v44 }
 0x9be   :  { %5151 = vmatpush1.bf16.msra.mxu1 %v6329_v52 }
 0x9bf   :  { %5153 = vmatprep.subr.bf16.mxu1 %v6334_v57 }
 0x9c2   :  { %5155 = vmatpush1.bf16.msra.mxu1 %v6341_v1 }
 0x9c3   :  { %5157 = vmatprep.subr.bf16.mxu1 %v6346_v7 }
 0x9c6   :  { %5159 = vmatpush1.bf16.msra.mxu1 %v7472_v17 }
 0x9c7   :  { %5161 = vmatprep.subr.bf16.mxu1 %v7473_v45 }
 0x9ca   :  { %5163 = vmatpush1.bf16.msra.mxu1 %v7474_v24 }
 0x9cb   :  { %5165 = vmatprep.subr.bf16.mxu1 %v7475_v40 }
 0x9ce   :  { %5167 = vmatpush1.bf16.msra.mxu1 %v7476_v48 }
 0x9cf   :  { %5193 = vmatprep.subr.bf16.mxu1 %v7477_v38 }
 0xa74   :  { %v1324_v2 = vpop.f32.mrb[8].mxu1 }
 0xa75   :  { %v1326_v37 = vpop.f32.mrb[9].mxu1 }
 0xa76   :  { %v1404_v63 = vcombine.low %v1324_v2, %v1326_v37 }
 0xa78   :  { %v1412_v5 = vrot.slane %v1404_v63, %v6444_v56 }
 0xa84   :  { %v1395_v22 = vpop.f32.mrb[10].mxu1 }
 0xa85   :  { %v1397_v29 = vpop.f32.mrb[11].mxu1 }
 0xa86   :  { %v1405_v51 = vcombine.low %v1395_v22, %v1397_v29 }
 0xa88   :  { %v1419_v46 = vrot.slane %v1405_v51, %v6444_v56 }
 0xa8a   :  { %v1420_v10 = vcombine.low %v1412_v5, %v1419_v46  ;;  %v7481_v46 = vld [vmem:[#allocation26_spill] sm:$0xff] }
 0xa8c   :  { %v1422_v11 = vadd.f32 %v1420_v10, %v1043_v42  ;;  %v7482_v42 = vld [vmem:[#allocation27_spill] sm:$0xff]  ;;  %v7483_v10 = vld [vmem:[#allocation28_spill] sm:$0xff] }
 0xa8e   :  { %v4472_v38 = vmul.f32 -1.442695, %v1422_v11  ;;  %v1430_v48 = vrot.slane %v1422_v11, 2  ;;  %v1441_v37 = vrot.slane %v1422_v11, 6  ;;  %v1438_v45 = vrot.slane %v1422_v11, 4  ;;  %v7484_v11 = vld [vmem:[#allocation29_spill] sm:$0xff] }
 0xa90   :  { %5761 = vpow2.f32 %v4472_v38  ;;  %v4473_v2 = vmul.f32 -1.442695, %v1430_v48  ;;  %v4474_v40 = vmul.f32 -1.442695, %v1441_v37  ;;  %v7486_v37 = vld [vmem:[#allocation31_spill] sm:$0xff] }
 0xa92   :  { %5763 = vpow2.f32 %v4473_v2  ;;  %v7485_v2 = vld [vmem:[#allocation30_spill] sm:$0xff] }
 0xa93   :  { %5765 = vpow2.f32 %v4474_v40 }
 0xa9a   :  { %v5762_v24 = vpop.eup %5761 }
 0xa9b   :  { %v1426_v47 = vadd.f32 1.0, %v5762_v24 }
 0xa9c   :  { %v5764_v25 = vpop.eup %5763 }
 0xa9d   :  { %5767 = vrcp.f32 %v1426_v47  ;;  %v1435_v63 = vadd.f32 1.0, %v5764_v25  ;;  %v5766_v61 = vpop.eup %5765  ;;  %v7487_v47 = vld [vmem:[#allocation32_spill] sm:$0xff]  ;;  %v7488_v25 = vld [vmem:[#allocation33_spill] sm:$0xff] }
 0xa9e   :  { %5769 = vtanh.f32 %v1438_v45  ;;  %v1446_v14 = vadd.f32 1.0, %v5766_v61  ;;  %v7480_v45 = vld [vmem:[#allocation25_spill] sm:$0xff] }
 0xa9f   :  { %5771 = vrcp.f32 %v1435_v63  ;;  %v7489_v63 = vld [vmem:[#allocation35_spill] sm:$0xff]  ;;  %v7490_v61 = vld [vmem:[#allocation37_spill] sm:$0xff] }
 0xaa0   :  { %5773 = vrcp.f32 %v1446_v14 }
 0xaa7   :  { %v5768_v22 = vpop.eup %5767 }
 0xaa8   :  { %v5770_v29 = vpop.eup %5769 }
 0xaa9   :  { %v5772_v19 = vpop.eup %5771  ;;  %v1450_v48 = vmul.f32 %v5770_v29, %v5768_v22  ;;  %v7491_v22 = vld [vmem:[#allocation39_spill] sm:$0xff]  ;;  %v7492_v29 = vld [vmem:[#allocation41_spill] sm:$0xff] }
 0xaaa   :  { %v1449_v38 = vmul.f32 %v5772_v19, %v6595_v16  ;;  %v5774_v24 = vpop.eup %5773  ;;  %v7479_v16 = vld [vmem:[#allocation24_spill] sm:$0xff] }
 0xaac   :  { %v6715_v51 = vadd.f32 %v1450_v48, %v1449_v38 }
 0xaae   :  { %5775 = vtanh.f32 %v6715_v51 }
 0xab8   :  { %v5776_v5 = vpop.eup %5775 }
 0xab9   :  { %v1453_v40 = vmul.f32 %v5776_v5, %v5774_v24 }
 0xabb   :  { %1455 = vst [vmem:[#allocation13 + $0x2] sm:$0x3] %v1453_v40  ;;  %1535 = vmatmul.mubr.f32.vlgmr.msra.gmra.mrb[8].mxu0 %v1453_v40  ;;  %1606 = vmatmul.mubr.f32.vlgmr.msra.gmra.mrb[12].mxu1 %v1453_v40 }
 0xabc   :  { %5170 = vmatpush3.bf16.msra.mxu0 %v6384_v54  ;;  %4721 = vmatprep.mubr.msk.f32.mxu0 %vm6117_vm0, %v7450_v20 }
 0xabd   :  { %5171 = vmatprep.subr.bf16.mxu0 %v7452_v35  ;;  %5195 = vmatpush1.bf16.msra.mxu1 %v6495_v30 }
 0xabe   :  { %5197 = vmatprep.subr.bf16.mxu1 %v6499_v58  ;;  %1914 = vmatprep.mubr.f32.mxu1 %v7450_v20 }
 0xac0   :  { %5173 = vmatpush3.bf16.msra.mxu0 %v6389_v59 }
 0xac1   :  { %5174 = vmatprep.subr.bf16.mxu0 %v7452_v35  ;;  %5199 = vmatpush1.bf16.msra.mxu1 %v6501_v23 }
 0xac2   :  { %5201 = vmatprep.subr.bf16.mxu1 %v6505_v49 }
 0xac4   :  { %5176 = vmatpush3.bf16.msra.mxu0 %v6396_v62 }
 0xac5   :  { %5177 = vmatprep.subr.bf16.mxu0 %v7452_v35  ;;  %5203 = vmatpush1.bf16.msra.mxu1 %v6507_v3 }
 0xac6   :  { %5205 = vmatprep.subr.bf16.mxu1 %v6511_v50 }
 0xac8   :  { %5179 = vmatpush3.bf16.msra.mxu0 %v6400_v6 }
 0xac9   :  { %5180 = vmatprep.subr.bf16.mxu0 %v7452_v35  ;;  %5207 = vmatpush1.bf16.msra.mxu1 %v6513_v0 }
 0xaca   :  { %5209 = vmatprep.subr.bf16.mxu1 %v6517_v60 }
 0xacc   :  { %5182 = vmatpush3.bf16.msra.mxu0 %v6404_v12 }
 0xacd   :  { %5183 = vmatprep.subr.bf16.mxu0 %v7452_v35 }
 0xad0   :  { %5185 = vmatpush3.bf16.msra.mxu0 %v6408_v21 }
 0xad1   :  { %5186 = vmatprep.subr.bf16.mxu0 %v7452_v35 }
 0xad4   :  { %5188 = vmatpush3.bf16.msra.mxu0 %v6412_v28 }
 0xad5   :  { %5189 = vmatprep.subr.bf16.mxu0 %v7452_v35 }
 0xad8   :  { %5191 = vmatpush3.bf16.msra.mxu0 %v6416_v32 }
 0xad9   :  { %5225 = vmatprep.subr.bf16.mxu0 %v6286_v4 }
 0xadb   :  { %4722 = vmatmul.mubr.f32.vlgmr.msra.gmra.mrb[10].mxu0 %v1453_v40 }
 0xadc   :  { %5227 = vmatpush1.bf16.msra.mxu0 %v6290_v9  ;;  %2126 = vmatprep.mubr.f32.mxu0 %v7450_v20 }
 0xadd   :  { %5229 = vmatprep.subr.bf16.mxu0 %v7479_v16 }
 0xae0   :  { %5231 = vmatpush1.bf16.msra.mxu0 %v7480_v45 }
 0xae1   :  { %5233 = vmatprep.subr.bf16.mxu0 %v7481_v46 }
 0xae4   :  { %5235 = vmatpush1.bf16.msra.mxu0 %v7482_v42  ;;  %v7497_v42 = vld [vmem:[#allocation48_spill] sm:$0xff] }
 0xae5   :  { %5237 = vmatprep.subr.bf16.mxu0 %v7483_v10 }
 0xae8   :  { %5239 = vmatpush1.bf16.msra.mxu0 %v7484_v11 }
 0xae9   :  { %5241 = vmatprep.subr.bf16.mxu0 %v7485_v2 }
 0xaec   :  { %5243 = vmatpush1.bf16.msra.mxu0 %v7486_v37 }
 0xaed   :  { %5245 = vmatprep.subr.bf16.mxu0 %v7487_v47 }
 0xaf0   :  { %5247 = vmatpush1.bf16.msra.mxu0 %v7488_v25 }
 0xaf1   :  { %5249 = vmatprep.subr.bf16.mxu0 %v7489_v63  ;;  %v7493_v63 = vld [vmem:[#allocation44_spill] sm:$0xff] }
 0xaf4   :  { %5251 = vmatpush1.bf16.msra.mxu0 %v7490_v61 }
 0xaf5   :  { %5253 = vmatprep.subr.bf16.mxu0 %v7491_v22 }
 0xaf8   :  { %5255 = vmatpush1.bf16.msra.mxu0 %v7492_v29 }
 0xaf9   :  { %5288 = vmatprep.subr.bf16.mxu0 %v7452_v35 }
 0xb8e   :  { %v1536_v19 = vpop.f32.mrb[8].mxu0  ;;  %v1607_v14 = vpop.f32.mrb[12].mxu1 }
 0xb8f   :  { %v1538_v38 = vpop.f32.mrb[9].mxu0  ;;  %v1609_v48 = vpop.f32.mrb[13].mxu1 }
 0xb90   :  { %v1616_v24 = vcombine.low %v1536_v19, %v1538_v38  ;;  %v1617_v5 = vcombine.low %v1607_v14, %v1609_v48  ;;  %v7494_v19 = vld [vmem:[#allocation45_spill] sm:$0xff]  ;;  %v7495_v48 = vld [vmem:[#allocation46_spill] sm:$0xff] }
 0xb92   :  { %v6763_v40 = vrot.slane %v1616_v24, %v6444_v56  ;;  %v6766_v25 = vrot.slane %v1617_v5, %v6444_v56  ;;  %v7496_v5 = vld [vmem:[#allocation47_spill] sm:$0xff] }
 0xbae   :  { %v1702_v22 = vpop.f32.mrb[10].mxu0 }
 0xbaf   :  { %v1713_v29 = vrot.slane %v1702_v22, %v7493_v63  ;;  %v4723_v47 = vpop.f32.mrb[11].mxu0 }
 0xbb1   :  { %v1714_v37 = vcombine.high %v1713_v29, %v1713_v29  ;;  %v1721_v2 = vrot.slane %v1713_v29, %v7493_v63 }
 0xbb3   :  { %v1728_v11 = vrot.slane %v1714_v37, %v7493_v63  ;;  %v1732_v14 = vrot.slane %v1721_v2, %v7494_v19 }
 0xbb5   :  { %v1736_v38 = vrot.slane %v1728_v11, %v7494_v19  ;;  %v1739_v24 = vadd.f32 %v1732_v14, %v7495_v48 }
 0xbb7   :  { %v1740_v10 = vadd.f32 %v1736_v38, %v7496_v5  ;;  %5777 = vtanh.f32 %v1739_v24 }
 0xbb9   :  { %5779 = vtanh.f32 %v1740_v10 }
 0xbc1   :  { %v5778_v61 = vpop.eup %5777 }
 0xbc2   :  { %v1743_v46 = vmul.f32 %v5778_v61, %v7497_v42  ;;  %v7498_v61 = vld [vmem:[#allocation49_spill] sm:$0xff] }
 0xbc3   :  { %v5780_v22 = vpop.eup %5779 }
 0xbc4   :  { %1745 = vadd.xlane.f32.xlu0 %v1743_v46  ;;  %v1744_v47 = vmul.f32 %v5780_v22, %v7497_v42 }
 0xbc6   :  { %1747 = vadd.xlane.f32.xlu1 %v1744_v47 }
 0xc51   :  { %v1746_v29 = vpop.xlane.xlu0 %1745 }
 0xc52   :  { %v1754_v2 = vrot.slane %v1746_v29, %v6441_v43 }
 0xc53   :  { %v1748_v37 = vpop.xlane.xlu1 %1747 }
 0xc54   :  { %v1758_v11 = vrot.slane %v1748_v37, %v6441_v43 }
 0xc56   :  { %v1759_v14 = vsel %vm574_vm1, %v1758_v11, %v1754_v2 }
 0xc57   :  { %v1761_v38 = vsel %vm577_vm2, %v1759_v14, -inf }
 0xc58   :  { %1762 = vmax.xlane.f32.xlu1 %v1761_v38 }
 0xce5   :  { %v1763_v10 = vpop.xlane.xlu1 %1762 }
 0xce6   :  { %v1768_v48 = vrot.slane %v1763_v10, %v7494_v19  ;;  %v1772_v24 = vrot.slane %v1763_v10, %v7498_v61 }
 0xce8   :  { %v1775_v46 = vsub.f32 %v1746_v29, %v1768_v48  ;;  %v1776_v5 = vsub.f32 %v1748_v37, %v1772_v24 }
 0xcea   :  { %v1777_v42 = vmul.f32 1.442695, %v1775_v46  ;;  %v1779_v22 = vmul.f32 1.442695, %v1776_v5 }
 0xcec   :  { %5781 = vpow2.f32 %v1777_v42 }
 0xced   :  { %5783 = vpow2.f32 %v1779_v22 }
 0xcf6   :  { %v5782_v47 = vpop.eup %5781 }
 0xcf7   :  { %1784 = vperm.xlu1 %5723, %v5782_v47   ;;  %v5784_v63 = vpop.eup %5783 }
 0xcfb   :  { %1787 = vperm.xlu1 %5723, %v5784_v63  }
 0xd76   :  { %v1785_v45 = vpop.permute.xlu1 %1784 }
 0xd77   :  { %v1792_v11 = vrot.slane %v1785_v45, %v6441_v43 }
 0xd7a   :  { %v1788_v2 = vpop.permute.xlu1 %1787 }
 0xd7b   :  { %v1796_v14 = vrot.slane %v1788_v2, %v6441_v43 }
 0xd7d   :  { %v1797_v38 = vsel %vm574_vm1, %v1796_v14, %v1792_v11  ;;  %v7499_v11 = vld [vmem:[#allocation52_spill] sm:$0xff] }
 0xd7e   :  { %v1799_v10 = vsel %vm577_vm2, %v1797_v38, 0.0 }
 0xd7f   :  { %1800 = vadd.xlane.f32.xlu0 %v1799_v10  ;;  %v7500_v10 = vld [vmem:[#allocation51_spill] sm:$0xff] }
 0xe0c   :  { %v1801_v29 = vpop.xlane.xlu0 %1800 }
 0xe0d   :  { %5785 = vrcp.f32 %v1801_v29 }
 0xe17   :  { %v5786_v37 = vpop.eup %5785 }
 0xe18   :  { %v1803_v48 = vmul.f32 %v5786_v37, %v1801_v29 }
 0xe1a   :  { %v1804_v24 = vsub.f32 2.0, %v1803_v48 }
 0xe1c   :  { %v1805_v46 = vmul.f32 %v5786_v37, %v1804_v24 }
 0xe1e   :  { %v1814_v5 = vrot.slane %v1805_v46, %v7498_v61  ;;  %v1810_v42 = vrot.slane %v1805_v46, %v7494_v19 }
 0xe20   :  { %v1818_v22 = vmul.f32 %v5784_v63, %v1814_v5  ;;  %v1817_v16 = vmul.f32 %v5782_v47, %v1810_v42 }
 0xe22   :  { %1826 = vperm.xlu0 %5724, %v1818_v22   ;;  %1821 = vperm.xlu1 %5723, %v1817_v16  }
 0xea1   :  { %v1827_v45 = vpop.permute.xlu0 %1826  ;;  %v1822_v2 = vpop.permute.xlu1 %1821 }
 0xea2   :  { %v1830_v14 = vmul.f32 %v1827_v45, %v7499_v11  ;;  %v2055_v38 = vrot.slane %v1827_v45, %v6441_v43  ;;  %v1829_v9 = vmul.f32 %v1822_v2, %v7500_v10  ;;  %v2051_v29 = vrot.slane %v1822_v2, %v6441_v43 }
 0xea4   :  { %v1838_v37 = vsel %vm648_vm3, %v1830_v14, 0.0  ;;  %v1831_v48 = vsel %vm648_vm3, %v1829_v9, 0.0  ;;  %v2056_v24 = vsel %vm574_vm1, %v2055_v38, %v2051_v29  ;;  %v7501_v9 = vld [vmem:[#allocation36_spill] sm:$0xff]  ;;  %v7504_v29 = vld [vmem:[#allocation42_spill] sm:$0xff] }
 0xea5   :  { %v1839_v63 = vrot.slane %v1838_v37, 4  ;;  %v1832_v47 = vrot.slane %v1831_v48, 4  ;;  %2059 = vst.msk [vmem:[#allocation14 + $0x4] sm:$0x3] %vm577_vm2, %v2056_v24  ;;  %v7503_v38 = vld [vmem:[#allocation40_spill] sm:$0xff] }
 0xea7   :  { %v1840_v16 = vadd.f32 %v1839_v63, %v1838_v37  ;;  %v1833_v46 = vadd.f32 %v1832_v47, %v1831_v48  ;;  %v7505_v37 = vld [vmem:[#allocation50_spill] sm:$0xff] }
 0xea8   :  { %v1469_v47 = vld [vmem:[#allocation7 + $0x10] sm:$0xff] }
 0xea9   :  { %v1841_v5 = vrot.slane %v1840_v16, 2  ;;  %v1834_v42 = vrot.slane %v1833_v46, 2 }
 0xeab   :  { %v1842_v22 = vadd.f32 %v1841_v5, %v1840_v16  ;;  %v1835_v45 = vadd.f32 %v1834_v42, %v1833_v46  ;;  %v7506_v5 = vcombine.low %v6763_v40, %v6766_v25 }
 0xead   :  { %v1843_v11 = vrot.slane %v1842_v22, 1  ;;  %v1836_v10 = vrot.slane %v1835_v45, 1  ;;  %v1634_v42 = vadd.f32 %v7506_v5, %v1469_v47 }
 0xeaf   :  { %v1844_v61 = vadd.f32 %v1843_v11, %v1842_v22  ;;  %v1837_v2 = vadd.f32 %v1836_v10, %v1835_v45  ;;  %v1635_v10 = vadd.f32 %v1634_v42, %v6587_v36 }
 0xeb1   :  { %v1847_v14 = vsel %vm574_vm1, %v1844_v61, %v1837_v2  ;;  %v7502_v61 = vld [vmem:[#allocation38_spill] sm:$0xff] }
 0xeb2   :  { %4475 = vmatmul.mubr.msk.f32.vlgmr.msra.gmra.mrb[14].mxu1 %vm648_vm3, %v1847_v14 }
 0xeb3   :  { %5211 = vmatpush1.bf16.msra.mxu1 %v6532_v55  ;;  %1985 = vmatprep.mubr.f32.mxu1 %v7450_v20 }
 0xeb4   :  { %5213 = vmatprep.subr.bf16.mxu1 %v6534_v34 }
 0xeb7   :  { %5215 = vmatpush1.bf16.msra.mxu1 %v6539_v53 }
 0xeb8   :  { %5217 = vmatprep.subr.bf16.mxu1 %v6543_v27 }
 0xebb   :  { %5219 = vmatpush1.bf16.msra.mxu1 %v6546_v33 }
 0xebc   :  { %5221 = vmatprep.subr.bf16.mxu1 %v6549_v15 }
 0xebf   :  { %5223 = vmatpush1.bf16.msra.mxu1 %v6552_v41 }
 0xec0   :  { %5257 = vmatprep.subr.bf16.mxu1 %v6288_v8 }
 0xec2   :  { %4476 = vmatmul.mubr.msk.f32.vlgmr.msra.gmra.mrb[16].mxu1 %vm648_vm3, %v1847_v14 }
 0xec3   :  { %5259 = vmatpush1.bf16.msra.mxu1 %v6293_v13  ;;  %2197 = vmatprep.mubr.f32.mxu1 %v7450_v20 }
 0xec4   :  { %5261 = vmatprep.subr.bf16.mxu1 %v6299_v18 }
 0xec7   :  { %5263 = vmatpush1.bf16.msra.mxu1 %v6306_v26 }
 0xec8   :  { %5265 = vmatprep.subr.bf16.mxu1 %v6310_v31 }
 0xecb   :  { %5267 = vmatpush1.bf16.msra.mxu1 %v6317_v39 }
 0xecc   :  { %5269 = vmatprep.subr.bf16.mxu1 %v6322_v44 }
 0xecf   :  { %5271 = vmatpush1.bf16.msra.mxu1 %v6329_v52 }
 0xed0   :  { %5273 = vmatprep.subr.bf16.mxu1 %v6334_v57 }
 0xed3   :  { %5275 = vmatpush1.bf16.msra.mxu1 %v6341_v1 }
 0xed4   :  { %5277 = vmatprep.subr.bf16.mxu1 %v6346_v7 }
 0xed7   :  { %5279 = vmatpush1.bf16.msra.mxu1 %v7472_v17 }
 0xed8   :  { %5281 = vmatprep.subr.bf16.mxu1 %v7501_v9 }
 0xedb   :  { %5283 = vmatpush1.bf16.msra.mxu1 %v7502_v61 }
 0xedc   :  { %5285 = vmatprep.subr.bf16.mxu1 %v7503_v38 }
 0xedf   :  { %5287 = vmatpush1.bf16.msra.mxu1 %v7504_v29 }
 0xee0   :  { %5313 = vmatprep.subr.bf16.mxu1 %v7505_v37 }
 0xf85   :  { %v1916_v48 = vpop.f32.mrb[14].mxu1 }
 0xf86   :  { %v1918_v24 = vpop.f32.mrb[15].mxu1 }
 0xf87   :  { %v1996_v63 = vcombine.low %v1916_v48, %v1918_v24 }
 0xf89   :  { %v2004_v45 = vrot.slane %v1996_v63, %v6444_v56 }
 0xf95   :  { %v1987_v16 = vpop.f32.mrb[16].mxu1 }
 0xf96   :  { %v1989_v46 = vpop.f32.mrb[17].mxu1 }
 0xf97   :  { %v1997_v22 = vcombine.low %v1987_v16, %v1989_v46 }
 0xf99   :  { %v2011_v11 = vrot.slane %v1997_v22, %v6444_v56 }
 0xf9b   :  { %v2012_v2 = vcombine.low %v2004_v45, %v2011_v11  ;;  %v7509_v11 = vld [vmem:[#allocation25_spill] sm:$0xff] }
 0xf9d   :  { %v2014_v14 = vadd.f32 %v2012_v2, %v1635_v10  ;;  %v7510_v10 = vld [vmem:[#allocation26_spill] sm:$0xff]  ;;  %v7511_v2 = vld [vmem:[#allocation27_spill] sm:$0xff] }
 0xf9f   :  { %v4477_v37 = vmul.f32 -1.442695, %v2014_v14  ;;  %v2022_v29 = vrot.slane %v2014_v14, 2  ;;  %v2033_v24 = vrot.slane %v2014_v14, 6  ;;  %v2030_v9 = vrot.slane %v2014_v14, 4  ;;  %v7512_v14 = vld [vmem:[#allocation28_spill] sm:$0xff] }
 0xfa1   :  { %5787 = vpow2.f32 %v4477_v37  ;;  %v4478_v48 = vmul.f32 -1.442695, %v2022_v29  ;;  %v4479_v38 = vmul.f32 -1.442695, %v2033_v24  ;;  %v7514_v24 = vld [vmem:[#allocation30_spill] sm:$0xff] }
 0xfa3   :  { %5789 = vpow2.f32 %v4478_v48  ;;  %v7513_v48 = vld [vmem:[#allocation29_spill] sm:$0xff] }
 0xfa4   :  { %5791 = vpow2.f32 %v4479_v38 }
 0xfab   :  { %v5788_v61 = vpop.eup %5787 }
 0xfac   :  { %v2018_v25 = vadd.f32 1.0, %v5788_v61 }
 0xfad   :  { %v5790_v40 = vpop.eup %5789 }
 0xfae   :  { %5793 = vrcp.f32 %v2018_v25  ;;  %v2027_v63 = vadd.f32 1.0, %v5790_v40  ;;  %v5792_v47 = vpop.eup %5791  ;;  %v7515_v25 = vld [vmem:[#allocation31_spill] sm:$0xff]  ;;  %v7516_v40 = vld [vmem:[#allocation32_spill] sm:$0xff] }
 0xfaf   :  { %5795 = vtanh.f32 %v2030_v9  ;;  %v2038_v42 = vadd.f32 1.0, %v5792_v47  ;;  %v7508_v9 = vld [vmem:[#allocation24_spill] sm:$0xff]  ;;  %v7518_v47 = vld [vmem:[#allocation35_spill] sm:$0xff] }
 0xfb0   :  { %5797 = vrcp.f32 %v2027_v63  ;;  %v7517_v63 = vld [vmem:[#allocation33_spill] sm:$0xff] }
 0xfb1   :  { %5799 = vrcp.f32 %v2038_v42 }
 0xfb8   :  { %v5794_v16 = vpop.eup %5793 }
 0xfb9   :  { %v5796_v46 = vpop.eup %5795 }
 0xfba   :  { %v5798_v5 = vpop.eup %5797  ;;  %v2042_v29 = vmul.f32 %v5796_v46, %v5794_v16  ;;  %v7519_v16 = vld [vmem:[#allocation37_spill] sm:$0xff]  ;;  %v7520_v46 = vld [vmem:[#allocation39_spill] sm:$0xff] }
 0xfbb   :  { %v2041_v37 = vmul.f32 %v5798_v5, %v6715_v51  ;;  %v5800_v61 = vpop.eup %5799  ;;  %v7507_v51 = vld [vmem:[#allocation23_spill] sm:$0xff]  ;;  %v7521_v5 = vld [vmem:[#allocation41_spill] sm:$0xff] }
 0xfbd   :  { %v6835_v22 = vadd.f32 %v2042_v29, %v2041_v37 }
 0xfbf   :  { %5801 = vtanh.f32 %v6835_v22 }
 0xfc9   :  { %v5802_v45 = vpop.eup %5801 }
 0xfca   :  { %v2045_v38 = vmul.f32 %v5802_v45, %v5800_v61 }
 0xfcc   :  { %2047 = vst [vmem:[#allocation13 + $0x4] sm:$0x3] %v2045_v38  ;;  %2127 = vmatmul.mubr.f32.vlgmr.msra.gmra.mrb[12].mxu0 %v2045_v38  ;;  %2198 = vmatmul.mubr.f32.vlgmr.msra.gmra.mrb[18].mxu1 %v2045_v38 }
 0xfcd   :  { %5290 = vmatpush3.bf16.msra.mxu0 %v6384_v54  ;;  %4756 = vmatprep.mubr.msk.f32.mxu0 %vm6117_vm0, %v7450_v20 }
 0xfce   :  { %5291 = vmatprep.subr.bf16.mxu0 %v7452_v35  ;;  %5315 = vmatpush1.bf16.msra.mxu1 %v6495_v30 }
 0xfcf   :  { %5317 = vmatprep.subr.bf16.mxu1 %v6499_v58  ;;  %2506 = vmatprep.mubr.f32.mxu1 %v7450_v20 }
 0xfd1   :  { %5293 = vmatpush3.bf16.msra.mxu0 %v6389_v59 }
 0xfd2   :  { %5294 = vmatprep.subr.bf16.mxu0 %v7452_v35  ;;  %5319 = vmatpush1.bf16.msra.mxu1 %v6501_v23 }
 0xfd3   :  { %5321 = vmatprep.subr.bf16.mxu1 %v6505_v49 }
 0xfd5   :  { %5296 = vmatpush3.bf16.msra.mxu0 %v6396_v62 }
 0xfd6   :  { %5297 = vmatprep.subr.bf16.mxu0 %v7452_v35  ;;  %5323 = vmatpush1.bf16.msra.mxu1 %v6507_v3 }
 0xfd7   :  { %5325 = vmatprep.subr.bf16.mxu1 %v6511_v50 }
 0xfd9   :  { %5299 = vmatpush3.bf16.msra.mxu0 %v6400_v6 }
 0xfda   :  { %5300 = vmatprep.subr.bf16.mxu0 %v7452_v35  ;;  %5327 = vmatpush1.bf16.msra.mxu1 %v6513_v0 }
 0xfdb   :  { %5329 = vmatprep.subr.bf16.mxu1 %v6517_v60 }
 0xfdd   :  { %5302 = vmatpush3.bf16.msra.mxu0 %v6404_v12 }
 0xfde   :  { %5303 = vmatprep.subr.bf16.mxu0 %v7452_v35 }
 0xfe1   :  { %5305 = vmatpush3.bf16.msra.mxu0 %v6408_v21 }
 0xfe2   :  { %5306 = vmatprep.subr.bf16.mxu0 %v7452_v35 }
 0xfe5   :  { %5308 = vmatpush3.bf16.msra.mxu0 %v6412_v28 }
 0xfe6   :  { %5309 = vmatprep.subr.bf16.mxu0 %v7452_v35 }
 0xfe9   :  { %5311 = vmatpush3.bf16.msra.mxu0 %v6416_v32 }
 0xfea   :  { %5345 = vmatprep.subr.bf16.mxu0 %v6286_v4 }
 0xfec   :  { %4757 = vmatmul.mubr.f32.vlgmr.msra.gmra.mrb[14].mxu0 %v2045_v38 }
 0xfed   :  { %5347 = vmatpush1.bf16.msra.mxu0 %v7507_v51  ;;  %2718 = vmatprep.mubr.f32.mxu0 %v7450_v20 }
 0xfee   :  { %5349 = vmatprep.subr.bf16.mxu0 %v7508_v9  ;;  %v6920_v9 = vld [vmem:[#allocation2] sm:$0xff] }
 0xfef   :  { %7527 = vst [vmem:[#allocation48_spill] sm:$0xff] %v6920_v9 }
 0xff1   :  { %5351 = vmatpush1.bf16.msra.mxu0 %v7509_v11 }
 0xff2   :  { %5353 = vmatprep.subr.bf16.mxu0 %v7510_v10 }
 0xff5   :  { %5355 = vmatpush1.bf16.msra.mxu0 %v7511_v2 }
 0xff6   :  { %5357 = vmatprep.subr.bf16.mxu0 %v7512_v14 }
 0xff9   :  { %5359 = vmatpush1.bf16.msra.mxu0 %v7513_v48 }
 0xffa   :  { %5361 = vmatprep.subr.bf16.mxu0 %v7514_v24 }
 0xffd   :  { %5363 = vmatpush1.bf16.msra.mxu0 %v7515_v25 }
 0xffe   :  { %5365 = vmatprep.subr.bf16.mxu0 %v7516_v40 }
0x1001   :  { %5367 = vmatpush1.bf16.msra.mxu0 %v7517_v63 }
0x1002   :  { %5369 = vmatprep.subr.bf16.mxu0 %v7518_v47  ;;  %v7522_v47 = vld [vmem:[#allocation44_spill] sm:$0xff] }
0x1005   :  { %5371 = vmatpush1.bf16.msra.mxu0 %v7519_v16 }
0x1006   :  { %5373 = vmatprep.subr.bf16.mxu0 %v7520_v46 }
0x1009   :  { %5375 = vmatpush1.bf16.msra.mxu0 %v7521_v5 }
0x100a   :  { %5408 = vmatprep.subr.bf16.mxu0 %v7452_v35 }
0x109f   :  { %v2128_v42 = vpop.f32.mrb[12].mxu0  ;;  %v2199_v37 = vpop.f32.mrb[18].mxu1 }
0x10a0   :  { %v2130_v29 = vpop.f32.mrb[13].mxu0  ;;  %v2201_v61 = vpop.f32.mrb[19].mxu1 }
0x10a1   :  { %v2208_v45 = vcombine.low %v2128_v42, %v2130_v29  ;;  %v2209_v38 = vcombine.low %v2199_v37, %v2201_v61  ;;  %v6895_v29 = vld [vmem:[#allocation5] sm:$0xff] }
0x10a2   :  { %7523 = vst [vmem:[#allocation34_spill] sm:$0xff] %v6895_v29 }
0x10a3   :  { %v6883_v40 = vrot.slane %v2208_v45, %v6444_v56  ;;  %v6886_v63 = vrot.slane %v2209_v38, %v6444_v56  ;;  %v6898_v45 = vld [vmem:[#allocation5 + $0x8] sm:$0xff] }
0x10a4   :  { %7524 = vst [vmem:[#allocation46_spill] sm:$0xff] %v6898_v45 }
0x10bf   :  { %v2294_v46 = vpop.f32.mrb[14].mxu0 }
0x10c0   :  { %v2305_v5 = vrot.slane %v2294_v46, %v7522_v47  ;;  %v4758_v25 = vpop.f32.mrb[15].mxu0  ;;  %v6904_v46 = vld [vmem:[%s7325_s6] ss:$0 sm:$0xff] }
0x10c1   :  { %7525 = vst [vmem:[#allocation47_spill] sm:$0xff] %v6904_v46 }
0x10c2   :  { %v2306_v24 = vcombine.high %v2305_v5, %v2305_v5  ;;  %v2313_v48 = vrot.slane %v2305_v5, %v7522_v47 }
0x10c4   :  { %v2320_v14 = vrot.slane %v2306_v24, %v7522_v47  ;;  %v2324_v42 = vrot.slane %v2313_v48, %v7494_v19 }
0x10c6   :  { %v2328_v37 = vrot.slane %v2320_v14, %v7494_v19  ;;  %v2331_v61 = vadd.f32 %v6895_v29, %v2324_v42 }
0x10c8   :  { %v2332_v38 = vadd.f32 %v6898_v45, %v2328_v37  ;;  %5803 = vtanh.f32 %v2331_v61 }
0x10ca   :  { %5805 = vtanh.f32 %v2332_v38 }
0x10d2   :  { %v5804_v25 = vpop.eup %5803 }
0x10d3   :  { %v2335_v48 = vmul.f32 %v6904_v46, %v5804_v25  ;;  %v7526_v25 = vld [vmem:[#allocation49_spill] sm:$0xff] }
0x10d4   :  { %v5806_v24 = vpop.eup %5805 }
0x10d5   :  { %2337 = vadd.xlane.f32.xlu1 %v2335_v48  ;;  %v2336_v14 = vmul.f32 %v6904_v46, %v5806_v24 }
0x10d7   :  { %2339 = vadd.xlane.f32.xlu0 %v2336_v14 }
0x1162   :  { %v2338_v5 = vpop.xlane.xlu1 %2337 }
0x1163   :  { %v2346_v16 = vrot.slane %v2338_v5, %v6441_v43 }
0x1164   :  { %v2340_v42 = vpop.xlane.xlu0 %2339 }
0x1165   :  { %v2350_v37 = vrot.slane %v2340_v42, %v6441_v43 }
0x1167   :  { %v2351_v61 = vsel %vm574_vm1, %v2350_v37, %v2346_v16 }
0x1168   :  { %v2353_v38 = vsel %vm577_vm2, %v2351_v61, -inf }
0x1169   :  { %2354 = vmax.xlane.f32.xlu1 %v2353_v38 }
0x11f6   :  { %v2355_v45 = vpop.xlane.xlu1 %2354 }
0x11f7   :  { %v2360_v29 = vrot.slane %v2355_v45, %v7494_v19  ;;  %v2364_v47 = vrot.slane %v2355_v45, %v7526_v25 }
0x11f9   :  { %v2367_v48 = vsub.f32 %v2338_v5, %v2360_v29  ;;  %v2368_v2 = vsub.f32 %v2340_v42, %v2364_v47 }
0x11fb   :  { %v2369_v24 = vmul.f32 1.442695, %v2367_v48  ;;  %v2371_v14 = vmul.f32 1.442695, %v2368_v2 }
0x11fd   :  { %5807 = vpow2.f32 %v2369_v24 }
0x11fe   :  { %5809 = vpow2.f32 %v2371_v14 }
0x1207   :  { %v5808_v46 = vpop.eup %5807 }
0x1208   :  { %v5810_v10 = vpop.eup %5809  ;;  %2376 = vperm.xlu1 %5723, %v5808_v46  }
0x1209   :  { %2379 = vperm.xlu0 %5724, %v5810_v10  }
0x1287   :  { %v2377_v11 = vpop.permute.xlu1 %2376 }
0x1288   :  { %v2380_v16 = vpop.permute.xlu0 %2379  ;;  %v2384_v37 = vrot.slane %v2377_v11, %v6441_v43 }
0x1289   :  { %v2388_v61 = vrot.slane %v2380_v16, %v6441_v43 }
0x128b   :  { %v2389_v38 = vsel %vm574_vm1, %v2388_v61, %v2384_v37 }
0x128c   :  { %v2391_v45 = vsel %vm577_vm2, %v2389_v38, 0.0 }
0x128d   :  { %2392 = vadd.xlane.f32.xlu1 %v2391_v45 }
0x131a   :  { %v2393_v47 = vpop.xlane.xlu1 %2392 }
0x131b   :  { %5811 = vrcp.f32 %v2393_v47 }
0x1325   :  { %v5812_v2 = vpop.eup %5811 }
0x1326   :  { %v2395_v29 = vmul.f32 %v5812_v2, %v2393_v47 }
0x1328   :  { %v2396_v5 = vsub.f32 2.0, %v2395_v29 }
0x132a   :  { %v2397_v42 = vmul.f32 %v5812_v2, %v2396_v5  ;;  %v6925_v2 = vld [vmem:[#allocation2 + $0x8] sm:$0xff] }
0x132b   :  { %7528 = vst [vmem:[#allocation52_spill] sm:$0xff] %v6925_v2 }
0x132c   :  { %v2402_v48 = vrot.slane %v2397_v42, %v7494_v19  ;;  %v2406_v14 = vrot.slane %v2397_v42, %v7526_v25 }
0x132e   :  { %v2409_v24 = vmul.f32 %v5808_v46, %v2402_v48  ;;  %v2410_v11 = vmul.f32 %v5810_v10, %v2406_v14 }
0x1330   :  { %2413 = vperm.xlu0 %5724, %v2409_v24  }
0x1334   :  { %2418 = vperm.xlu0 %5724, %v2410_v11  }
0x13af   :  { %v2414_v16 = vpop.permute.xlu0 %2413 }
0x13b0   :  { %v2421_v37 = vmul.f32 %v6920_v9, %v2414_v16  ;;  %v2643_v47 = vrot.slane %v2414_v16, %v6441_v43 }
0x13b2   :  { %v2423_v61 = vsel %vm648_vm3, %v2421_v37, 0.0 }
0x13b3   :  { %v2424_v38 = vrot.slane %v2423_v61, 4  ;;  %v2419_v45 = vpop.permute.xlu0 %2418 }
0x13b4   :  { %v2422_v46 = vmul.f32 %v6925_v2, %v2419_v45  ;;  %v2647_v29 = vrot.slane %v2419_v45, %v6441_v43 }
0x13b5   :  { %v2425_v5 = vadd.f32 %v2424_v38, %v2423_v61  ;;  %v7533_v61 = vld [vmem:[#allocation50_spill] sm:$0xff] }
0x13b6   :  { %v2430_v10 = vsel %vm648_vm3, %v2422_v46, 0.0  ;;  %v2648_v42 = vsel %vm574_vm1, %v2647_v29, %v2643_v47 }
0x13b7   :  { %v2426_v48 = vrot.slane %v2425_v5, 2  ;;  %v2431_v24 = vrot.slane %v2430_v10, 4  ;;  %2651 = vst.msk [vmem:[#allocation14 + $0x6] sm:$0x3] %vm577_vm2, %v2648_v42 }
0x13b9   :  { %v2427_v14 = vadd.f32 %v2426_v48, %v2425_v5  ;;  %v2432_v11 = vadd.f32 %v2431_v24, %v2430_v10  ;;  %v7534_v5 = vcombine.low %v6883_v40, %v6886_v63 }
0x13bb   :  { %v2433_v37 = vrot.slane %v2432_v11, 2  ;;  %v2428_v9 = vrot.slane %v2427_v14, 1 }
0x13bd   :  { %v2434_v16 = vadd.f32 %v2433_v37, %v2432_v11  ;;  %v2429_v19 = vadd.f32 %v2428_v9, %v2427_v14  ;;  %v7531_v9 = vld [vmem:[#allocation40_spill] sm:$0xff] }
0x13bf   :  { %v2435_v25 = vrot.slane %v2434_v16, 1 }
0x13c1   :  { %v2436_v51 = vadd.f32 %v2435_v25, %v2434_v16  ;;  %v7532_v25 = vld [vmem:[#allocation42_spill] sm:$0xff] }
0x13c3   :  { %v2439_v2 = vsel %vm574_vm1, %v2436_v51, %v2429_v19  ;;  %v7529_v19 = vld [vmem:[#allocation36_spill] sm:$0xff]  ;;  %v7530_v51 = vld [vmem:[#allocation38_spill] sm:$0xff] }
0x13c4   :  { %4480 = vmatmul.mubr.msk.f32.vlgmr.msra.gmra.mrb[20].mxu1 %vm648_vm3, %v2439_v2 }
0x13c5   :  { %5331 = vmatpush1.bf16.msra.mxu1 %v6532_v55  ;;  %2577 = vmatprep.mubr.f32.mxu1 %v7450_v20 }
0x13c6   :  { %5333 = vmatprep.subr.bf16.mxu1 %v6534_v34 }
0x13c9   :  { %5335 = vmatpush1.bf16.msra.mxu1 %v6539_v53 }
0x13ca   :  { %5337 = vmatprep.subr.bf16.mxu1 %v6543_v27 }
0x13cd   :  { %5339 = vmatpush1.bf16.msra.mxu1 %v6546_v33 }
0x13ce   :  { %5341 = vmatprep.subr.bf16.mxu1 %v6549_v15 }
0x13d1   :  { %5343 = vmatpush1.bf16.msra.mxu1 %v6552_v41 }
0x13d2   :  { %5377 = vmatprep.subr.bf16.mxu1 %v6288_v8 }
0x13d4   :  { %4481 = vmatmul.mubr.msk.f32.vlgmr.msra.gmra.mrb[22].mxu1 %vm648_vm3, %v2439_v2  ;;  %v2061_v2 = vld [vmem:[#allocation7 + $0x18] sm:$0xff] }
0x13d5   :  { %5379 = vmatpush1.bf16.msra.mxu1 %v6293_v13  ;;  %2789 = vmatprep.mubr.f32.mxu1 %v7450_v20  ;;  %v2226_v10 = vadd.f32 %v7534_v5, %v2061_v2 }
0x13d6   :  { %5381 = vmatprep.subr.bf16.mxu1 %v6299_v18 }
0x13d7   :  { %v2227_v14 = vadd.f32 %v2226_v10, %v6587_v36 }
0x13d9   :  { %5383 = vmatpush1.bf16.msra.mxu1 %v6306_v26 }
0x13da   :  { %5385 = vmatprep.subr.bf16.mxu1 %v6310_v31 }
0x13dd   :  { %5387 = vmatpush1.bf16.msra.mxu1 %v6317_v39 }
0x13de   :  { %5389 = vmatprep.subr.bf16.mxu1 %v6322_v44 }
0x13e1   :  { %5391 = vmatpush1.bf16.msra.mxu1 %v6329_v52 }
0x13e2   :  { %5393 = vmatprep.subr.bf16.mxu1 %v6334_v57 }
0x13e5   :  { %5395 = vmatpush1.bf16.msra.mxu1 %v6341_v1 }
0x13e6   :  { %5397 = vmatprep.subr.bf16.mxu1 %v6346_v7 }
0x13e9   :  { %5399 = vmatpush1.bf16.msra.mxu1 %v7472_v17 }
0x13ea   :  { %5401 = vmatprep.subr.bf16.mxu1 %v7529_v19 }
0x13ed   :  { %5403 = vmatpush1.bf16.msra.mxu1 %v7530_v51 }
0x13ee   :  { %5405 = vmatprep.subr.bf16.mxu1 %v7531_v9 }
0x13f1   :  { %5407 = vmatpush1.bf16.msra.mxu1 %v7532_v25 }
0x13f2   :  { %5433 = vmatprep.subr.bf16.mxu1 %v7533_v61 }
0x1497   :  { %v2508_v38 = vpop.f32.mrb[20].mxu1 }
0x1498   :  { %v2510_v45 = vpop.f32.mrb[21].mxu1 }
0x1499   :  { %v2588_v47 = vcombine.low %v2508_v38, %v2510_v45 }
0x149b   :  { %v2596_v48 = vrot.slane %v2588_v47, %v6444_v56 }
0x14a7   :  { %v2579_v46 = vpop.f32.mrb[22].mxu1 }
0x14a8   :  { %v2581_v29 = vpop.f32.mrb[23].mxu1 }
0x14a9   :  { %v2589_v42 = vcombine.low %v2579_v46, %v2581_v29 }
0x14ab   :  { %v2603_v24 = vrot.slane %v2589_v42, %v6444_v56 }
0x14ad   :  { %v2604_v11 = vcombine.low %v2596_v48, %v2603_v24 }
0x14af   :  { %v2606_v37 = vadd.f32 %v2604_v11, %v2227_v14  ;;  %v7537_v14 = vld [vmem:[#allocation25_spill] sm:$0xff]  ;;  %v7538_v11 = vld [vmem:[#allocation26_spill] sm:$0xff] }
0x14b1   :  { %v4482_v16 = vmul.f32 -1.442695, %v2606_v37  ;;  %v2614_v61 = vrot.slane %v2606_v37, 2  ;;  %v2625_v45 = vrot.slane %v2606_v37, 6  ;;  %v2622_v51 = vrot.slane %v2606_v37, 4  ;;  %v7539_v37 = vld [vmem:[#allocation27_spill] sm:$0xff] }
0x14b3   :  { %5813 = vpow2.f32 %v4482_v16  ;;  %v4483_v38 = vmul.f32 -1.442695, %v2614_v61  ;;  %v4484_v25 = vmul.f32 -1.442695, %v2625_v45  ;;  %v7540_v16 = vld [vmem:[#allocation28_spill] sm:$0xff]  ;;  %v7542_v45 = vld [vmem:[#allocation30_spill] sm:$0xff] }
0x14b5   :  { %5815 = vpow2.f32 %v4483_v38  ;;  %v7541_v38 = vld [vmem:[#allocation29_spill] sm:$0xff] }
0x14b6   :  { %5817 = vpow2.f32 %v4484_v25 }
0x14bd   :  { %v5814_v9 = vpop.eup %5813 }
0x14be   :  { %v2610_v40 = vadd.f32 1.0, %v5814_v9 }
0x14bf   :  { %v5816_v63 = vpop.eup %5815 }
0x14c0   :  { %5819 = vrcp.f32 %v2610_v40  ;;  %v2619_v47 = vadd.f32 1.0, %v5816_v63  ;;  %v5818_v2 = vpop.eup %5817  ;;  %v7543_v40 = vld [vmem:[#allocation31_spill] sm:$0xff]  ;;  %v7544_v63 = vld [vmem:[#allocation32_spill] sm:$0xff] }
0x14c1   :  { %5821 = vtanh.f32 %v2622_v51  ;;  %v2630_v10 = vadd.f32 1.0, %v5818_v2  ;;  %v7536_v51 = vld [vmem:[#allocation24_spill] sm:$0xff]  ;;  %v7546_v2 = vld [vmem:[#allocation35_spill] sm:$0xff] }
0x14c2   :  { %5823 = vrcp.f32 %v2619_v47  ;;  %v7545_v47 = vld [vmem:[#allocation33_spill] sm:$0xff] }
0x14c3   :  { %5825 = vrcp.f32 %v2630_v10 }
0x14ca   :  { %v5820_v46 = vpop.eup %5819 }
0x14cb   :  { %v5822_v29 = vpop.eup %5821 }
0x14cc   :  { %v5824_v5 = vpop.eup %5823  ;;  %v2634_v61 = vmul.f32 %v5822_v29, %v5820_v46  ;;  %v7547_v46 = vld [vmem:[#allocation37_spill] sm:$0xff]  ;;  %v7548_v29 = vld [vmem:[#allocation39_spill] sm:$0xff] }
0x14cd   :  { %v2633_v42 = vmul.f32 %v5824_v5, %v6835_v22  ;;  %v5826_v9 = vpop.eup %5825  ;;  %v7535_v22 = vld [vmem:[#allocation23_spill] sm:$0xff]  ;;  %v7549_v5 = vld [vmem:[#allocation41_spill] sm:$0xff] }
0x14cf   :  { %v6968_v48 = vadd.f32 %v2634_v61, %v2633_v42 }
0x14d1   :  { %5827 = vtanh.f32 %v6968_v48 }
0x14db   :  { %v5828_v24 = vpop.eup %5827 }
0x14dc   :  { %v2637_v25 = vmul.f32 %v5828_v24, %v5826_v9 }
0x14de   :  { %2639 = vst [vmem:[#allocation13 + $0x6] sm:$0x3] %v2637_v25  ;;  %2719 = vmatmul.mubr.f32.vlgmr.msra.gmra.mrb[16].mxu0 %v2637_v25  ;;  %2790 = vmatmul.mubr.f32.vlgmr.msra.gmra.mrb[24].mxu1 %v2637_v25 }
0x14df   :  { %5410 = vmatpush3.bf16.msra.mxu0 %v6384_v54  ;;  %4791 = vmatprep.mubr.msk.f32.mxu0 %vm6117_vm0, %v7450_v20 }
0x14e0   :  { %5411 = vmatprep.subr.bf16.mxu0 %v7452_v35  ;;  %5435 = vmatpush1.bf16.msra.mxu1 %v6495_v30 }
0x14e1   :  { %5437 = vmatprep.subr.bf16.mxu1 %v6499_v58  ;;  %3098 = vmatprep.mubr.f32.mxu1 %v7450_v20 }
0x14e3   :  { %5413 = vmatpush3.bf16.msra.mxu0 %v6389_v59 }
0x14e4   :  { %5414 = vmatprep.subr.bf16.mxu0 %v7452_v35  ;;  %5439 = vmatpush1.bf16.msra.mxu1 %v6501_v23 }
0x14e5   :  { %5441 = vmatprep.subr.bf16.mxu1 %v6505_v49 }
0x14e7   :  { %5416 = vmatpush3.bf16.msra.mxu0 %v6396_v62 }
0x14e8   :  { %5417 = vmatprep.subr.bf16.mxu0 %v7452_v35  ;;  %5443 = vmatpush1.bf16.msra.mxu1 %v6507_v3 }
0x14e9   :  { %5445 = vmatprep.subr.bf16.mxu1 %v6511_v50 }
0x14eb   :  { %5419 = vmatpush3.bf16.msra.mxu0 %v6400_v6 }
0x14ec   :  { %5420 = vmatprep.subr.bf16.mxu0 %v7452_v35  ;;  %5447 = vmatpush1.bf16.msra.mxu1 %v6513_v0 }
0x14ed   :  { %5449 = vmatprep.subr.bf16.mxu1 %v6517_v60 }
0x14ef   :  { %5422 = vmatpush3.bf16.msra.mxu0 %v6404_v12 }
0x14f0   :  { %5423 = vmatprep.subr.bf16.mxu0 %v7452_v35 }
0x14f3   :  { %5425 = vmatpush3.bf16.msra.mxu0 %v6408_v21 }
0x14f4   :  { %5426 = vmatprep.subr.bf16.mxu0 %v7452_v35 }
0x14f7   :  { %5428 = vmatpush3.bf16.msra.mxu0 %v6412_v28 }
0x14f8   :  { %5429 = vmatprep.subr.bf16.mxu0 %v7452_v35 }
0x14fb   :  { %5431 = vmatpush3.bf16.msra.mxu0 %v6416_v32 }
0x14fc   :  { %5465 = vmatprep.subr.bf16.mxu0 %v6286_v4 }
0x14fe   :  { %4792 = vmatmul.mubr.f32.vlgmr.msra.gmra.mrb[18].mxu0 %v2637_v25 }
0x14ff   :  { %5467 = vmatpush1.bf16.msra.mxu0 %v7535_v22  ;;  %3310 = vmatprep.mubr.f32.mxu0 %v7450_v20  ;;  %v7556_v22 = vld [vmem:[#allocation48_spill] sm:$0xff] }
0x1500   :  { %5469 = vmatprep.subr.bf16.mxu0 %v7536_v51 }
0x1503   :  { %5471 = vmatpush1.bf16.msra.mxu0 %v7537_v14 }
0x1504   :  { %5473 = vmatprep.subr.bf16.mxu0 %v7538_v11  ;;  %v7554_v11 = vld [vmem:[#allocation47_spill] sm:$0xff] }
0x1507   :  { %5475 = vmatpush1.bf16.msra.mxu0 %v7539_v37 }
0x1508   :  { %5477 = vmatprep.subr.bf16.mxu0 %v7540_v16 }
0x150b   :  { %5479 = vmatpush1.bf16.msra.mxu0 %v7541_v38 }
0x150c   :  { %5481 = vmatprep.subr.bf16.mxu0 %v7542_v45 }
0x150f   :  { %5483 = vmatpush1.bf16.msra.mxu0 %v7543_v40 }
0x1510   :  { %5485 = vmatprep.subr.bf16.mxu0 %v7544_v63 }
0x1513   :  { %5487 = vmatpush1.bf16.msra.mxu0 %v7545_v47 }
0x1514   :  { %5489 = vmatprep.subr.bf16.mxu0 %v7546_v2  ;;  %v7550_v2 = vld [vmem:[#allocation44_spill] sm:$0xff] }
0x1517   :  { %5491 = vmatpush1.bf16.msra.mxu0 %v7547_v46 }
0x1518   :  { %5493 = vmatprep.subr.bf16.mxu0 %v7548_v29 }
0x151b   :  { %5495 = vmatpush1.bf16.msra.mxu0 %v7549_v5 }
0x151c   :  { %5528 = vmatprep.subr.bf16.mxu0 %v7452_v35 }
0x15b1   :  { %v2720_v10 = vpop.f32.mrb[16].mxu0  ;;  %v2791_v42 = vpop.f32.mrb[24].mxu1 }
0x15b2   :  { %v2722_v61 = vpop.f32.mrb[17].mxu0  ;;  %v2793_v9 = vpop.f32.mrb[25].mxu1 }
0x15b3   :  { %v2800_v24 = vcombine.low %v2720_v10, %v2722_v61  ;;  %v2801_v25 = vcombine.low %v2791_v42, %v2793_v9  ;;  %v7551_v10 = vld [vmem:[#allocation45_spill] sm:$0xff]  ;;  %v7552_v9 = vld [vmem:[#allocation34_spill] sm:$0xff] }
0x15b5   :  { %v7016_v63 = vrot.slane %v2800_v24, %v6444_v56  ;;  %v7019_v47 = vrot.slane %v2801_v25, %v6444_v56  ;;  %v7553_v25 = vld [vmem:[#allocation46_spill] sm:$0xff] }
0x15d1   :  { %v2886_v29 = vpop.f32.mrb[18].mxu0 }
0x15d2   :  { %v2897_v5 = vrot.slane %v2886_v29, %v7550_v2  ;;  %v4793_v40 = vpop.f32.mrb[19].mxu0 }
0x15d4   :  { %v2898_v45 = vcombine.high %v2897_v5, %v2897_v5  ;;  %v2905_v38 = vrot.slane %v2897_v5, %v7550_v2 }
0x15d6   :  { %v2912_v16 = vrot.slane %v2898_v45, %v7550_v2  ;;  %v2916_v42 = vrot.slane %v2905_v38, %v7551_v10 }
0x15d8   :  { %v2920_v61 = vrot.slane %v2912_v16, %v7551_v10  ;;  %v2923_v24 = vadd.f32 %v7552_v9, %v2916_v42 }
0x15da   :  { %v2924_v37 = vadd.f32 %v7553_v25, %v2920_v61  ;;  %5829 = vtanh.f32 %v2923_v24 }
0x15dc   :  { %5831 = vtanh.f32 %v2924_v37 }
0x15e4   :  { %v5830_v46 = vpop.eup %5829 }
0x15e5   :  { %v2927_v14 = vmul.f32 %v7554_v11, %v5830_v46  ;;  %v7555_v46 = vld [vmem:[#allocation49_spill] sm:$0xff] }
0x15e6   :  { %v5832_v29 = vpop.eup %5831 }
0x15e7   :  { %2929 = vadd.xlane.f32.xlu0 %v2927_v14  ;;  %v2928_v40 = vmul.f32 %v7554_v11, %v5832_v29 }
0x15e9   :  { %2931 = vadd.xlane.f32.xlu1 %v2928_v40 }
0x1674   :  { %v2930_v5 = vpop.xlane.xlu0 %2929 }
0x1675   :  { %v2938_v38 = vrot.slane %v2930_v5, %v6441_v43 }
0x1676   :  { %v2932_v45 = vpop.xlane.xlu1 %2931 }
0x1677   :  { %v2942_v16 = vrot.slane %v2932_v45, %v6441_v43 }
0x1679   :  { %v2943_v42 = vsel %vm574_vm1, %v2942_v16, %v2938_v38 }
0x167a   :  { %v2945_v61 = vsel %vm577_vm2, %v2943_v42, -inf }
0x167b   :  { %2946 = vmax.xlane.f32.xlu1 %v2945_v61 }
0x1708   :  { %v2947_v37 = vpop.xlane.xlu1 %2946 }
0x1709   :  { %v2952_v24 = vrot.slane %v2947_v37, %v7551_v10  ;;  %v2956_v25 = vrot.slane %v2947_v37, %v7555_v46 }
0x170b   :  { %v2959_v14 = vsub.f32 %v2930_v5, %v2952_v24  ;;  %v2960_v9 = vsub.f32 %v2932_v45, %v2956_v25 }
0x170d   :  { %v2961_v29 = vmul.f32 1.442695, %v2959_v14  ;;  %v2963_v40 = vmul.f32 1.442695, %v2960_v9 }
0x170f   :  { %5833 = vpow2.f32 %v2961_v29 }
0x1710   :  { %5835 = vpow2.f32 %v2963_v40 }
0x1719   :  { %v5834_v11 = vpop.eup %5833 }
0x171a   :  { %v5836_v2 = vpop.eup %5835  ;;  %2968 = vperm.xlu1 %5723, %v5834_v11  }
0x171b   :  { %2971 = vperm.xlu0 %5724, %v5836_v2  }
0x1799   :  { %v2969_v51 = vpop.permute.xlu1 %2968 }
0x179a   :  { %v2972_v38 = vpop.permute.xlu0 %2971  ;;  %v2976_v16 = vrot.slane %v2969_v51, %v6441_v43 }
0x179b   :  { %v2980_v42 = vrot.slane %v2972_v38, %v6441_v43 }
0x179d   :  { %v2981_v61 = vsel %vm574_vm1, %v2980_v42, %v2976_v16 }
0x179e   :  { %v2983_v37 = vsel %vm577_vm2, %v2981_v61, 0.0 }
0x179f   :  { %2984 = vadd.xlane.f32.xlu1 %v2983_v37 }
0x182c   :  { %v2985_v25 = vpop.xlane.xlu1 %2984 }
0x182d   :  { %5837 = vrcp.f32 %v2985_v25 }
0x1837   :  { %v5838_v9 = vpop.eup %5837 }
0x1838   :  { %v2987_v5 = vmul.f32 %v5838_v9, %v2985_v25  ;;  %v7557_v25 = vld [vmem:[#allocation52_spill] sm:$0xff] }
0x183a   :  { %v2988_v45 = vsub.f32 2.0, %v2987_v5 }
0x183c   :  { %v2989_v24 = vmul.f32 %v5838_v9, %v2988_v45 }
0x183e   :  { %v2994_v14 = vrot.slane %v2989_v24, %v7551_v10  ;;  %v2998_v40 = vrot.slane %v2989_v24, %v7555_v46 }
0x1840   :  { %v3001_v29 = vmul.f32 %v5834_v11, %v2994_v14  ;;  %v3002_v51 = vmul.f32 %v5836_v2, %v2998_v40 }
0x1842   :  { %3005 = vperm.xlu0 %5724, %v3001_v29  }
0x1846   :  { %3010 = vperm.xlu0 %5724, %v3002_v51  }
0x18c1   :  { %v3006_v38 = vpop.permute.xlu0 %3005 }
0x18c2   :  { %v3013_v16 = vmul.f32 %v7556_v22, %v3006_v38  ;;  %v3235_v4 = vrot.slane %v3006_v38, %v6441_v43 }
0x18c4   :  { %v3015_v42 = vsel %vm648_vm3, %v3013_v16, 0.0 }
0x18c5   :  { %v3016_v61 = vrot.slane %v3015_v42, 4  ;;  %v3011_v37 = vpop.permute.xlu0 %3010 }
0x18c6   :  { %v3014_v5 = vmul.f32 %v7557_v25, %v3011_v37  ;;  %v3239_v9 = vrot.slane %v3011_v37, %v6441_v43 }
0x18c7   :  { %v3017_v45 = vadd.f32 %v3016_v61, %v3015_v42 }
0x18c8   :  { %v3022_v11 = vsel %vm648_vm3, %v3014_v5, 0.0  ;;  %v3240_v24 = vsel %vm574_vm1, %v3239_v9, %v3235_v4  ;;  %v7558_v4 = vld [vmem:[#allocation38_spill] sm:$0xff] }
0x18c9   :  { %v3018_v2 = vrot.slane %v3017_v45, 2  ;;  %v3023_v14 = vrot.slane %v3022_v11, 4  ;;  %3243 = vst.msk [vmem:[#allocation14 + $0x8] sm:$0x3] %vm577_vm2, %v3240_v24 }
0x18cb   :  { %v3019_v29 = vadd.f32 %v3018_v2, %v3017_v45  ;;  %v3024_v40 = vadd.f32 %v3023_v14, %v3022_v11  ;;  %v7562_v45 = vcombine.low %v7016_v63, %v7019_v47 }
0x18cd   :  { %v3025_v51 = vrot.slane %v3024_v40, 2  ;;  %v3020_v16 = vrot.slane %v3019_v29, 1 }
0x18cf   :  { %v3026_v22 = vadd.f32 %v3025_v51, %v3024_v40  ;;  %v3021_v38 = vadd.f32 %v3020_v16, %v3019_v29 }
0x18d1   :  { %v3027_v46 = vrot.slane %v3026_v22, 1 }
0x18d3   :  { %v3028_v10 = vadd.f32 %v3027_v46, %v3026_v22  ;;  %v7559_v22 = vld [vmem:[#allocation40_spill] sm:$0xff]  ;;  %v7561_v46 = vld [vmem:[#allocation50_spill] sm:$0xff] }
0x18d5   :  { %v3031_v25 = vsel %vm574_vm1, %v3028_v10, %v3021_v38  ;;  %v7560_v10 = vld [vmem:[#allocation42_spill] sm:$0xff] }
0x18d6   :  { %4485 = vmatmul.mubr.msk.f32.vlgmr.msra.gmra.mrb[26].mxu1 %vm648_vm3, %v3031_v25 }
0x18d7   :  { %5451 = vmatpush1.bf16.msra.mxu1 %v6532_v55  ;;  %3169 = vmatprep.mubr.f32.mxu1 %v7450_v20 }
0x18d8   :  { %5453 = vmatprep.subr.bf16.mxu1 %v6534_v34 }
0x18db   :  { %5455 = vmatpush1.bf16.msra.mxu1 %v6539_v53 }
0x18dc   :  { %5457 = vmatprep.subr.bf16.mxu1 %v6543_v27 }
0x18df   :  { %5459 = vmatpush1.bf16.msra.mxu1 %v6546_v33 }
0x18e0   :  { %5461 = vmatprep.subr.bf16.mxu1 %v6549_v15 }
0x18e3   :  { %5463 = vmatpush1.bf16.msra.mxu1 %v6552_v41 }
0x18e4   :  { %5497 = vmatprep.subr.bf16.mxu1 %v6288_v8 }
0x18e6   :  { %4486 = vmatmul.mubr.msk.f32.vlgmr.msra.gmra.mrb[28].mxu1 %vm648_vm3, %v3031_v25  ;;  %v2653_v25 = vld [vmem:[#allocation7 + $0x20] sm:$0xff] }
0x18e7   :  { %5499 = vmatpush1.bf16.msra.mxu1 %v6293_v13  ;;  %3381 = vmatprep.mubr.f32.mxu1 %v7450_v20  ;;  %v2818_v11 = vadd.f32 %v7562_v45, %v2653_v25 }
0x18e8   :  { %5501 = vmatprep.subr.bf16.mxu1 %v6299_v18 }
0x18e9   :  { %v2819_v29 = vadd.f32 %v2818_v11, %v6587_v36 }
0x18eb   :  { %5503 = vmatpush1.bf16.msra.mxu1 %v6306_v26 }
0x18ec   :  { %5505 = vmatprep.subr.bf16.mxu1 %v6310_v31 }
0x18ef   :  { %5507 = vmatpush1.bf16.msra.mxu1 %v6317_v39 }
0x18f0   :  { %5509 = vmatprep.subr.bf16.mxu1 %v6322_v44 }
0x18f3   :  { %5511 = vmatpush1.bf16.msra.mxu1 %v6329_v52 }
0x18f4   :  { %5513 = vmatprep.subr.bf16.mxu1 %v6334_v57 }
0x18f7   :  { %5515 = vmatpush1.bf16.msra.mxu1 %v6341_v1 }
0x18f8   :  { %5517 = vmatprep.subr.bf16.mxu1 %v6346_v7 }
0x18fb   :  { %5519 = vmatpush1.bf16.msra.mxu1 %v7472_v17 }
0x18fc   :  { %5521 = vmatprep.subr.bf16.mxu1 %v7529_v19 }
0x18ff   :  { %5523 = vmatpush1.bf16.msra.mxu1 %v7558_v4 }
0x1900   :  { %5525 = vmatprep.subr.bf16.mxu1 %v7559_v22 }
0x1903   :  { %5527 = vmatpush1.bf16.msra.mxu1 %v7560_v10 }
0x1904   :  { %5553 = vmatprep.subr.bf16.mxu1 %v7561_v46 }
0x19a9   :  { %v3100_v42 = vpop.f32.mrb[26].mxu1 }
0x19aa   :  { %v3102_v61 = vpop.f32.mrb[27].mxu1 }
0x19ab   :  { %v3180_v37 = vcombine.low %v3100_v42, %v3102_v61 }
0x19ad   :  { %v3188_v2 = vrot.slane %v3180_v37, %v6444_v56 }
0x19b9   :  { %v3171_v5 = vpop.f32.mrb[28].mxu1 }
0x19ba   :  { %v3173_v9 = vpop.f32.mrb[29].mxu1 }
0x19bb   :  { %v3181_v24 = vcombine.low %v3171_v5, %v3173_v9 }
0x19bd   :  { %v3195_v14 = vrot.slane %v3181_v24, %v6444_v56 }
0x19bf   :  { %v3196_v40 = vcombine.low %v3188_v2, %v3195_v14 }
0x19c1   :  { %v3198_v51 = vadd.f32 %v3196_v40, %v2819_v29  ;;  %v7565_v40 = vld [vmem:[#allocation24_spill] sm:$0xff] }
0x19c3   :  { %v4487_v16 = vmul.f32 -1.442695, %v3198_v51  ;;  %v3206_v38 = vrot.slane %v3198_v51, 2  ;;  %v3217_v61 = vrot.slane %v3198_v51, 6  ;;  %v3214_v22 = vrot.slane %v3198_v51, 4  ;;  %v7566_v51 = vld [vmem:[#allocation25_spill] sm:$0xff] }
0x19c5   :  { %5839 = vpow2.f32 %v4487_v16  ;;  %v4488_v42 = vmul.f32 -1.442695, %v3206_v38  ;;  %v4489_v46 = vmul.f32 -1.442695, %v3217_v61  ;;  %v7567_v16 = vld [vmem:[#allocation26_spill] sm:$0xff]  ;;  %v7568_v38 = vld [vmem:[#allocation27_spill] sm:$0xff] }
0x19c6   :  { %v7570_v61 = vld [vmem:[#allocation29_spill] sm:$0xff] }
0x19c7   :  { %5841 = vpow2.f32 %v4488_v42  ;;  %v7569_v42 = vld [vmem:[#allocation28_spill] sm:$0xff] }
0x19c8   :  { %5843 = vpow2.f32 %v4489_v46 }
0x19cf   :  { %v5840_v10 = vpop.eup %5839 }
0x19d0   :  { %v3202_v63 = vadd.f32 1.0, %v5840_v10 }
0x19d1   :  { %v5842_v47 = vpop.eup %5841 }
0x19d2   :  { %5845 = vrcp.f32 %v3202_v63  ;;  %v3211_v37 = vadd.f32 1.0, %v5842_v47  ;;  %v5844_v25 = vpop.eup %5843  ;;  %v7571_v63 = vld [vmem:[#allocation30_spill] sm:$0xff]  ;;  %v7572_v47 = vld [vmem:[#allocation31_spill] sm:$0xff] }
0x19d3   :  { %5847 = vtanh.f32 %v3214_v22  ;;  %v3222_v11 = vadd.f32 1.0, %v5844_v25  ;;  %v7564_v22 = vld [vmem:[#allocation23_spill] sm:$0xff]  ;;  %v7574_v25 = vld [vmem:[#allocation33_spill] sm:$0xff] }
0x19d4   :  { %5849 = vrcp.f32 %v3211_v37  ;;  %v7573_v37 = vld [vmem:[#allocation32_spill] sm:$0xff] }
0x19d5   :  { %5851 = vrcp.f32 %v3222_v11  ;;  %v7578_v11 = vld [vmem:[#allocation41_spill] sm:$0xff] }
0x19dc   :  { %v5846_v5 = vpop.eup %5845 }
0x19dd   :  { %v5848_v9 = vpop.eup %5847 }
0x19de   :  { %v5850_v45 = vpop.eup %5849  ;;  %v3226_v2 = vmul.f32 %v5848_v9, %v5846_v5  ;;  %v7575_v5 = vld [vmem:[#allocation35_spill] sm:$0xff]  ;;  %v7576_v9 = vld [vmem:[#allocation37_spill] sm:$0xff] }
0x19df   :  { %v3225_v24 = vmul.f32 %v5850_v45, %v6968_v48  ;;  %v5852_v10 = vpop.eup %5851  ;;  %v7563_v48 = vld [vmem:[#allocation22_spill] sm:$0xff]  ;;  %v7577_v45 = vld [vmem:[#allocation39_spill] sm:$0xff] }
0x19e1   :  { %v7088_v14 = vadd.f32 %v3226_v2, %v3225_v24 }
0x19e3   :  { %5853 = vtanh.f32 %v7088_v14 }
0x19ed   :  { %v5854_v29 = vpop.eup %5853 }
0x19ee   :  { %v3229_v46 = vmul.f32 %v5854_v29, %v5852_v10 }
0x19f0   :  { %3231 = vst [vmem:[#allocation13 + $0x8] sm:$0x3] %v3229_v46  ;;  %3311 = vmatmul.mubr.f32.vlgmr.msra.gmra.mrb[20].mxu0 %v3229_v46  ;;  %3382 = vmatmul.mubr.f32.vlgmr.msra.gmra.mrb[30].mxu1 %v3229_v46 }
0x19f1   :  { %5530 = vmatpush3.bf16.msra.mxu0 %v6384_v54  ;;  %4826 = vmatprep.mubr.msk.f32.mxu0 %vm6117_vm0, %v7450_v20 }
0x19f2   :  { %5531 = vmatprep.subr.bf16.mxu0 %v7452_v35  ;;  %5555 = vmatpush1.bf16.msra.mxu1 %v6495_v30 }
0x19f3   :  { %5557 = vmatprep.subr.bf16.mxu1 %v6499_v58  ;;  %3690 = vmatprep.mubr.f32.mxu1 %v7450_v20 }
0x19f5   :  { %5533 = vmatpush3.bf16.msra.mxu0 %v6389_v59 }
0x19f6   :  { %5534 = vmatprep.subr.bf16.mxu0 %v7452_v35  ;;  %5559 = vmatpush1.bf16.msra.mxu1 %v6501_v23 }
0x19f7   :  { %5561 = vmatprep.subr.bf16.mxu1 %v6505_v49 }
0x19f9   :  { %5536 = vmatpush3.bf16.msra.mxu0 %v6396_v62 }
0x19fa   :  { %5537 = vmatprep.subr.bf16.mxu0 %v7452_v35  ;;  %5563 = vmatpush1.bf16.msra.mxu1 %v6507_v3 }
0x19fb   :  { %5565 = vmatprep.subr.bf16.mxu1 %v6511_v50 }
0x19fd   :  { %5539 = vmatpush3.bf16.msra.mxu0 %v6400_v6 }
0x19fe   :  { %5540 = vmatprep.subr.bf16.mxu0 %v7452_v35  ;;  %5567 = vmatpush1.bf16.msra.mxu1 %v6513_v0 }
0x19ff   :  { %5569 = vmatprep.subr.bf16.mxu1 %v6517_v60 }
0x1a01   :  { %5542 = vmatpush3.bf16.msra.mxu0 %v6404_v12 }
0x1a02   :  { %5543 = vmatprep.subr.bf16.mxu0 %v7452_v35 }
0x1a05   :  { %5545 = vmatpush3.bf16.msra.mxu0 %v6408_v21 }
0x1a06   :  { %5546 = vmatprep.subr.bf16.mxu0 %v7452_v35 }
0x1a09   :  { %5548 = vmatpush3.bf16.msra.mxu0 %v6412_v28 }
0x1a0a   :  { %5549 = vmatprep.subr.bf16.mxu0 %v7452_v35 }
0x1a0d   :  { %5551 = vmatpush3.bf16.msra.mxu0 %v6416_v32 }
0x1a0e   :  { %5585 = vmatprep.subr.bf16.mxu0 %v7563_v48 }
0x1a10   :  { %4827 = vmatmul.mubr.f32.vlgmr.msra.gmra.mrb[22].mxu0 %v3229_v46 }
0x1a11   :  { %5587 = vmatpush1.bf16.msra.mxu0 %v7564_v22  ;;  %3902 = vmatprep.mubr.f32.mxu0 %v7450_v20 }
0x1a12   :  { %5589 = vmatprep.subr.bf16.mxu0 %v7565_v40 }
0x1a15   :  { %5591 = vmatpush1.bf16.msra.mxu0 %v7566_v51 }
0x1a16   :  { %5593 = vmatprep.subr.bf16.mxu0 %v7567_v16 }
0x1a19   :  { %5595 = vmatpush1.bf16.msra.mxu0 %v7568_v38  ;;  %v7579_v38 = vld [vmem:[#allocation44_spill] sm:$0xff] }
0x1a1a   :  { %5597 = vmatprep.subr.bf16.mxu0 %v7569_v42 }
0x1a1d   :  { %5599 = vmatpush1.bf16.msra.mxu0 %v7570_v61 }
0x1a1e   :  { %5601 = vmatprep.subr.bf16.mxu0 %v7571_v63 }
0x1a21   :  { %5603 = vmatpush1.bf16.msra.mxu0 %v7572_v47 }
0x1a22   :  { %5605 = vmatprep.subr.bf16.mxu0 %v7573_v37 }
0x1a25   :  { %5607 = vmatpush1.bf16.msra.mxu0 %v7574_v25  ;;  %v7580_v25 = vld [vmem:[#allocation45_spill] sm:$0xff] }
0x1a26   :  { %5609 = vmatprep.subr.bf16.mxu0 %v7575_v5 }
0x1a29   :  { %5611 = vmatpush1.bf16.msra.mxu0 %v7576_v9 }
0x1a2a   :  { %5613 = vmatprep.subr.bf16.mxu0 %v7577_v45  ;;  %v7581_v45 = vld [vmem:[#allocation34_spill] sm:$0xff] }
0x1a2d   :  { %5615 = vmatpush1.bf16.msra.mxu0 %v7578_v11 }
0x1a2e   :  { %5648 = vmatprep.subr.bf16.mxu0 %v7452_v35 }
0x1ac3   :  { %v3312_v24 = vpop.f32.mrb[20].mxu0  ;;  %v3383_v2 = vpop.f32.mrb[30].mxu1 }
0x1ac4   :  { %v3314_v10 = vpop.f32.mrb[21].mxu0  ;;  %v3385_v29 = vpop.f32.mrb[31].mxu1 }
0x1ac5   :  { %v3392_v46 = vcombine.low %v3312_v24, %v3314_v10  ;;  %v3393_v48 = vcombine.low %v3383_v2, %v3385_v29  ;;  %v7582_v24 = vld [vmem:[#allocation46_spill] sm:$0xff]  ;;  %v7583_v29 = vld [vmem:[#allocation47_spill] sm:$0xff] }
0x1ac7   :  { %v7136_v22 = vrot.slane %v3392_v46, %v6444_v56  ;;  %v7139_v40 = vrot.slane %v3393_v48, %v6444_v56 }
0x1ae3   :  { %v3478_v16 = vpop.f32.mrb[22].mxu0 }
0x1ae4   :  { %v3489_v42 = vrot.slane %v3478_v16, %v7579_v38  ;;  %v4828_v61 = vpop.f32.mrb[23].mxu0 }
0x1ae6   :  { %v3490_v63 = vcombine.high %v3489_v42, %v3489_v42  ;;  %v3497_v47 = vrot.slane %v3489_v42, %v7579_v38 }
0x1ae8   :  { %v3504_v37 = vrot.slane %v3490_v63, %v7579_v38  ;;  %v3508_v5 = vrot.slane %v3497_v47, %v7580_v25  ;;  %v7585_v38 = vld [vmem:[#allocation48_spill] sm:$0xff] }
0x1aea   :  { %v3512_v9 = vrot.slane %v3504_v37, %v7580_v25  ;;  %v3515_v11 = vadd.f32 %v7581_v45, %v3508_v5 }
0x1aec   :  { %v3516_v2 = vadd.f32 %v7582_v24, %v3512_v9  ;;  %5855 = vtanh.f32 %v3515_v11  ;;  %v7584_v11 = vld [vmem:[#allocation49_spill] sm:$0xff] }
0x1aee   :  { %5857 = vtanh.f32 %v3516_v2 }
0x1af6   :  { %v5856_v10 = vpop.eup %5855 }
0x1af7   :  { %v3519_v46 = vmul.f32 %v7583_v29, %v5856_v10 }
0x1af8   :  { %v5858_v48 = vpop.eup %5857 }
0x1af9   :  { %3521 = vadd.xlane.f32.xlu0 %v3519_v46  ;;  %v3520_v16 = vmul.f32 %v7583_v29, %v5858_v48 }
0x1afb   :  { %3523 = vadd.xlane.f32.xlu1 %v3520_v16 }
0x1b86   :  { %v3522_v42 = vpop.xlane.xlu0 %3521 }
0x1b87   :  { %v3530_v63 = vrot.slane %v3522_v42, %v6441_v43 }
0x1b88   :  { %v3524_v61 = vpop.xlane.xlu1 %3523 }
0x1b89   :  { %v3534_v47 = vrot.slane %v3524_v61, %v6441_v43 }
0x1b8b   :  { %v3535_v37 = vsel %vm574_vm1, %v3534_v47, %v3530_v63 }
0x1b8c   :  { %v3537_v5 = vsel %vm577_vm2, %v3535_v37, -inf }
0x1b8d   :  { %3538 = vmax.xlane.f32.xlu1 %v3537_v5 }
0x1c1a   :  { %v3539_v9 = vpop.xlane.xlu1 %3538 }
0x1c1b   :  { %v3544_v45 = vrot.slane %v3539_v9, %v7580_v25  ;;  %v3548_v24 = vrot.slane %v3539_v9, %v7584_v11 }
0x1c1d   :  { %v3551_v2 = vsub.f32 %v3522_v42, %v3544_v45  ;;  %v3552_v10 = vsub.f32 %v3524_v61, %v3548_v24 }
0x1c1f   :  { %v3553_v29 = vmul.f32 1.442695, %v3551_v2  ;;  %v3555_v46 = vmul.f32 1.442695, %v3552_v10 }
0x1c21   :  { %5859 = vpow2.f32 %v3553_v29 }
0x1c22   :  { %5861 = vpow2.f32 %v3555_v46 }
0x1c2b   :  { %v5860_v48 = vpop.eup %5859 }
0x1c2c   :  { %v5862_v16 = vpop.eup %5861  ;;  %3560 = vperm.xlu1 %5723, %v5860_v48  }
0x1c2d   :  { %3563 = vperm.xlu0 %5724, %v5862_v16  }
0x1cab   :  { %v3561_v51 = vpop.permute.xlu1 %3560 }
0x1cac   :  { %v3564_v63 = vpop.permute.xlu0 %3563  ;;  %v3568_v47 = vrot.slane %v3561_v51, %v6441_v43 }
0x1cad   :  { %v3572_v37 = vrot.slane %v3564_v63, %v6441_v43 }
0x1caf   :  { %v3573_v5 = vsel %vm574_vm1, %v3572_v37, %v3568_v47 }
0x1cb0   :  { %v3575_v9 = vsel %vm577_vm2, %v3573_v5, 0.0 }
0x1cb1   :  { %3576 = vadd.xlane.f32.xlu1 %v3575_v9 }
0x1d3e   :  { %v3577_v42 = vpop.xlane.xlu1 %3576 }
0x1d3f   :  { %5863 = vrcp.f32 %v3577_v42 }
0x1d49   :  { %v5864_v61 = vpop.eup %5863 }
0x1d4a   :  { %v3579_v45 = vmul.f32 %v5864_v61, %v3577_v42  ;;  %v7586_v42 = vld [vmem:[#allocation52_spill] sm:$0xff] }
0x1d4c   :  { %v3580_v24 = vsub.f32 2.0, %v3579_v45 }
0x1d4e   :  { %v3581_v2 = vmul.f32 %v5864_v61, %v3580_v24 }
0x1d50   :  { %v3586_v10 = vrot.slane %v3581_v2, %v7580_v25  ;;  %v3590_v46 = vrot.slane %v3581_v2, %v7584_v11 }
0x1d52   :  { %v3593_v29 = vmul.f32 %v5860_v48, %v3586_v10  ;;  %v3594_v51 = vmul.f32 %v5862_v16, %v3590_v46 }
0x1d54   :  { %3597 = vperm.xlu0 %5724, %v3593_v29  }
0x1d58   :  { %3602 = vperm.xlu0 %5724, %v3594_v51  }
0x1dd3   :  { %v3598_v63 = vpop.permute.xlu0 %3597 }
0x1dd4   :  { %v3605_v47 = vmul.f32 %v7585_v38, %v3598_v63  ;;  %v3827_v32 = vrot.slane %v3598_v63, %v6441_v43 }
0x1dd6   :  { %v3607_v37 = vsel %vm648_vm3, %v3605_v47, 0.0 }
0x1dd7   :  { %v3608_v5 = vrot.slane %v3607_v37, 4  ;;  %v3603_v9 = vpop.permute.xlu0 %3602 }
0x1dd8   :  { %v3606_v45 = vmul.f32 %v7586_v42, %v3603_v9  ;;  %v3831_v61 = vrot.slane %v3603_v9, %v6441_v43 }
0x1dd9   :  { %v3609_v24 = vadd.f32 %v3608_v5, %v3607_v37 }
0x1dda   :  { %v3614_v48 = vsel %vm648_vm3, %v3606_v45, 0.0  ;;  %v3832_v2 = vsel %vm574_vm1, %v3831_v61, %v3827_v32 }
0x1ddb   :  { %v3610_v16 = vrot.slane %v3609_v24, 2  ;;  %v3615_v10 = vrot.slane %v3614_v48, 4  ;;  %3835 = vst.msk [vmem:[#allocation14 + $0xa] sm:$0x3] %vm577_vm2, %v3832_v2 }
0x1ddd   :  { %v3611_v38 = vadd.f32 %v3610_v16, %v3609_v24  ;;  %v3616_v29 = vadd.f32 %v3615_v10, %v3614_v48 }
0x1ddf   :  { %v3617_v46 = vrot.slane %v3616_v29, 2  ;;  %v3612_v51 = vrot.slane %v3611_v38, 1 }
0x1de1   :  { %v3618_v47 = vadd.f32 %v3617_v46, %v3616_v29  ;;  %v3613_v63 = vadd.f32 %v3612_v51, %v3611_v38 }
0x1de3   :  { %v3619_v11 = vrot.slane %v3618_v47, 1 }
0x1de5   :  { %v3620_v25 = vadd.f32 %v3619_v11, %v3618_v47 }
0x1de7   :  { %v3623_v42 = vsel %vm574_vm1, %v3620_v25, %v3613_v63 }
0x1de8   :  { %4490 = vmatmul.mubr.msk.f32.vlgmr.msra.gmra.mrb[32].mxu1 %vm648_vm3, %v3623_v42 }
0x1de9   :  { %5571 = vmatpush1.bf16.msra.mxu1 %v6532_v55  ;;  %3761 = vmatprep.mubr.f32.mxu1 %v7450_v20 }
0x1dea   :  { %5573 = vmatprep.subr.bf16.mxu1 %v6534_v34 }
0x1ded   :  { %5575 = vmatpush1.bf16.msra.mxu1 %v6539_v53 }
0x1dee   :  { %5577 = vmatprep.subr.bf16.mxu1 %v6543_v27 }
0x1df1   :  { %5579 = vmatpush1.bf16.msra.mxu1 %v6546_v33 }
0x1df2   :  { %5581 = vmatprep.subr.bf16.mxu1 %v6549_v15 }
0x1df5   :  { %5583 = vmatpush1.bf16.msra.mxu1 %v6552_v41 }
0x1df6   :  { %5617 = vmatprep.subr.bf16.mxu1 %v6288_v8  ;;  %v7587_v8 = vld [vmem:[#allocation40_spill] sm:$0xff] }
0x1df8   :  { %4491 = vmatmul.mubr.msk.f32.vlgmr.msra.gmra.mrb[34].mxu1 %vm648_vm3, %v3623_v42 }
0x1df9   :  { %5619 = vmatpush1.bf16.msra.mxu1 %v6293_v13  ;;  %3973 = vmatprep.mubr.f32.mxu1 %v7450_v20  ;;  %v7588_v13 = vld [vmem:[#allocation42_spill] sm:$0xff] }
0x1dfa   :  { %5621 = vmatprep.subr.bf16.mxu1 %v6299_v18  ;;  %v7589_v18 = vld [vmem:[#allocation50_spill] sm:$0xff] }
0x1dfd   :  { %5623 = vmatpush1.bf16.msra.mxu1 %v6306_v26 }
0x1dfe   :  { %5625 = vmatprep.subr.bf16.mxu1 %v6310_v31 }
0x1e01   :  { %5627 = vmatpush1.bf16.msra.mxu1 %v6317_v39 }
0x1e02   :  { %5629 = vmatprep.subr.bf16.mxu1 %v6322_v44  ;;  %v3245_v44 = vld [vmem:[#allocation7 + $0x28] sm:$0xff] }
0x1e05   :  { %5631 = vmatpush1.bf16.msra.mxu1 %v6329_v52 }
0x1e06   :  { %5633 = vmatprep.subr.bf16.mxu1 %v6334_v57 }
0x1e09   :  { %5635 = vmatpush1.bf16.msra.mxu1 %v6341_v1  ;;  %v7590_v1 = vcombine.low %v7136_v22, %v7139_v40 }
0x1e0a   :  { %5637 = vmatprep.subr.bf16.mxu1 %v6346_v7 }
0x1e0b   :  { %v3410_v7 = vadd.f32 %v7590_v1, %v3245_v44 }
0x1e0d   :  { %5639 = vmatpush1.bf16.msra.mxu1 %v7472_v17 }
0x1e0e   :  { %5641 = vmatprep.subr.bf16.mxu1 %v7529_v19 }
0x1e11   :  { %5643 = vmatpush1.bf16.msra.mxu1 %v7558_v4  ;;  %v3411_v4 = vadd.f32 %v3410_v7, %v6587_v36  ;;  %v5914_v7 = vld [vmem:[%s7325_s6] ss:$0 sm:$0xff]  ;;  %s6121_s6 = smov [#allocation14]  }
0x1e12   :  { %5645 = vmatprep.subr.bf16.mxu1 %v7587_v8  ;;  %s4445_s2 = sshll.u32 %s6121_s6, 4  ;;  %s4446_s2 = int_to_ptr.vmem [resolvable:$true] %s4445_s2 }
0x1e13   :  { %s6049_s30 = scalar_lea.vmem %s4446_s2, 224  ;;  %p6054_p7 = scmp.lt.s32.totalorder %s4446_s2, %s4446_s2 }
0x1e14   :  { %p6050_p6 = scmp.ne.s32.totalorder %s4446_s2, %s6049_s30  ;;  %p6055_p8 = scmp.lt.s32.totalorder %s6049_s30, %s6049_s30 }
0x1e15   :  { %5647 = vmatpush1.bf16.msra.mxu1 %v7588_v13 }
0x1e16   :  { %5673 = vmatprep.subr.bf16.mxu1 %v7589_v18  ;;  %v7593_v18 = vld [vmem:[#allocation45_spill] sm:$0xff]  ;;  %p6056_p9 = por %p6055_p8, %p6054_p7 }
0x1e18   :  { %p6057_p10 = pnand %p6056_p9, %p6050_p6 }
0x1ebb   :  { %v3692_v26 = vpop.f32.mrb[32].mxu1 }
0x1ebc   :  { %v3694_v31 = vpop.f32.mrb[33].mxu1 }
0x1ebd   :  { %v3772_v39 = vcombine.low %v3692_v26, %v3694_v31 }
0x1ebf   :  { %v3780_v17 = vrot.slane %v3772_v39, %v6444_v56  ;;  %v5912_v39 = vld [vmem:[#allocation5] sm:$0xff] }
0x1ecb   :  { %v3763_v52 = vpop.f32.mrb[34].mxu1 }
0x1ecc   :  { %v3765_v57 = vpop.f32.mrb[35].mxu1 }
0x1ecd   :  { %v3773_v32 = vcombine.low %v3763_v52, %v3765_v57  ;;  %v5913_v52 = vld [vmem:[#allocation5 + $0x8] sm:$0xff] }
0x1ecf   :  { %v3787_v19 = vrot.slane %v3773_v32, %v6444_v56 }
0x1ed1   :  { %v3788_v25 = vcombine.low %v3780_v17, %v3787_v19 }
0x1ed3   :  { %v3790_v11 = vadd.f32 %v3788_v25, %v3411_v4 }
0x1ed5   :  { %v4492_v37 = vmul.f32 -1.442695, %v3790_v11  ;;  %v3798_v5 = vrot.slane %v3790_v11, 2  ;;  %v3809_v45 = vrot.slane %v3790_v11, 6  ;;  %v3806_v48 = vrot.slane %v3790_v11, 4 }
0x1ed7   :  { %5865 = vpow2.f32 %v4492_v37  ;;  %v4493_v9 = vmul.f32 -1.442695, %v3798_v5  ;;  %v4494_v61 = vmul.f32 -1.442695, %v3809_v45 }
0x1ed9   :  { %5867 = vpow2.f32 %v4493_v9 }
0x1eda   :  { %5869 = vpow2.f32 %v4494_v61 }
0x1ee1   :  { %v5866_v24 = vpop.eup %5865 }
0x1ee2   :  { %v3794_v22 = vadd.f32 1.0, %v5866_v24  ;;  %v7594_v24 = vld [vmem:[#allocation49_spill] sm:$0xff] }
0x1ee3   :  { %v5868_v40 = vpop.eup %5867 }
0x1ee4   :  { %5871 = vrcp.f32 %v3794_v22  ;;  %v3803_v2 = vadd.f32 1.0, %v5868_v40  ;;  %v5870_v16 = vpop.eup %5869 }
0x1ee5   :  { %5873 = vtanh.f32 %v3806_v48  ;;  %v3814_v46 = vadd.f32 1.0, %v5870_v16 }
0x1ee6   :  { %5875 = vrcp.f32 %v3803_v2 }
0x1ee7   :  { %5877 = vrcp.f32 %v3814_v46 }
0x1eee   :  { %v5872_v10 = vpop.eup %5871 }
0x1eef   :  { %v5874_v38 = vpop.eup %5873 }
0x1ef0   :  { %v5876_v29 = vpop.eup %5875  ;;  %v3818_v47 = vmul.f32 %v5874_v38, %v5872_v10 }
0x1ef1   :  { %v3817_v51 = vmul.f32 %v5876_v29, %v7088_v14  ;;  %v5878_v42 = vpop.eup %5877 }
0x1ef3   :  { %v7208_v63 = vadd.f32 %v3818_v47, %v3817_v51 }
0x1ef5   :  { %5879 = vtanh.f32 %v7208_v63 }
0x1eff   :  { %v5880_v8 = vpop.eup %5879 }
0x1f00   :  { %v3821_v13 = vmul.f32 %v5880_v8, %v5878_v42 }
0x1f02   :  { %3823 = vst [vmem:[#allocation13 + $0xa] sm:$0x3] %v3821_v13  ;;  %3903 = vmatmul.mubr.f32.vlgmr.msra.gmra.mrb[24].mxu0 %v3821_v13  ;;  %3974 = vmatmul.mubr.f32.vlgmr.msra.gmra.mrb[36].mxu1 %v3821_v13 }
0x1f03   :  { %5650 = vmatpush3.bf16.msra.mxu0 %v6384_v54  ;;  %4861 = vmatprep.mubr.msk.f32.mxu0 %vm6117_vm0, %v7450_v20  ;;  %v7591_v54 = vld [vmem:[#allocation43_spill] sm:$0xff] }
0x1f04   :  { %5651 = vmatprep.subr.bf16.mxu0 %v7452_v35  ;;  %5675 = vmatpush1.bf16.msra.mxu1 %v6495_v30 }
0x1f05   :  { %5677 = vmatprep.subr.bf16.mxu1 %v6499_v58  ;;  %4282 = vmatprep.mubr.f32.mxu1 %v7450_v20 }
0x1f07   :  { %5653 = vmatpush3.bf16.msra.mxu0 %v6389_v59 }
0x1f08   :  { %5654 = vmatprep.subr.bf16.mxu0 %v7452_v35  ;;  %5679 = vmatpush1.bf16.msra.mxu1 %v6501_v23 }
0x1f09   :  { %5681 = vmatprep.subr.bf16.mxu1 %v6505_v49 }
0x1f0b   :  { %5656 = vmatpush3.bf16.msra.mxu0 %v6396_v62 }
0x1f0c   :  { %5657 = vmatprep.subr.bf16.mxu0 %v7452_v35  ;;  %5683 = vmatpush1.bf16.msra.mxu1 %v6507_v3  ;;  %v7592_v3 = vld [vmem:[#allocation44_spill] sm:$0xff] }
0x1f0d   :  { %5685 = vmatprep.subr.bf16.mxu1 %v6511_v50 }
0x1f0f   :  { %5659 = vmatpush3.bf16.msra.mxu0 %v6400_v6 }
0x1f10   :  { %5660 = vmatprep.subr.bf16.mxu0 %v7452_v35  ;;  %5687 = vmatpush1.bf16.msra.mxu1 %v6513_v0 }
0x1f11   :  { %5689 = vmatprep.subr.bf16.mxu1 %v6517_v60 }
0x1f13   :  { %5662 = vmatpush3.bf16.msra.mxu0 %v6404_v12 }
0x1f14   :  { %5663 = vmatprep.subr.bf16.mxu0 %v7452_v35 }
0x1f17   :  { %5665 = vmatpush3.bf16.msra.mxu0 %v6408_v21 }
0x1f18   :  { %5666 = vmatprep.subr.bf16.mxu0 %v7452_v35 }
0x1f1b   :  { %5668 = vmatpush3.bf16.msra.mxu0 %v6412_v28 }
0x1f1c   :  { %5669 = vmatprep.subr.bf16.mxu0 %v7452_v35 }
0x1f1f   :  { %5671 = vmatpush3.bf16.msra.mxu0 %v7591_v54 }
0x1f22   :  { %4862 = vmatmul.mubr.f32.vlgmr.msra.gmra.mrb[26].mxu0 %v3821_v13 }
0x1fd5   :  { %v3904_v59 = vpop.f32.mrb[24].mxu0  ;;  %v3975_v62 = vpop.f32.mrb[36].mxu1 }
0x1fd6   :  { %v3906_v6 = vpop.f32.mrb[25].mxu0  ;;  %v3977_v30 = vpop.f32.mrb[37].mxu1 }
0x1fd7   :  { %v3984_v58 = vcombine.low %v3904_v59, %v3906_v6  ;;  %v3985_v23 = vcombine.low %v3975_v62, %v3977_v30 }
0x1fd9   :  { %v7238_v12 = vrot.slane %v3984_v58, %v6444_v56  ;;  %v7241_v21 = vrot.slane %v3985_v23, %v6444_v56 }
0x1fdb   :  { %v4000_v28 = vcombine.low %v7238_v12, %v7241_v21 }
0x1ff5   :  { %v4070_v49 = vpop.f32.mrb[26].mxu0 }
0x1ff6   :  { %v4081_v50 = vrot.slane %v4070_v49, %v7592_v3  ;;  %v4863_v0 = vpop.f32.mrb[27].mxu0 }
0x1ff8   :  { %v4082_v60 = vcombine.high %v4081_v50, %v4081_v50  ;;  %v4089_v35 = vrot.slane %v4081_v50, %v7592_v3  ;;  %v5915_v50 = vld [vmem:[#allocation2] sm:$0xff] }
0x1ffa   :  { %v4096_v14 = vrot.slane %v4082_v60, %v7592_v3  ;;  %v4100_v26 = vrot.slane %v4089_v35, %v7593_v18 }
0x1ffc   :  { %v4104_v31 = vrot.slane %v4096_v14, %v7593_v18  ;;  %v4107_v44 = vadd.f32 %v5912_v39, %v4100_v26 }
0x1ffe   :  { %v4108_v57 = vadd.f32 %v5913_v52, %v4104_v31  ;;  %5881 = vtanh.f32 %v4107_v44  ;;  %v5916_v31 = vld [vmem:[#allocation2 + $0x8] sm:$0xff] }
0x2000   :  { %5883 = vtanh.f32 %v4108_v57 }
0x2008   :  { %v5882_v1 = vpop.eup %5881 }
0x2009   :  { %v4111_v32 = vmul.f32 %v5914_v7, %v5882_v1 }
0x200a   :  { %v5884_v17 = vpop.eup %5883 }
0x200b   :  { %4113 = vadd.xlane.f32.xlu0 %v4111_v32  ;;  %v4112_v19 = vmul.f32 %v5914_v7, %v5884_v17 }
0x200d   :  { %4115 = vadd.xlane.f32.xlu1 %v4112_v19 }
0x2098   :  { %v4114_v4 = vpop.xlane.xlu0 %4113 }
0x2099   :  { %v4122_v11 = vrot.slane %v4114_v4, %v6441_v43 }
0x209a   :  { %v4116_v25 = vpop.xlane.xlu1 %4115 }
0x209b   :  { %v4126_v37 = vrot.slane %v4116_v25, %v6441_v43 }
0x209d   :  { %v4127_v5 = vsel %vm574_vm1, %v4126_v37, %v4122_v11 }
0x209e   :  { %v4129_v9 = vsel %vm577_vm2, %v4127_v5, -inf }
0x209f   :  { %4130 = vmax.xlane.f32.xlu1 %v4129_v9 }
0x212c   :  { %v4131_v45 = vpop.xlane.xlu1 %4130 }
0x212d   :  { %v4136_v61 = vrot.slane %v4131_v45, %v7593_v18  ;;  %v4140_v48 = vrot.slane %v4131_v45, %v7594_v24 }
0x212f   :  { %v4143_v22 = vsub.f32 %v4114_v4, %v4136_v61  ;;  %v4144_v40 = vsub.f32 %v4116_v25, %v4140_v48 }
0x2131   :  { %v4145_v2 = vmul.f32 1.442695, %v4143_v22  ;;  %v4147_v16 = vmul.f32 1.442695, %v4144_v40 }
0x2133   :  { %5885 = vpow2.f32 %v4145_v2 }
0x2134   :  { %5887 = vpow2.f32 %v4147_v16 }
0x213d   :  { %v5886_v10 = vpop.eup %5885 }
0x213e   :  { %v5888_v38 = vpop.eup %5887  ;;  %4152 = vperm.xlu1 %5723, %v5886_v10  }
0x213f   :  { %4155 = vperm.xlu0 %5724, %v5888_v38  }
0x21bd   :  { %v4153_v29 = vpop.permute.xlu1 %4152 }
0x21be   :  { %v4156_v46 = vpop.permute.xlu0 %4155  ;;  %v4160_v51 = vrot.slane %v4153_v29, %v6441_v43 }
0x21bf   :  { %v4164_v47 = vrot.slane %v4156_v46, %v6441_v43 }
0x21c1   :  { %v4165_v42 = vsel %vm574_vm1, %v4164_v47, %v4160_v51 }
0x21c2   :  { %v4167_v8 = vsel %vm577_vm2, %v4165_v42, 0.0 }
0x21c3   :  { %4168 = vadd.xlane.f32.xlu1 %v4167_v8 }
0x2250   :  { %v4169_v13 = vpop.xlane.xlu1 %4168 }
0x2251   :  { %5889 = vrcp.f32 %v4169_v13 }
0x225b   :  { %v5890_v54 = vpop.eup %5889 }
0x225c   :  { %v4171_v59 = vmul.f32 %v5890_v54, %v4169_v13 }
0x225e   :  { %v4172_v62 = vsub.f32 2.0, %v4171_v59 }
0x2260   :  { %v4173_v6 = vmul.f32 %v5890_v54, %v4172_v62 }
0x2262   :  { %v4178_v30 = vrot.slane %v4173_v6, %v7593_v18  ;;  %v4182_v58 = vrot.slane %v4173_v6, %v7594_v24 }
0x2264   :  { %v4185_v23 = vmul.f32 %v5886_v10, %v4178_v30  ;;  %v4186_v49 = vmul.f32 %v5888_v38, %v4182_v58 }
0x2266   :  { %4189 = vperm.xlu0 %5724, %v4185_v23  }
0x226a   :  { %4194 = vperm.xlu0 %5724, %v4186_v49  }
0x22e5   :  { %v4190_v3 = vpop.permute.xlu0 %4189 }
0x22e6   :  { %v4197_v0 = vmul.f32 %v5915_v50, %v4190_v3  ;;  %v4419_v26 = vrot.slane %v4190_v3, %v6441_v43 }
0x22e8   :  { %v4199_v60 = vsel %vm648_vm3, %v4197_v0, 0.0 }
0x22e9   :  { %v4200_v35 = vrot.slane %v4199_v60, 4  ;;  %v4195_v14 = vpop.permute.xlu0 %4194 }
0x22ea   :  { %v4198_v39 = vmul.f32 %v5916_v31, %v4195_v14  ;;  %v4423_v44 = vrot.slane %v4195_v14, %v6441_v43 }
0x22eb   :  { %v4201_v18 = vadd.f32 %v4200_v35, %v4199_v60 }
0x22ec   :  { %v4206_v52 = vsel %vm648_vm3, %v4198_v39, 0.0  ;;  %v4424_v57 = vsel %vm574_vm1, %v4423_v44, %v4419_v26 }
0x22ed   :  { %v4202_v1 = vrot.slane %v4201_v18, 2  ;;  %v4207_v7 = vrot.slane %v4206_v52, 4  ;;  %4427 = vst.msk [vmem:[#allocation14 + $0xc] sm:$0x3] %vm577_vm2, %v4424_v57 }
0x22ef   :  { %v4203_v32 = vadd.f32 %v4202_v1, %v4201_v18  ;;  %v4208_v17 = vadd.f32 %v4207_v7, %v4206_v52 }
0x22f1   :  { %v4209_v19 = vrot.slane %v4208_v17, 2  ;;  %v4204_v4 = vrot.slane %v4203_v32, 1 }
0x22f3   :  { %v4210_v25 = vadd.f32 %v4209_v19, %v4208_v17  ;;  %v4205_v37 = vadd.f32 %v4204_v4, %v4203_v32 }
0x22f5   :  { %v4211_v11 = vrot.slane %v4210_v25, 1 }
0x22f7   :  { %v4212_v5 = vadd.f32 %v4211_v11, %v4210_v25 }
0x22f9   :  { %v4215_v9 = vsel %vm574_vm1, %v4212_v5, %v4205_v37 }
0x22fa   :  { %4495 = vmatmul.mubr.msk.f32.vlgmr.msra.gmra.mrb[38].mxu1 %vm648_vm3, %v4215_v9 }
0x22fb   :  { %5691 = vmatpush1.bf16.msra.mxu1 %v6532_v55  ;;  %4353 = vmatprep.mubr.f32.mxu1 %v7450_v20 }
0x22fc   :  { %5693 = vmatprep.subr.bf16.mxu1 %v6534_v34 }
0x22ff   :  { %5695 = vmatpush1.bf16.msra.mxu1 %v6539_v53 }
0x2300   :  { %5697 = vmatprep.subr.bf16.mxu1 %v6543_v27 }
0x2303   :  { %5699 = vmatpush1.bf16.msra.mxu1 %v6546_v33 }
0x2304   :  { %5701 = vmatprep.subr.bf16.mxu1 %v6549_v15 }
0x2307   :  { %5703 = vmatpush1.bf16.msra.mxu1 %v6552_v41 }
0x230a   :  { %4496 = vmatmul.mubr.msk.f32.vlgmr.msra.gmra.mrb[40].mxu1 %vm648_vm3, %v4215_v9 }
0x230b   :  { %6060 = shalt.err (!%p6057_p10)
}
0x230c   :  { %s6061_s23 = scalar_lea.hbm %s7330_s11, 224 }
0x230d   :  { %p6062_p11 = scmp.ne.s32.totalorder %s7330_s11, %s6061_s23  ;;  %p6065_p12 = scmp.lt.u32.totalorder %s6061_s23, %s7330_s11 }
0x230f   :  { %p6067_p13 = pnand %p6065_p12, %p6062_p11 }
0x2311   :  { %6070 = shalt.err (!%p6067_p13)
}
0x2312   :  { %s6122_s28 = smov 2   ;;  %v3837_v53 = vld [vmem:[#allocation7 + $0x30] sm:$0xff] }
0x2313   :  { %4451 = dma.vmem_to_hbm [thread:$0]  %s4446_s2, 224, %s7330_s11, [#allocation15], %s6113_s29, %s6113_s29, %s6122_s28   ;;  %v4002_v33 = vadd.f32 %v4000_v28, %v3837_v53 }
0x2314   :  { %s6123_s11 = smov [#allocation13]  }
0x2315   :  { %v4003_v61 = vadd.f32 %v4002_v33, %v6587_v36  ;;  %s4433_s12 = sshll.u32 %s6123_s11, 4  ;;  %s4434_s12 = int_to_ptr.vmem [resolvable:$true] %s4433_s12 }
0x2316   :  { %s6071_s7 = scalar_lea.vmem %s4434_s12, 224  ;;  %p6076_p1 = scmp.lt.s32.totalorder %s4434_s12, %s4434_s12 }
0x2317   :  { %p6072_p0 = scmp.ne.s32.totalorder %s4434_s12, %s6071_s7  ;;  %p6077_p2 = scmp.lt.s32.totalorder %s6071_s7, %s6071_s7 }
0x2319   :  { %p6078_p3 = por %p6077_p2, %p6076_p1 }
0x231b   :  { %p6079_p4 = pnand %p6078_p3, %p6072_p0 }
0x23cd   :  { %v4284_v43 = vpop.f32.mrb[38].mxu1 }
0x23ce   :  { %v4286_v55 = vpop.f32.mrb[39].mxu1 }
0x23cf   :  { %v4364_v34 = vcombine.low %v4284_v43, %v4286_v55 }
0x23d1   :  { %v4372_v41 = vrot.slane %v4364_v34, %v6444_v56 }
0x23dd   :  { %v4355_v20 = vpop.f32.mrb[40].mxu1 }
0x23de   :  { %v4357_v27 = vpop.f32.mrb[41].mxu1 }
0x23df   :  { %v4365_v15 = vcombine.low %v4355_v20, %v4357_v27 }
0x23e1   :  { %v4379_v45 = vrot.slane %v4365_v15, %v6444_v56 }
0x23e3   :  { %v4380_v24 = vcombine.low %v4372_v41, %v4379_v45 }
0x23e5   :  { %v4382_v48 = vadd.f32 %v4380_v24, %v4003_v61 }
0x23e7   :  { %v4497_v22 = vmul.f32 -1.442695, %v4382_v48  ;;  %v4390_v40 = vrot.slane %v4382_v48, 2  ;;  %v4401_v16 = vrot.slane %v4382_v48, 6  ;;  %v4398_v29 = vrot.slane %v4382_v48, 4 }
0x23e9   :  { %5891 = vpow2.f32 %v4497_v22  ;;  %v4498_v2 = vmul.f32 -1.442695, %v4390_v40  ;;  %v4499_v10 = vmul.f32 -1.442695, %v4401_v16 }
0x23eb   :  { %5893 = vpow2.f32 %v4498_v2 }
0x23ec   :  { %5895 = vpow2.f32 %v4499_v10 }
0x23f3   :  { %v5892_v38 = vpop.eup %5891 }
0x23f4   :  { %v4386_v12 = vadd.f32 1.0, %v5892_v38 }
0x23f5   :  { %v5894_v21 = vpop.eup %5893 }
0x23f6   :  { %5897 = vrcp.f32 %v4386_v12  ;;  %v4395_v28 = vadd.f32 1.0, %v5894_v21  ;;  %v5896_v56 = vpop.eup %5895 }
0x23f7   :  { %5899 = vtanh.f32 %v4398_v29  ;;  %v4406_v47 = vadd.f32 1.0, %v5896_v56 }
0x23f8   :  { %5901 = vrcp.f32 %v4395_v28 }
0x23f9   :  { %5903 = vrcp.f32 %v4406_v47 }
0x2400   :  { %v5898_v36 = vpop.eup %5897 }
0x2401   :  { %v5900_v46 = vpop.eup %5899 }
0x2402   :  { %v5902_v51 = vpop.eup %5901  ;;  %v4410_v8 = vmul.f32 %v5900_v46, %v5898_v36 }
0x2403   :  { %v4409_v42 = vmul.f32 %v5902_v51, %v7208_v63  ;;  %v5904_v54 = vpop.eup %5903 }
0x2405   :  { %v4411_v13 = vadd.f32 %v4410_v8, %v4409_v42 }
0x2407   :  { %5905 = vtanh.f32 %v4411_v13 }
0x2411   :  { %v5906_v59 = vpop.eup %5905 }
0x2412   :  { %v4413_v62 = vmul.f32 %v5906_v59, %v5904_v54 }
0x2414   :  { %4415 = vst [vmem:[#allocation13 + $0xc] sm:$0x3] %v4413_v62 }
0x2415   :  { %6082 = shalt.err (!%p6079_p4)
}
0x2416   :  { %s6083_s14 = scalar_lea.hbm %s7329_s10, 224 }
0x2417   :  { %p6084_p5 = scmp.ne.s32.totalorder %s7329_s10, %s6083_s14  ;;  %p6087_p6 = scmp.lt.u32.totalorder %s6083_s14, %s7329_s10 }
0x2419   :  { %p6089_p7 = pnand %p6087_p6, %p6084_p5 }
0x241b   :  { %6092 = shalt.err (!%p6089_p7)
}
0x241c   :  { %4439 = dma.vmem_to_hbm [thread:$0]  %s4434_s12, 224, %s7329_s10, [#allocation4], %s6113_s29, %s6113_s29, %s6122_s28  }
0x241d   :  { %6101 = dma.done.wait [#allocation4], 224  }
0x241e   :  { %6102 = vsyncadd [#allocation4], 4294967072 }
0x241f   :  { %6103 = dma.done.wait [#allocation15], 224  }
0x2420   :  { %6104 = vsyncadd [#allocation15], 4294967072 }
0x2421   :  { %4458 = vsyncpa [#allocation3], 1 }
0x2422   :  { %4459 = vsyncpa [#allocation6], 1 }
0x2423   :  { %4460 = vsyncpa [#allocation9], 1 }
0x2424   :  { %4461 = vsyncpa [#allocation12], 1 }
0x2425   :  { %4462 = vsyncpa [#allocation4], 1 }
0x2426   :  { %4463 = vsyncpa [#allocation15], 1 }

</bundles_post_ra>
